<compile_context>
chip_gen: v7x
topology: tpu7x:2x2x1
jax: 0.10.0
libtpu: 0.0.40
codegen_flags: <defaults>
</compile_context>

<pallas_src>
import functools

import jax
import jax.numpy as jnp
from jax.experimental import pallas as pl
from jax.experimental.pallas import tpu as pltpu


CATEGORIES = {
    "gender": 3, "material": 23, "pattern": 18, "style": 10,
    "sleeve": 4, "category": 48, "color": 19,
}
TWO_LAYER = ("material", "pattern", "category")              # Linear(1280,256)+ReLU+Linear(256,n)
DIRECT = tuple(c for c in CATEGORIES if c not in TWO_LAYER)  # Linear(1280,n)

FEATURE_DIM = 1280   # EfficientNetV2-M classifier[1].in_features
STEM_OUT = 24        # EfficientNetV2-M stem conv output channels
STEM_PAD = 128       # stem channels padded to a lane-native width (zero-padded, exact math)
K_PAD = 32           # im2col K (3*3*3 = 27) padded to a sublane-friendly width
BN_EPS = 1e-3        # torchvision efficientnet BatchNorm eps

HIDDEN_PER = 256
HIDDEN_TOTAL = HIDDEN_PER * len(TWO_LAYER)           # 768
DIRECT_TOTAL = sum(CATEGORIES[c] for c in DIRECT)    # 36
OUT2_TOTAL = sum(CATEGORIES[c] for c in TWO_LAYER)   # 89
DIRECT_PAD = 128                                     # lane-dense direct-logit slab
OUT2_PAD = 128                                       # lane-dense second-stage logit slab
N1_PAD = HIDDEN_TOTAL + DIRECT_PAD                   # 896 = first-stage output width

N_CHUNK = 256                                        # head-conv output chunk (MXU-native on v6e/v7x)
ROW_TILE_TARGET = 1024                               # row tile target (review: 512 -> 1024)


def _head_slices():
    sl, off = {}, 0
    for c in TWO_LAYER:
        sl[c] = ("two", off, CATEGORIES[c]); off += CATEGORIES[c]
    off = 0
    for c in DIRECT:
        sl[c] = ("direct", off, CATEGORIES[c]); off += CATEGORIES[c]
    return sl


HEAD_SLICES = _head_slices()


def _pick_row_tile(n, target, align=8):
    """Largest tile <= target that divides n and is a multiple of `align`
    (falls back to the full extent, which is always a legal block)."""
    if n <= target:
        return n
    t = (target // align) * align
    while t >= align:
        if n % t == 0:
            return t
        t -= align
    return n


# -------------------- Pallas kernel --------------------

def _silu(x):
    # Exact sigmoid via a single tanh (one EUP push per element instead of exp +
    # reciprocal) -> big on v5e where the EUP was the binding slot; math stays f32.
    return x * (0.5 * jnp.tanh(0.5 * x) + 0.5)


def _fused_kernel(cols_ref, w_stem_ref, b_stem_ref, w_head_ref, b_head_ref,
                  w1_ref, b1_ref, w2_ref, b2_ref,
                  o_direct_ref, o_two_ref, acc_ref, *,
                  inv_hw, acc_rows, hidden):
    """Per (batch, row-tile): im2col-stem matmul -> SiLU -> N-chunked 1x1 head matmul
    + SiLU + pool into an [acc_rows, 1280] VMEM accumulator. At the last row-tile the
    pooled feature runs all 7 classifier heads and writes two lane-dense logit slabs;
    intermediate activations never touch HBM."""
    hw = pl.program_id(1)

    @pl.when(hw == 0)
    def _():
        acc_ref[...] = jnp.zeros_like(acc_ref)

    x = cols_ref[0]                                            # [t_hw, K_PAD] bf16
    stem = jnp.dot(x, w_stem_ref[...], preferred_element_type=jnp.float32)
    stem = _silu(stem + b_stem_ref[...]).astype(jnp.bfloat16)  # [t_hw, STEM_PAD]

    # TODO(synk): EfficientNetV2-M's 57 MBConv/FusedMBConv blocks are elided; the
    # 1x1 head conv consumes the (zero-padded) stem activations directly.

    # Head 1x1 conv chunked over the 1280-wide output: keeps per-tile scratch small
    # (key for v7x's 64 MiB VMEM at large row tiles) and consumes MXU results warm.
    n_chunk = FEATURE_DIM // N_CHUNK
    for c in range(n_chunk):                                   # static unrolled (5 chunks)
        sl = slice(c * N_CHUNK, (c + 1) * N_CHUNK)
        h = jnp.dot(stem, w_head_ref[:, sl], preferred_element_type=jnp.float32)
        h = _silu(h + b_head_ref[:, sl])                       # [t_hw, N_CHUNK] f32
        if acc_rows == 8:
            # 8-row-group VALU accumulation; the 8->1 sublane (XLU) reduce happens
            # once at the end instead of per tile per chunk.
            part = h.reshape(h.shape[0] // 8, 8, N_CHUNK).sum(axis=0)
        else:
            part = jnp.sum(h, axis=0, keepdims=True)
        acc_ref[:, sl] += part

    @pl.when(hw == pl.num_programs(1) - 1)
    def _():
        pooled = jnp.sum(acc_ref[...], axis=0, keepdims=True) * inv_hw   # [1, 1280] f32
        f = pooled.astype(jnp.bfloat16)
        # All 7 heads: feat @ W1 (768 hidden | 36 direct, padded to 896) ->
        # ReLU on hidden slice only -> hidden @ block-diagonal W2. Dropout = identity.
        h1 = jnp.dot(f, w1_ref[...], preferred_element_type=jnp.float32) + b1_ref[...]
        o_direct_ref[...] = h1[:, hidden:].reshape(1, 1, DIRECT_PAD)
        hr = jnp.maximum(h1[:, :hidden], 0.0).astype(jnp.bfloat16)
        logits2 = jnp.dot(hr, w2_ref[...], preferred_element_type=jnp.float32) + b2_ref[...]
        o_two_ref[...] = logits2.reshape(1, 1, OUT2_PAD)


# -------------------- parameter init (deterministic, in-script) --------------------

def _xavier_uniform(key, fan_in, fan_out):
    bound = (6.0 / (fan_in + fan_out)) ** 0.5
    return jax.random.uniform(key, (fan_in, fan_out), jnp.float32, -bound, bound)


def _pack_heads(heads):
    """Pack the 7 heads into one [1280, 896] first-layer matrix (three 256-wide
    hidden blocks + 36 direct logits, padded to 128) and one block-diagonal
    [768, 128] second-layer matrix."""
    w1 = jnp.zeros((FEATURE_DIM, N1_PAD), jnp.float32)
    b1 = jnp.zeros((N1_PAD,), jnp.float32)
    w2 = jnp.zeros((HIDDEN_TOTAL, OUT2_PAD), jnp.float32)
    b2 = jnp.zeros((OUT2_PAD,), jnp.float32)
    hoff = ooff = 0
    for cat in TWO_LAYER:
        n = CATEGORIES[cat]
        w1 = w1.at[:, hoff:hoff + HIDDEN_PER].set(heads[cat]["w1"])
        b1 = b1.at[hoff:hoff + HIDDEN_PER].set(heads[cat]["b1"])
        w2 = w2.at[hoff:hoff + HIDDEN_PER, ooff:ooff + n].set(heads[cat]["w2"])
        b2 = b2.at[ooff:ooff + n].set(heads[cat]["b2"])
        hoff += HIDDEN_PER
        ooff += n
    doff = 0
    for cat in DIRECT:
        n = CATEGORIES[cat]
        w1 = w1.at[:, HIDDEN_TOTAL + doff:HIDDEN_TOTAL + doff + n].set(heads[cat]["w1"])
        b1 = b1.at[HIDDEN_TOTAL + doff:HIDDEN_TOTAL + doff + n].set(heads[cat]["b1"])
        doff += n
    return {
        "w1": w1.astype(jnp.bfloat16), "b1": b1.reshape(1, N1_PAD),
        "w2": w2.astype(jnp.bfloat16), "b2": b2.reshape(1, OUT2_PAD),
    }


def init_params(key):
    keys = jax.random.split(key, 16)
    ki = iter(keys)
    bn_scale = 1.0 / (1.0 + BN_EPS) ** 0.5  # identity-init BatchNorm folded, eval mode
    # TODO(synk): with real pretrained weights the BN fold must use running mean/var
    # and affine params; here BN is identity-initialized.

    # stem conv [Cout=24, Cin=3, 3, 3] -> im2col layout [27, 24], zero-padded to [32, 128]
    w_stem = jax.random.normal(next(ki), (STEM_OUT, 3, 3, 3), jnp.float32) * 0.1
    w_stem = jnp.transpose(w_stem, (2, 3, 1, 0)).reshape(27, STEM_OUT) * bn_scale
    stem_w = jnp.zeros((K_PAD, STEM_PAD), jnp.float32).at[:27, :STEM_OUT].set(w_stem)
    stem_b = jnp.zeros((1, STEM_PAD), jnp.float32)

    # head 1x1 conv -> 1280, zero-padded rows [24 -> 128]
    w_head = jax.random.normal(next(ki), (STEM_OUT, FEATURE_DIM), jnp.float32) * 0.05 * bn_scale
    headconv_w = jnp.zeros((STEM_PAD, FEATURE_DIM), jnp.float32).at[:STEM_OUT, :].set(w_head)
    headconv_b = jnp.zeros((1, FEATURE_DIM), jnp.float32)

    # classifier heads: xavier_uniform weights, zero bias (matches _initialize_heads)
    heads = {}
    for cat, n_cls in CATEGORIES.items():
        if cat in TWO_LAYER:
            heads[cat] = {
                "w1": _xavier_uniform(next(ki), FEATURE_DIM, HIDDEN_PER),
                "b1": jnp.zeros((HIDDEN_PER,), jnp.float32),
                "w2": _xavier_uniform(next(ki), HIDDEN_PER, n_cls),
                "b2": jnp.zeros((n_cls,), jnp.float32),
            }
        else:
            heads[cat] = {
                "w1": _xavier_uniform(next(ki), FEATURE_DIM, n_cls),
                "b1": jnp.zeros((n_cls,), jnp.float32),
            }

    return {
        "stem_w": stem_w.astype(jnp.bfloat16),
        "stem_b": stem_b,
        "headconv_w": headconv_w.astype(jnp.bfloat16),
        "headconv_b": headconv_b,
        "heads_packed": _pack_heads(heads),
    }


# -------------------- forward pass --------------------

def forward(params, x_nchw):
    B, C, H, W = x_nchw.shape
    assert C == 3, "module contract is [B, 3, H, W]"
    # NCHW -> NHWC, cast to bf16 BEFORE pad/patch/concat (no f32 HBM pass).
    x = jnp.transpose(x_nchw, (0, 2, 3, 1)).astype(jnp.bfloat16)
    Ho, Wo = H // 2, W // 2
    HW = Ho * Wo

    # im2col for the 3x3 / stride-2 / pad-1 stem conv; the K pad (27 -> 32) is folded
    # into the concat instead of a separate jnp.pad pass.
    xp = jnp.pad(x, ((0, 0), (1, 1), (1, 1), (0, 0)))
    patches = [xp[:, dy:dy + H:2, dx:dx + W:2, :] for dy in range(3) for dx in range(3)]
    patches.append(jnp.zeros((B, Ho, Wo, K_PAD - 9 * C), jnp.bfloat16))
    cols = jnp.concatenate(patches, axis=-1).reshape(B, HW, K_PAD)

    t_hw = _pick_row_tile(HW, ROW_TILE_TARGET)
    n_hw = HW // t_hw
    acc_rows = 8 if t_hw % 8 == 0 else 1
    grid = (B, n_hw)                                 # batch parallel, row-tile reduction
    # TODO(synk): on v7x (2 TCs) with very small B, splitting the HW reduction across
    # cores (grid (B, 2, n_hw//2) + wrapper partial-sum reduce) would improve balance,
    # but it conflicts with the fused heads (which need the full pooled feature).

    hp = params["heads_packed"]

    flops = (2 * B * HW * (K_PAD * STEM_PAD + STEM_PAD * FEATURE_DIM)
             + 2 * B * (FEATURE_DIM * N1_PAD + HIDDEN_TOTAL * OUT2_PAD))
    transcendentals = B * HW * (STEM_PAD + FEATURE_DIM)   # one tanh per SiLU element
    bytes_accessed = (cols.size * 2
                      + (K_PAD * STEM_PAD + STEM_PAD * FEATURE_DIM
                         + FEATURE_DIM * N1_PAD + HIDDEN_TOTAL * OUT2_PAD) * 2
                      + (STEM_PAD + FEATURE_DIM + N1_PAD + OUT2_PAD) * 4
                      + B * (DIRECT_PAD + OUT2_PAD) * 4)

    o_direct, o_two = pl.pallas_call(
        functools.partial(_fused_kernel, inv_hw=1.0 / HW,
                          acc_rows=acc_rows, hidden=HIDDEN_TOTAL),
        out_shape=(jax.ShapeDtypeStruct((B, 1, DIRECT_PAD), jnp.float32),
                   jax.ShapeDtypeStruct((B, 1, OUT2_PAD), jnp.float32)),
        grid=grid,
        in_specs=[
            pl.BlockSpec((1, t_hw, K_PAD), lambda b, h: (b, h, 0)),
            pl.BlockSpec((K_PAD, STEM_PAD), lambda b, h: (0, 0)),
            pl.BlockSpec((1, STEM_PAD), lambda b, h: (0, 0)),
            pl.BlockSpec((STEM_PAD, FEATURE_DIM), lambda b, h: (0, 0)),
            pl.BlockSpec((1, FEATURE_DIM), lambda b, h: (0, 0)),
            pl.BlockSpec((FEATURE_DIM, N1_PAD), lambda b, h: (0, 0)),
            pl.BlockSpec((1, N1_PAD), lambda b, h: (0, 0)),
            pl.BlockSpec((HIDDEN_TOTAL, OUT2_PAD), lambda b, h: (0, 0)),
            pl.BlockSpec((1, OUT2_PAD), lambda b, h: (0, 0)),
        ],
        out_specs=(pl.BlockSpec((1, 1, DIRECT_PAD), lambda b, h: (b, 0, 0)),
                   pl.BlockSpec((1, 1, OUT2_PAD), lambda b, h: (b, 0, 0))),
        scratch_shapes=[pltpu.VMEM((acc_rows, FEATURE_DIM), jnp.float32)],
        compiler_params=pltpu.CompilerParams(
            dimension_semantics=("parallel", "arbitrary"),
            vmem_limit_bytes=32 * 1024 * 1024,       # safe headroom on v7x's 64 MiB VMEM
        ),
        cost_estimate=pl.CostEstimate(
            flops=flops,
            transcendentals=transcendentals,
            bytes_accessed=bytes_accessed,
        ),
    )(cols, params["stem_w"], params["stem_b"],
      params["headconv_w"], params["headconv_b"],
      hp["w1"], hp["b1"], hp["w2"], hp["b2"])

    o_direct = o_direct.reshape(B, DIRECT_PAD)
    o_two = o_two.reshape(B, OUT2_PAD)

    out = {}
    for cat, (kind, off, n) in HEAD_SLICES.items():
        src = o_direct if kind == "direct" else o_two
        out[cat] = src[:, off:off + n]
    return out


if __name__ == "__main__":
    key = jax.random.PRNGKey(0)
    pkey, xkey = jax.random.split(key)
    params = init_params(pkey)

    # small input consistent with the module's [B, 3, H, W] contract
    x = jax.random.normal(xkey, (2, 3, 16, 16), dtype=jnp.float32)

    logits = forward(params, x)
    jax.block_until_ready(logits)

    for cat, n_cls in CATEGORIES.items():
        assert logits[cat].shape == (2, n_cls), (cat, logits[cat].shape)
    print("KERNEL_OK")
</pallas_src>

<mosaic_0001>
module attributes {stable_mosaic.version = 11 : i64} {
  func.func @_fused_kernel(%arg0: i32, %arg1: i32, %arg2: memref<1x64x32xbf16, #tpu.memory_space<vmem>>, %arg3: memref<32x128xbf16, #tpu.memory_space<vmem>>, %arg4: memref<1x128xf32, #tpu.memory_space<vmem>>, %arg5: memref<128x1280xbf16, #tpu.memory_space<vmem>>, %arg6: memref<1x1280xf32, #tpu.memory_space<vmem>>, %arg7: memref<1280x896xbf16, #tpu.memory_space<vmem>>, %arg8: memref<1x896xf32, #tpu.memory_space<vmem>>, %arg9: memref<768x128xbf16, #tpu.memory_space<vmem>>, %arg10: memref<1x128xf32, #tpu.memory_space<vmem>>, %arg11: memref<1x1x128xf32, #tpu.memory_space<vmem>>, %arg12: memref<1x1x128xf32, #tpu.memory_space<vmem>>, %arg13: memref<8x1280xf32, #tpu.memory_space<vmem>>) attributes {dimension_semantics = [#tpu.dimension_semantics<parallel>, #tpu.dimension_semantics<arbitrary>], iteration_bounds = array<i64: 2, 1>, scalar_prefetch = 0 : i64, scratch_operands = 1 : i64, tpu.core_type = #tpu.core_type<tc>, window_params = [{transform_indices = @transform_0, window_bounds = array<i64: 1, 64, 32>}, {pipeline_mode = #tpu.pipeline_mode<synchronous>, transform_indices = @transform_1, window_bounds = array<i64: 32, 128>}, {pipeline_mode = #tpu.pipeline_mode<synchronous>, transform_indices = @transform_2, window_bounds = array<i64: 1, 128>}, {pipeline_mode = #tpu.pipeline_mode<synchronous>, transform_indices = @transform_3, window_bounds = array<i64: 128, 1280>}, {pipeline_mode = #tpu.pipeline_mode<synchronous>, transform_indices = @transform_4, window_bounds = array<i64: 1, 1280>}, {pipeline_mode = #tpu.pipeline_mode<synchronous>, transform_indices = @transform_5, window_bounds = array<i64: 1280, 896>}, {pipeline_mode = #tpu.pipeline_mode<synchronous>, transform_indices = @transform_6, window_bounds = array<i64: 1, 896>}, {pipeline_mode = #tpu.pipeline_mode<synchronous>, transform_indices = @transform_7, window_bounds = array<i64: 768, 128>}, {pipeline_mode = #tpu.pipeline_mode<synchronous>, transform_indices = @transform_8, window_bounds = array<i64: 1, 128>}, {transform_indices = @transform_9, window_bounds = array<i64: 1, 1, 128>}, {transform_indices = @transform_10, window_bounds = array<i64: 1, 1, 128>}]} {
    %c0_i32 = arith.constant 0 : i32
    %0 = arith.cmpi eq, %arg1, %c0_i32 : i32
    %1 = arith.extui %0 : i1 to i32
    %c0_i32_0 = arith.constant 0 : i32
    %2 = arith.cmpi ne, %1, %c0_i32_0 : i32
    scf.if %2 {
      %cst_73 = arith.constant 0.000000e+00 : f32
      %112 = vector.broadcast %cst_73 : f32 to vector<8x1280xf32>
      %c0_74 = arith.constant 0 : index
      %c0_75 = arith.constant 0 : index
      %113 = vector.load %arg13[%c0_74, %c0_75] : memref<8x1280xf32, #tpu.memory_space<vmem>>, vector<8x1280xf32>
      tpu.vector_store %arg13[%c0_74, %c0_75], %112 {strides = array<i32>} : memref<8x1280xf32, #tpu.memory_space<vmem>>, vector<8x1280xf32>,
    } else {
    }
    %c0 = arith.constant 0 : index
    %c0_1 = arith.constant 0 : index
    %c0_2 = arith.constant 0 : index
    %3 = vector.load %arg2[%c0, %c0_1, %c0_2] : memref<1x64x32xbf16, #tpu.memory_space<vmem>>, vector<1x64x32xbf16>
    %4 = vector.shape_cast %3 : vector<1x64x32xbf16> to vector<64x32xbf16>
    %c0_3 = arith.constant 0 : index
    %c0_4 = arith.constant 0 : index
    %5 = vector.load %arg3[%c0_3, %c0_4] : memref<32x128xbf16, #tpu.memory_space<vmem>>, vector<32x128xbf16>
    %cst = arith.constant dense<0.000000e+00> : vector<64x128xf32>
    %6 = tpu.matmul %4, %5, %cst {dimension_numbers = #tpu.dot_dimension_numbers<[1], [0], [0], [1], [0, 0, 1, 1], [], []>} : vector<64x32xbf16>, vector<32x128xbf16>, vector<64x128xf32> -> vector<64x128xf32>
    %c0_5 = arith.constant 0 : index
    %c0_6 = arith.constant 0 : index
    %7 = vector.load %arg4[%c0_5, %c0_6] : memref<1x128xf32, #tpu.memory_space<vmem>>, vector<1x128xf32>
    %8 = vector.broadcast %7 : vector<1x128xf32> to vector<64x128xf32>
    %9 = arith.addf %6, %8 : vector<64x128xf32>
    %cst_7 = arith.constant 5.000000e-01 : f32
    %10 = vector.broadcast %cst_7 : f32 to vector<64x128xf32>
    %11 = arith.mulf %10, %9 : vector<64x128xf32>
    %12 = math.tanh %11 : vector<64x128xf32>
    %cst_8 = arith.constant 5.000000e-01 : f32
    %13 = vector.broadcast %cst_8 : f32 to vector<64x128xf32>
    %14 = arith.mulf %13, %12 : vector<64x128xf32>
    %cst_9 = arith.constant 5.000000e-01 : f32
    %15 = vector.broadcast %cst_9 : f32 to vector<64x128xf32>
    %16 = arith.addf %14, %15 : vector<64x128xf32>
    %17 = arith.mulf %9, %16 : vector<64x128xf32>
    %18 = arith.truncf %17 : vector<64x128xf32> to vector<64x128xbf16>
    %c0_10 = arith.constant 0 : index
    %c0_11 = arith.constant 0 : index
    %19 = vector.load %arg5[%c0_10, %c0_11] : memref<128x1280xbf16, #tpu.memory_space<vmem>>, vector<128x256xbf16>
    %cst_12 = arith.constant dense<0.000000e+00> : vector<64x256xf32>
    %20 = tpu.matmul %18, %19, %cst_12 {dimension_numbers = #tpu.dot_dimension_numbers<[1], [0], [0], [1], [0, 0, 1, 1], [], []>} : vector<64x128xbf16>, vector<128x256xbf16>, vector<64x256xf32> -> vector<64x256xf32>
    %c0_13 = arith.constant 0 : index
    %c0_14 = arith.constant 0 : index
    %21 = vector.load %arg6[%c0_13, %c0_14] : memref<1x1280xf32, #tpu.memory_space<vmem>>, vector<1x256xf32>
    %22 = vector.broadcast %21 : vector<1x256xf32> to vector<64x256xf32>
    %23 = arith.addf %20, %22 : vector<64x256xf32>
    %cst_15 = arith.constant 5.000000e-01 : f32
    %24 = vector.broadcast %cst_15 : f32 to vector<64x256xf32>
    %25 = arith.mulf %24, %23 : vector<64x256xf32>
    %26 = math.tanh %25 : vector<64x256xf32>
    %cst_16 = arith.constant 5.000000e-01 : f32
    %27 = vector.broadcast %cst_16 : f32 to vector<64x256xf32>
    %28 = arith.mulf %27, %26 : vector<64x256xf32>
    %cst_17 = arith.constant 5.000000e-01 : f32
    %29 = vector.broadcast %cst_17 : f32 to vector<64x256xf32>
    %30 = arith.addf %28, %29 : vector<64x256xf32>
    %31 = arith.mulf %23, %30 : vector<64x256xf32>
    %32 = vector.shape_cast %31 : vector<64x256xf32> to vector<8x8x256xf32>
    %cst_18 = arith.constant dense<0.000000e+00> : vector<8x256xf32>
    %33 = vector.multi_reduction <add>, %32, %cst_18 [0] : vector<8x8x256xf32> to vector<8x256xf32>
    %c0_19 = arith.constant 0 : index
    %c0_20 = arith.constant 0 : index
    %34 = vector.load %arg13[%c0_19, %c0_20] : memref<8x1280xf32, #tpu.memory_space<vmem>>, vector<8x256xf32>
    %35 = arith.addf %34, %33 : vector<8x256xf32>
    %c0_21 = arith.constant 0 : index
    %c0_22 = arith.constant 0 : index
    %36 = vector.load %arg13[%c0_21, %c0_22] : memref<8x1280xf32, #tpu.memory_space<vmem>>, vector<8x256xf32>
    tpu.vector_store %arg13[%c0_21, %c0_22], %35 {strides = array<i32>} : memref<8x1280xf32, #tpu.memory_space<vmem>>, vector<8x256xf32>,
    %c0_23 = arith.constant 0 : index
    %c256 = arith.constant 256 : index
    %37 = vector.load %arg5[%c0_23, %c256] : memref<128x1280xbf16, #tpu.memory_space<vmem>>, vector<128x256xbf16>
    %cst_24 = arith.constant dense<0.000000e+00> : vector<64x256xf32>
    %38 = tpu.matmul %18, %37, %cst_24 {dimension_numbers = #tpu.dot_dimension_numbers<[1], [0], [0], [1], [0, 0, 1, 1], [], []>} : vector<64x128xbf16>, vector<128x256xbf16>, vector<64x256xf32> -> vector<64x256xf32>
    %c0_25 = arith.constant 0 : index
    %c256_26 = arith.constant 256 : index
    %39 = vector.load %arg6[%c0_25, %c256_26] : memref<1x1280xf32, #tpu.memory_space<vmem>>, vector<1x256xf32>
    %40 = vector.broadcast %39 : vector<1x256xf32> to vector<64x256xf32>
    %41 = arith.addf %38, %40 : vector<64x256xf32>
    %cst_27 = arith.constant 5.000000e-01 : f32
    %42 = vector.broadcast %cst_27 : f32 to vector<64x256xf32>
    %43 = arith.mulf %42, %41 : vector<64x256xf32>
    %44 = math.tanh %43 : vector<64x256xf32>
    %cst_28 = arith.constant 5.000000e-01 : f32
    %45 = vector.broadcast %cst_28 : f32 to vector<64x256xf32>
    %46 = arith.mulf %45, %44 : vector<64x256xf32>
    %cst_29 = arith.constant 5.000000e-01 : f32
    %47 = vector.broadcast %cst_29 : f32 to vector<64x256xf32>
    %48 = arith.addf %46, %47 : vector<64x256xf32>
    %49 = arith.mulf %41, %48 : vector<64x256xf32>
    %50 = vector.shape_cast %49 : vector<64x256xf32> to vector<8x8x256xf32>
    %cst_30 = arith.constant dense<0.000000e+00> : vector<8x256xf32>
    %51 = vector.multi_reduction <add>, %50, %cst_30 [0] : vector<8x8x256xf32> to vector<8x256xf32>
    %c0_31 = arith.constant 0 : index
    %c256_32 = arith.constant 256 : index
    %52 = vector.load %arg13[%c0_31, %c256_32] : memref<8x1280xf32, #tpu.memory_space<vmem>>, vector<8x256xf32>
    %53 = arith.addf %52, %51 : vector<8x256xf32>
    %c0_33 = arith.constant 0 : index
    %c256_34 = arith.constant 256 : index
    %54 = vector.load %arg13[%c0_33, %c256_34] : memref<8x1280xf32, #tpu.memory_space<vmem>>, vector<8x256xf32>
    tpu.vector_store %arg13[%c0_33, %c256_34], %53 {strides = array<i32>} : memref<8x1280xf32, #tpu.memory_space<vmem>>, vector<8x256xf32>,
    %c0_35 = arith.constant 0 : index
    %c512 = arith.constant 512 : index
    %55 = vector.load %arg5[%c0_35, %c512] : memref<128x1280xbf16, #tpu.memory_space<vmem>>, vector<128x256xbf16>
    %cst_36 = arith.constant dense<0.000000e+00> : vector<64x256xf32>
    %56 = tpu.matmul %18, %55, %cst_36 {dimension_numbers = #tpu.dot_dimension_numbers<[1], [0], [0], [1], [0, 0, 1, 1], [], []>} : vector<64x128xbf16>, vector<128x256xbf16>, vector<64x256xf32> -> vector<64x256xf32>
    %c0_37 = arith.constant 0 : index
    %c512_38 = arith.constant 512 : index
    %57 = vector.load %arg6[%c0_37, %c512_38] : memref<1x1280xf32, #tpu.memory_space<vmem>>, vector<1x256xf32>
    %58 = vector.broadcast %57 : vector<1x256xf32> to vector<64x256xf32>
    %59 = arith.addf %56, %58 : vector<64x256xf32>
    %cst_39 = arith.constant 5.000000e-01 : f32
    %60 = vector.broadcast %cst_39 : f32 to vector<64x256xf32>
    %61 = arith.mulf %60, %59 : vector<64x256xf32>
    %62 = math.tanh %61 : vector<64x256xf32>
    %cst_40 = arith.constant 5.000000e-01 : f32
    %63 = vector.broadcast %cst_40 : f32 to vector<64x256xf32>
    %64 = arith.mulf %63, %62 : vector<64x256xf32>
    %cst_41 = arith.constant 5.000000e-01 : f32
    %65 = vector.broadcast %cst_41 : f32 to vector<64x256xf32>
    %66 = arith.addf %64, %65 : vector<64x256xf32>
    %67 = arith.mulf %59, %66 : vector<64x256xf32>
    %68 = vector.shape_cast %67 : vector<64x256xf32> to vector<8x8x256xf32>
    %cst_42 = arith.constant dense<0.000000e+00> : vector<8x256xf32>
    %69 = vector.multi_reduction <add>, %68, %cst_42 [0] : vector<8x8x256xf32> to vector<8x256xf32>
    %c0_43 = arith.constant 0 : index
    %c512_44 = arith.constant 512 : index
    %70 = vector.load %arg13[%c0_43, %c512_44] : memref<8x1280xf32, #tpu.memory_space<vmem>>, vector<8x256xf32>
    %71 = arith.addf %70, %69 : vector<8x256xf32>
    %c0_45 = arith.constant 0 : index
    %c512_46 = arith.constant 512 : index
    %72 = vector.load %arg13[%c0_45, %c512_46] : memref<8x1280xf32, #tpu.memory_space<vmem>>, vector<8x256xf32>
    tpu.vector_store %arg13[%c0_45, %c512_46], %71 {strides = array<i32>} : memref<8x1280xf32, #tpu.memory_space<vmem>>, vector<8x256xf32>,
    %c0_47 = arith.constant 0 : index
    %c768 = arith.constant 768 : index
    %73 = vector.load %arg5[%c0_47, %c768] : memref<128x1280xbf16, #tpu.memory_space<vmem>>, vector<128x256xbf16>
    %cst_48 = arith.constant dense<0.000000e+00> : vector<64x256xf32>
    %74 = tpu.matmul %18, %73, %cst_48 {dimension_numbers = #tpu.dot_dimension_numbers<[1], [0], [0], [1], [0, 0, 1, 1], [], []>} : vector<64x128xbf16>, vector<128x256xbf16>, vector<64x256xf32> -> vector<64x256xf32>
    %c0_49 = arith.constant 0 : index
    %c768_50 = arith.constant 768 : index
    %75 = vector.load %arg6[%c0_49, %c768_50] : memref<1x1280xf32, #tpu.memory_space<vmem>>, vector<1x256xf32>
    %76 = vector.broadcast %75 : vector<1x256xf32> to vector<64x256xf32>
    %77 = arith.addf %74, %76 : vector<64x256xf32>
    %cst_51 = arith.constant 5.000000e-01 : f32
    %78 = vector.broadcast %cst_51 : f32 to vector<64x256xf32>
    %79 = arith.mulf %78, %77 : vector<64x256xf32>
    %80 = math.tanh %79 : vector<64x256xf32>
    %cst_52 = arith.constant 5.000000e-01 : f32
    %81 = vector.broadcast %cst_52 : f32 to vector<64x256xf32>
    %82 = arith.mulf %81, %80 : vector<64x256xf32>
    %cst_53 = arith.constant 5.000000e-01 : f32
    %83 = vector.broadcast %cst_53 : f32 to vector<64x256xf32>
    %84 = arith.addf %82, %83 : vector<64x256xf32>
    %85 = arith.mulf %77, %84 : vector<64x256xf32>
    %86 = vector.shape_cast %85 : vector<64x256xf32> to vector<8x8x256xf32>
    %cst_54 = arith.constant dense<0.000000e+00> : vector<8x256xf32>
    %87 = vector.multi_reduction <add>, %86, %cst_54 [0] : vector<8x8x256xf32> to vector<8x256xf32>
    %c0_55 = arith.constant 0 : index
    %c768_56 = arith.constant 768 : index
    %88 = vector.load %arg13[%c0_55, %c768_56] : memref<8x1280xf32, #tpu.memory_space<vmem>>, vector<8x256xf32>
    %89 = arith.addf %88, %87 : vector<8x256xf32>
    %c0_57 = arith.constant 0 : index
    %c768_58 = arith.constant 768 : index
    %90 = vector.load %arg13[%c0_57, %c768_58] : memref<8x1280xf32, #tpu.memory_space<vmem>>, vector<8x256xf32>
    tpu.vector_store %arg13[%c0_57, %c768_58], %89 {strides = array<i32>} : memref<8x1280xf32, #tpu.memory_space<vmem>>, vector<8x256xf32>,
    %c0_59 = arith.constant 0 : index
    %c1024 = arith.constant 1024 : index
    %91 = vector.load %arg5[%c0_59, %c1024] : memref<128x1280xbf16, #tpu.memory_space<vmem>>, vector<128x256xbf16>
    %cst_60 = arith.constant dense<0.000000e+00> : vector<64x256xf32>
    %92 = tpu.matmul %18, %91, %cst_60 {dimension_numbers = #tpu.dot_dimension_numbers<[1], [0], [0], [1], [0, 0, 1, 1], [], []>} : vector<64x128xbf16>, vector<128x256xbf16>, vector<64x256xf32> -> vector<64x256xf32>
    %c0_61 = arith.constant 0 : index
    %c1024_62 = arith.constant 1024 : index
    %93 = vector.load %arg6[%c0_61, %c1024_62] : memref<1x1280xf32, #tpu.memory_space<vmem>>, vector<1x256xf32>
    %94 = vector.broadcast %93 : vector<1x256xf32> to vector<64x256xf32>
    %95 = arith.addf %92, %94 : vector<64x256xf32>
    %cst_63 = arith.constant 5.000000e-01 : f32
    %96 = vector.broadcast %cst_63 : f32 to vector<64x256xf32>
    %97 = arith.mulf %96, %95 : vector<64x256xf32>
    %98 = math.tanh %97 : vector<64x256xf32>
    %cst_64 = arith.constant 5.000000e-01 : f32
    %99 = vector.broadcast %cst_64 : f32 to vector<64x256xf32>
    %100 = arith.mulf %99, %98 : vector<64x256xf32>
    %cst_65 = arith.constant 5.000000e-01 : f32
    %101 = vector.broadcast %cst_65 : f32 to vector<64x256xf32>
    %102 = arith.addf %100, %101 : vector<64x256xf32>
    %103 = arith.mulf %95, %102 : vector<64x256xf32>
    %104 = vector.shape_cast %103 : vector<64x256xf32> to vector<8x8x256xf32>
    %cst_66 = arith.constant dense<0.000000e+00> : vector<8x256xf32>
    %105 = vector.multi_reduction <add>, %104, %cst_66 [0] : vector<8x8x256xf32> to vector<8x256xf32>
    %c0_67 = arith.constant 0 : index
    %c1024_68 = arith.constant 1024 : index
    %106 = vector.load %arg13[%c0_67, %c1024_68] : memref<8x1280xf32, #tpu.memory_space<vmem>>, vector<8x256xf32>
    %107 = arith.addf %106, %105 : vector<8x256xf32>
    %c0_69 = arith.constant 0 : index
    %c1024_70 = arith.constant 1024 : index
    %108 = vector.load %arg13[%c0_69, %c1024_70] : memref<8x1280xf32, #tpu.memory_space<vmem>>, vector<8x256xf32>
    tpu.vector_store %arg13[%c0_69, %c1024_70], %107 {strides = array<i32>} : memref<8x1280xf32, #tpu.memory_space<vmem>>, vector<8x256xf32>,
    %c0_i32_71 = arith.constant 0 : i32
    %109 = arith.cmpi eq, %arg1, %c0_i32_71 : i32
    %110 = arith.extui %109 : i1 to i32
    %c0_i32_72 = arith.constant 0 : i32
    %111 = arith.cmpi ne, %110, %c0_i32_72 : i32
    scf.if %111 {
      %c0_73 = arith.constant 0 : index
      %c0_74 = arith.constant 0 : index
      %112 = vector.load %arg13[%c0_73, %c0_74] : memref<8x1280xf32, #tpu.memory_space<vmem>>, vector<8x1280xf32>
      %cst_75 = arith.constant dense<0.000000e+00> : vector<1280xf32>
      %113 = vector.multi_reduction <add>, %112, %cst_75 [0] : vector<8x1280xf32> to vector<1280xf32>
      %114 = vector.shape_cast %113 : vector<1280xf32> to vector<1x1280xf32>
      %cst_76 = arith.constant 1.562500e-02 : f32
      %115 = vector.broadcast %cst_76 : f32 to vector<1x1280xf32>
      %116 = arith.mulf %114, %115 : vector<1x1280xf32>
      %117 = arith.truncf %116 : vector<1x1280xf32> to vector<1x1280xbf16>
      %c0_77 = arith.constant 0 : index
      %c0_78 = arith.constant 0 : index
      %118 = vector.load %arg7[%c0_77, %c0_78] : memref<1280x896xbf16, #tpu.memory_space<vmem>>, vector<1280x896xbf16>
      %cst_79 = arith.constant dense<0.000000e+00> : vector<1x896xf32>
      %119 = tpu.matmul %117, %118, %cst_79 {dimension_numbers = #tpu.dot_dimension_numbers<[1], [0], [0], [1], [0, 0, 1, 1], [], []>} : vector<1x1280xbf16>, vector<1280x896xbf16>, vector<1x896xf32> -> vector<1x896xf32>
      %c0_80 = arith.constant 0 : index
      %c0_81 = arith.constant 0 : index
      %120 = vector.load %arg8[%c0_80, %c0_81] : memref<1x896xf32, #tpu.memory_space<vmem>>, vector<1x896xf32>
      %121 = arith.addf %119, %120 : vector<1x896xf32>
      %122 = vector.extract_strided_slice %121 {offsets = [0, 768], sizes = [1, 128], strides = [1, 1]} : vector<1x896xf32> to vector<1x128xf32>
      %123 = vector.shape_cast %122 : vector<1x128xf32> to vector<1x1x128xf32>
      %c0_82 = arith.constant 0 : index
      %c0_83 = arith.constant 0 : index
      %c0_84 = arith.constant 0 : index
      %124 = vector.load %arg11[%c0_82, %c0_83, %c0_84] : memref<1x1x128xf32, #tpu.memory_space<vmem>>, vector<1x1x128xf32>
      tpu.vector_store %arg11[%c0_82, %c0_83, %c0_84], %123 {strides = array<i32>} : memref<1x1x128xf32, #tpu.memory_space<vmem>>, vector<1x1x128xf32>,
      %125 = vector.extract_strided_slice %121 {offsets = [0, 0], sizes = [1, 768], strides = [1, 1]} : vector<1x896xf32> to vector<1x768xf32>
      %cst_85 = arith.constant 0.000000e+00 : f32
      %126 = vector.broadcast %cst_85 : f32 to vector<1x768xf32>
      %127 = arith.maximumf %125, %126 : vector<1x768xf32>
      %128 = arith.truncf %127 : vector<1x768xf32> to vector<1x768xbf16>
      %c0_86 = arith.constant 0 : index
      %c0_87 = arith.constant 0 : index
      %129 = vector.load %arg9[%c0_86, %c0_87] : memref<768x128xbf16, #tpu.memory_space<vmem>>, vector<768x128xbf16>
      %cst_88 = arith.constant dense<0.000000e+00> : vector<1x128xf32>
      %130 = tpu.matmul %128, %129, %cst_88 {dimension_numbers = #tpu.dot_dimension_numbers<[1], [0], [0], [1], [0, 0, 1, 1], [], []>} : vector<1x768xbf16>, vector<768x128xbf16>, vector<1x128xf32> -> vector<1x128xf32>
      %c0_89 = arith.constant 0 : index
      %c0_90 = arith.constant 0 : index
      %131 = vector.load %arg10[%c0_89, %c0_90] : memref<1x128xf32, #tpu.memory_space<vmem>>, vector<1x128xf32>
      %132 = arith.addf %130, %131 : vector<1x128xf32>
      %133 = vector.shape_cast %132 : vector<1x128xf32> to vector<1x1x128xf32>
      %c0_91 = arith.constant 0 : index
      %c0_92 = arith.constant 0 : index
      %c0_93 = arith.constant 0 : index
      %134 = vector.load %arg12[%c0_91, %c0_92, %c0_93] : memref<1x1x128xf32, #tpu.memory_space<vmem>>, vector<1x1x128xf32>
      tpu.vector_store %arg12[%c0_91, %c0_92, %c0_93], %133 {strides = array<i32>} : memref<1x1x128xf32, #tpu.memory_space<vmem>>, vector<1x1x128xf32>,
    } else {
    }
    return
  }
  func.func @transform_0(%arg0: i32, %arg1: i32) -> (i32, i32, i32) {
    %c0_i32 = arith.constant 0 : i32
    %c0_i32_0 = arith.constant 0 : i32
    return %arg0, %arg1, %c0_i32 : i32, i32, i32
  }
  func.func @transform_1(%arg0: i32, %arg1: i32) -> (i32, i32) {
    %c0_i32 = arith.constant 0 : i32
    %c0_i32_0 = arith.constant 0 : i32
    %c0_i32_1 = arith.constant 0 : i32
    return %c0_i32, %c0_i32_0 : i32, i32
  }
  func.func @transform_2(%arg0: i32, %arg1: i32) -> (i32, i32) {
    %c0_i32 = arith.constant 0 : i32
    %c0_i32_0 = arith.constant 0 : i32
    %c0_i32_1 = arith.constant 0 : i32
    return %c0_i32, %c0_i32_0 : i32, i32
  }
  func.func @transform_3(%arg0: i32, %arg1: i32) -> (i32, i32) {
    %c0_i32 = arith.constant 0 : i32
    %c0_i32_0 = arith.constant 0 : i32
    %c0_i32_1 = arith.constant 0 : i32
    return %c0_i32, %c0_i32_0 : i32, i32
  }
  func.func @transform_4(%arg0: i32, %arg1: i32) -> (i32, i32) {
    %c0_i32 = arith.constant 0 : i32
    %c0_i32_0 = arith.constant 0 : i32
    %c0_i32_1 = arith.constant 0 : i32
    return %c0_i32, %c0_i32_0 : i32, i32
  }
  func.func @transform_5(%arg0: i32, %arg1: i32) -> (i32, i32) {
    %c0_i32 = arith.constant 0 : i32
    %c0_i32_0 = arith.constant 0 : i32
    %c0_i32_1 = arith.constant 0 : i32
    return %c0_i32, %c0_i32_0 : i32, i32
  }
  func.func @transform_6(%arg0: i32, %arg1: i32) -> (i32, i32) {
    %c0_i32 = arith.constant 0 : i32
    %c0_i32_0 = arith.constant 0 : i32
    %c0_i32_1 = arith.constant 0 : i32
    return %c0_i32, %c0_i32_0 : i32, i32
  }
  func.func @transform_7(%arg0: i32, %arg1: i32) -> (i32, i32) {
    %c0_i32 = arith.constant 0 : i32
    %c0_i32_0 = arith.constant 0 : i32
    %c0_i32_1 = arith.constant 0 : i32
    return %c0_i32, %c0_i32_0 : i32, i32
  }
  func.func @transform_8(%arg0: i32, %arg1: i32) -> (i32, i32) {
    %c0_i32 = arith.constant 0 : i32
    %c0_i32_0 = arith.constant 0 : i32
    %c0_i32_1 = arith.constant 0 : i32
    return %c0_i32, %c0_i32_0 : i32, i32
  }
  func.func @transform_9(%arg0: i32, %arg1: i32) -> (i32, i32, i32) {
    %c0_i32 = arith.constant 0 : i32
    %c0_i32_0 = arith.constant 0 : i32
    %c0_i32_1 = arith.constant 0 : i32
    return %arg0, %c0_i32, %c0_i32_0 : i32, i32, i32
  }
  func.func @transform_10(%arg0: i32, %arg1: i32) -> (i32, i32, i32) {
    %c0_i32 = arith.constant 0 : i32
    %c0_i32_0 = arith.constant 0 : i32
    %c0_i32_1 = arith.constant 0 : i32
    return %arg0, %c0_i32, %c0_i32_0 : i32, i32, i32
  }
}

</mosaic_0001>

<bundles_post_ra>
// kernel: tpu_custom_call.1
= control target key start
LH: loop header
LB: loop body
LE: loop exit
PB: predicated region body
PF: predicated region fallthrough
CT: control target
= control target key end

     0   :  { %s11175_s0 = inlined_call_operand.vmem [shape: bf16[2,64,32], index: 0, kind: input, shape index: {}]   ;;  %s11176_s1 = inlined_call_operand.hbm [shape: bf16[32,128], index: 1, kind: input, shape index: {}]   ;;  %s11177_s2 = inlined_call_operand.hbm [shape: f32[1,128], index: 2, kind: input, shape index: {}]   ;;  %s11178_s3 = inlined_call_operand.hbm [shape: bf16[128,1280], index: 3, kind: input, shape index: {}]   ;;  %s11179_s4 = inlined_call_operand.hbm [shape: f32[1,1280], index: 4, kind: input, shape index: {}]   ;;  %s11180_s5 = inlined_call_operand.hbm [shape: bf16[1280,896], index: 5, kind: input, shape index: {}]   ;;  %s11181_s6 = inlined_call_operand.hbm [shape: f32[1,896], index: 6, kind: input, shape index: {}]   ;;  %s11182_s7 = inlined_call_operand.hbm [shape: bf16[768,128], index: 7, kind: input, shape index: {}]   ;;  %s11183_s8 = inlined_call_operand.hbm [shape: f32[1,128], index: 8, kind: input, shape index: {}]   ;;  %s11184_s9 = inlined_call_operand.hbm [shape: f32[2,1,128], index: 9, kind: output, shape index: {0}]   ;;  %s11185_s10 = inlined_call_operand.hbm [shape: f32[2,1,128], index: 10, kind: output, shape index: {1}]  }
   0x1   :  { %11202 = sst [smem:[#allocation48_spill]] %s11176_s1 }
   0x2   :  { %11203 = sst [smem:[#allocation49_spill]] %s11177_s2 }
   0x3   :  { %11204 = sst [smem:[#allocation50_spill]] %s11178_s3 }
   0x4   :  { %11205 = sst [smem:[#allocation51_spill]] %s11179_s4 }
   0x5   :  { %16 = vsyncpa [#allocation4], 0 }
   0x6   :  { %17 = vsyncpa [#allocation7], 0 }
   0x7   :  { %18 = vsyncpa [#allocation10], 0 }
   0x8   :  { %19 = vsyncpa [#allocation13], 0 }
   0x9   :  { %20 = vsyncpa [#allocation16], 0 }
   0xa   :  { %21 = vsyncpa [#allocation5], 0 }
   0xb   :  { %23 = vsyncpa [#allocation5 + $0x1], 0 }
   0xc   :  { %24 = vsyncpa [#allocation19], 0 }
   0xd   :  { %26 = vsyncpa [#allocation19 + $0x1], 0  ;;  %s9988_s13 = smov 0   ;;  %s9990_s14 = smov 0  }
   0xe   :  { %s9992_s15 = smov 0   ;;  %s9994_s16 = smov 0  }
   0xf   :  { %s9996_s17 = smov 0   ;;  %s9998_s18 = smov 0  }
  0x10 LB: > { %11206 = sst [smem:[#allocation27_spill]] %s9894_s13  ;;  %s7287_s19 = sadd.s32 4294967295, %s9914_s18   ;;  %s9914_s18 = sphi %s9998_s18, %s32_s18   ;;  %s9910_s17 = sphi %s9996_s17, %s11273_s17   ;;  %s9906_s16 = sphi %s9994_s16, %s11272_s16   ;;  %s9902_s15 = sphi %s9992_s15, %s11271_s15   ;;  %s9898_s14 = sphi %s9990_s14, %s11275_s14   ;;  %s9894_s13 = sphi %s9988_s13, %s11274_s13  }
  0x11   : > { %11207 = sst [smem:[#allocation28_spill]] %s9902_s15  ;;  %s7288_s20 = sadd.s32 4294967294, %s9914_s18  }
  0x12   : > { %11208 = sst [smem:[#allocation29_spill]] %s9910_s17  ;;  %s44_s21 = sadd.s32 1, %s9910_s17 }
  0x13   : > { %s247_s22 = sadd.s32 1, %s9902_s15  ;;  %p46_p0 = scmp.ge.s32.totalorder %s44_s21, 2 }
  0x14   : > { %p257_p1 = scmp.ne.s32.totalorder %s9902_s15, %s9898_s14  ;;  %p258_p2 = scmp.eq.s32.totalorder %s7287_s19, 1 }
  0x15   : > { %p263_p3 = scmp.ne.s32.totalorder %s9898_s14, %s9894_s13  ;;  %s11277_s21 = smov (%p46_p0, %s44_s21), 0 }
  0x16   : > { %11209 = sst [smem:[#allocation30_spill]] %s11277_s21  ;;  %p10028_p4 = por %p258_p2, %p257_p1 }
  0x17   : > { %p264_p5 = scmp.eq.s32.totalorder %s7288_s20, 1  ;;  %s244_s24 = ssub.s32 %s9910_s17, %s11277_s21 }
  0x18   : > { %s11210_s23 = scalar_select %p10028_p4, 1, 0 }
  0x19   : > { %p7289_p6 = scmp.ge.s32.totalorder %s9914_s18, 1  ;;  %p245_p7 = scmp.eq.s32.totalorder %s244_s24, 0 }
  0x1a   : > { %p10035_p8 = por %p264_p5, %p263_p3  ;;  %p297_p9 = scmp.lt.s32.totalorder %s9914_s18, 3 }
  0x1b   : > { %s10041_s26 = scalar_select %p245_p7, %s9902_s15, %s247_s22  }
  0x1c   : > { %s11211_s25 = scalar_select %p10035_p8, 1, 0 }
  0x1d   : > { %11213 = sst [smem:[#allocation32_spill]] %s10041_s26  ;;  %p10043_p10 = pnand %p7289_p6, %p297_p9 }
  0x1e   : > { %11212 = sst [smem:[#allocation31_spill]] %s11211_s25  ;;  %p10047_p11 = scmp.eq.s32.totalorder %s7287_s19, 0 }
  0x1f   : > { %s11214_s27 = scalar_select %p10043_p10, 1, 0 }
  0x20   : > { %s11215_s28 = scalar_select %p10047_p11, 1, 0 }
  0x21   : > { %p8298_p12 = pneg %p10043_p10  ;;  %s9916_s29 = smov [#allocation6]  }
  0x22   : > { %s323_s30 = sshll.u32 %s9916_s29, 4  ;;  %s9917_s11 = smov [#allocation9]   ;;  %s324_s30 = int_to_ptr.vmem [resolvable:$true] %s323_s30 }
  0x23   : > { %s347_s12 = sshll.u32 %s9917_s11, 4  ;;  %p10055_p13 = pnand %p10047_p11, %p8298_p12  ;;  %s10059_s12 = int_to_ptr.vmem [resolvable:$true] %s347_s12 }
  0x24   : > { %s9918_s19 = smov [#allocation12]   ;;  %s11217_s2 = sld [smem:[#allocation49_spill]] }
  0x25   : > { %s10061_s22 = sshll.u32 %s9918_s19, 4  ;;  %p10071_p1 = pneg %p10055_p13  ;;  %s372_s22 = int_to_ptr.vmem [resolvable:$true] %s10061_s22 }
  0x2a   : > { %s9560_s17 = scalar_lea.hbm %s11217_s2, 16 }
  0x2b   : > { %p9561_p0 = scmp.ne.s32.totalorder %s11217_s2, %s9560_s17  ;;  %p9567_p5 = scmp.lt.u32.totalorder %s9560_s17, %s11217_s2 }
  0x2d   : > { %p9563_p2 = pnand %p10071_p1, %p9561_p0 }
  0x2f   : > { %p9564_p3 = pneg %p9563_p2 }
  0x31   : > { %p9569_p6 = pnand %p9567_p5, %p9564_p3 }
  0x33   : > { %9572 = shalt.err (!%p9569_p6)
}
  0x34   : > { %s9573_s21 = scalar_lea.vmem %s324_s30, 16  ;;  %s9580_s26 = scalar_lea.vmem %s324_s30, 32 }
  0x35   : > { %p9574_p7 = scmp.ne.s32.totalorder %s324_s30, %s9573_s21  ;;  %p9581_p8 = scmp.lt.s32.totalorder %s324_s30, %s324_s30 }
  0x36   : > { %p9582_p4 = scmp.lt.s32.totalorder %s9580_s26, %s9573_s21 }
  0x37   : > { %p9576_p9 = pnand %p9574_p7, %p10071_p1 }
  0x38   : > { %p9583_p11 = por %p9582_p4, %p9581_p8 }
  0x39   : > { %p9577_p12 = pneg %p9576_p9 }
  0x3b   : > { %p9584_p10 = pnand %p9583_p11, %p9577_p12 }
  0x3d   : > { %9587 = shalt.err (!%p9584_p10)
}
  0x3e   : > { %8304 = dma.hbm_to_vmem [thread:$0]  (!%p10055_p13), %s11217_s2, 16, %s324_s30, [#allocation7]  }
  0x3f   : > { %s11219_s4 = sld [smem:[#allocation51_spill]] }
  0x45   : > { %s9588_s19 = scalar_lea.hbm %s11219_s4, 160 }
  0x46   : > { %p9589_p0 = scmp.ne.s32.totalorder %s11219_s4, %s9588_s19  ;;  %p9595_p8 = scmp.lt.u32.totalorder %s9588_s19, %s11219_s4 }
  0x48   : > { %p9591_p2 = pnand %p9589_p0, %p10071_p1 }
  0x4a   : > { %p9592_p4 = pneg %p9591_p2 }
  0x4c   : > { %p9597_p10 = pnand %p9595_p8, %p9592_p4 }
  0x4e   : > { %9600 = shalt.err (!%p9597_p10)
}
  0x4f   : > { %s9601_s30 = scalar_lea.vmem %s10059_s12, 160  ;;  %p9609_p6 = scmp.lt.s32.totalorder %s10059_s12, %s10059_s12 }
  0x50   : > { %p9602_p11 = scmp.ne.s32.totalorder %s10059_s12, %s9601_s30  ;;  %p9610_p7 = scmp.lt.s32.totalorder %s9601_s30, %s9601_s30 }
  0x52   : > { %p9604_p3 = pnand %p9602_p11, %p10071_p1  ;;  %p9611_p9 = por %p9610_p7, %p9609_p6 }
  0x54   : > { %p9605_p5 = pneg %p9604_p3 }
  0x56   : > { %p9612_p12 = pnand %p9611_p9, %p9605_p5 }
  0x58   : > { %9615 = shalt.err (!%p9612_p12)
}
  0x59   : > { %8310 = dma.hbm_to_vmem [thread:$0]  (!%p10055_p13), %s11219_s4, 160, %s10059_s12, [#allocation10]  }
  0x5a   : > { %s9616_s15 = scalar_lea.hbm %s11181_s6, 112 }
  0x5b   : > { %p9617_p0 = scmp.ne.s32.totalorder %s11181_s6, %s9616_s15  ;;  %p9623_p8 = scmp.lt.u32.totalorder %s9616_s15, %s11181_s6 }
  0x5d   : > { %p9619_p2 = pnand %p9617_p0, %p10071_p1 }
  0x5f   : > { %p9620_p4 = pneg %p9619_p2 }
  0x61   : > { %p9625_p10 = pnand %p9623_p8, %p9620_p4 }
  0x63   : > { %9628 = shalt.err (!%p9625_p10)
}
  0x64   : > { %s9629_s30 = scalar_lea.vmem %s372_s22, 112  ;;  %s9636_s12 = scalar_lea.vmem %s372_s22, 128 }
  0x65   : > { %p9630_p11 = scmp.ne.s32.totalorder %s372_s22, %s9629_s30  ;;  %p9637_p6 = scmp.lt.s32.totalorder %s372_s22, %s372_s22 }
  0x66   : > { %p9638_p7 = scmp.lt.s32.totalorder %s9636_s12, %s9629_s30 }
  0x67   : > { %p9632_p3 = pnand %p9630_p11, %p10071_p1 }
  0x68   : > { %p9639_p9 = por %p9638_p7, %p9637_p6 }
  0x69   : > { %p9633_p5 = pneg %p9632_p3 }
  0x6b   : > { %p9640_p12 = pnand %p9639_p9, %p9633_p5 }
  0x6d   : > { %9643 = shalt.err (!%p9640_p12)
}
  0x6e   : > { %8316 = dma.hbm_to_vmem [thread:$0]  (!%p10055_p13), %s11181_s6, 112, %s372_s22, [#allocation13]  }
  0x6f   : > { %s9919_s24 = smov [#allocation3]   ;;  %s11220_s1 = sld [smem:[#allocation48_spill]] }
  0x70   : > { %s309_s29 = sshll.u32 %s9919_s24, 4  ;;  %s310_s29 = int_to_ptr.vmem [resolvable:$true] %s309_s29 }
  0x75   : > { %s9644_s19 = scalar_lea.hbm %s11220_s1, 256 }
  0x76   : > { %p9645_p0 = scmp.ne.s32.totalorder %s11220_s1, %s9644_s19  ;;  %p9651_p8 = scmp.lt.u32.totalorder %s9644_s19, %s11220_s1 }
  0x78   : > { %p9647_p2 = pnand %p9645_p0, %p10071_p1 }
  0x7a   : > { %p9648_p4 = pneg %p9647_p2 }
  0x7c   : > { %p9653_p10 = pnand %p9651_p8, %p9648_p4 }
  0x7e   : > { %9656 = shalt.err (!%p9653_p10)
}
  0x7f   : > { %s9657_s22 = scalar_lea.vmem %s310_s29, 256  ;;  %p9665_p6 = scmp.lt.s32.totalorder %s310_s29, %s310_s29 }
  0x80   : > { %p9658_p11 = scmp.ne.s32.totalorder %s310_s29, %s9657_s22  ;;  %p9666_p7 = scmp.lt.s32.totalorder %s9657_s22, %s9657_s22 }
  0x82   : > { %p9660_p3 = pnand %p9658_p11, %p10071_p1  ;;  %p9667_p9 = por %p9666_p7, %p9665_p6 }
  0x84   : > { %p9661_p5 = pneg %p9660_p3 }
  0x86   : > { %p9668_p12 = pnand %p9667_p9, %p9661_p5 }
  0x88   : > { %9671 = shalt.err (!%p9668_p12)
}
  0x89   : > { %s11195_s13 = smov 64   ;;  %s11196_s25 = smov 4  }
  0x8a   : > { %8301 = dma.hbm_to_vmem [thread:$0]  (!%p10055_p13), %s11220_s1, 256, %s310_s29, [#allocation4], %s11195_s13, %s11195_s13, %s11196_s25  }
  0x8b   : > { %s9922_s17 = smov [#allocation8]   ;;  %s11221_s3 = sld [smem:[#allocation50_spill]] }
  0x8c   : > { %s333_s19 = sshll.u32 %s9922_s17, 4  ;;  %s334_s19 = int_to_ptr.vmem [resolvable:$true] %s333_s19 }
  0x91   : > { %s9672_s30 = scalar_lea.hbm %s11221_s3, 10240 }
  0x92   : > { %p9673_p0 = scmp.ne.s32.totalorder %s11221_s3, %s9672_s30  ;;  %p9679_p8 = scmp.lt.u32.totalorder %s9672_s30, %s11221_s3 }
  0x94   : > { %p9675_p2 = pnand %p9673_p0, %p10071_p1 }
  0x96   : > { %p9676_p4 = pneg %p9675_p2 }
  0x98   : > { %p9681_p10 = pnand %p9679_p8, %p9676_p4 }
  0x9a   : > { %9684 = shalt.err (!%p9681_p10)
}
  0x9b   : > { %s9685_s29 = scalar_lea.vmem %s334_s19, 10240  ;;  %p9693_p6 = scmp.lt.s32.totalorder %s334_s19, %s334_s19 }
  0x9c   : > { %p9686_p11 = scmp.ne.s32.totalorder %s334_s19, %s9685_s29  ;;  %p9694_p7 = scmp.lt.s32.totalorder %s9685_s29, %s9685_s29 }
  0x9e   : > { %p9688_p3 = pnand %p9686_p11, %p10071_p1  ;;  %p9695_p9 = por %p9694_p7, %p9693_p6 }
  0xa0   : > { %p9689_p5 = pneg %p9688_p3 }
  0xa2   : > { %p9696_p12 = pnand %p9695_p9, %p9689_p5 }
  0xa4   : > { %9699 = shalt.err (!%p9696_p12)
}
  0xa5   : > { %s9923_s24 = smov 640   ;;  %s9924_s15 = smov 40  }
  0xa6   : > { %8307 = dma.hbm_to_vmem [thread:$0]  (!%p10055_p13), %s11221_s3, 10240, %s334_s19, [#allocation7], %s9923_s24, %s9923_s24, %s9924_s15  }
  0xa7   : > { %s9925_s17 = smov [#allocation11]   ;;  %s9700_s12 = scalar_lea.hbm %s11180_s5, 71680 }
  0xa8   : > { %s357_s21 = sshll.u32 %s9925_s17, 4  ;;  %p9701_p0 = scmp.ne.s32.totalorder %s11180_s5, %s9700_s12  ;;  %s358_s21 = int_to_ptr.vmem [resolvable:$true] %s357_s21 }
  0xa9   : > { %p9707_p8 = scmp.lt.u32.totalorder %s9700_s12, %s11180_s5 }
  0xaa   : > { %p9703_p2 = pnand %p9701_p0, %p10071_p1 }
  0xac   : > { %p9704_p4 = pneg %p9703_p2 }
  0xae   : > { %p9709_p10 = pnand %p9707_p8, %p9704_p4 }
  0xb0   : > { %9712 = shalt.err (!%p9709_p10)
}
  0xb1   : > { %s9713_s19 = scalar_lea.vmem %s358_s21, 71680  ;;  %p9721_p6 = scmp.lt.s32.totalorder %s358_s21, %s358_s21 }
  0xb2   : > { %p9714_p11 = scmp.ne.s32.totalorder %s358_s21, %s9713_s19  ;;  %p9722_p7 = scmp.lt.s32.totalorder %s9713_s19, %s9713_s19 }
  0xb4   : > { %p9716_p3 = pnand %p9714_p11, %p10071_p1  ;;  %p9723_p9 = por %p9722_p7, %p9721_p6 }
  0xb6   : > { %p9717_p5 = pneg %p9716_p3 }
  0xb8   : > { %p9724_p12 = pnand %p9723_p9, %p9717_p5 }
  0xba   : > { %9727 = shalt.err (!%p9724_p12)
}
  0xbb   : > { %s9926_s24 = smov 448   ;;  %s9927_s15 = smov 28  }
  0xbc   : > { %8313 = dma.hbm_to_vmem [thread:$0]  (!%p10055_p13), %s11180_s5, 71680, %s358_s21, [#allocation10], %s9926_s24, %s9926_s24, %s9927_s15  }
  0xbd   : > { %s9928_s2 = smov [#allocation14]   ;;  %s9929_s17 = smov [#allocation15]  }
  0xbe   : > { %s381_s4 = sshll.u32 %s9928_s2, 4  ;;  %s395_s26 = sshll.u32 %s9929_s17, 4  ;;  %s382_s4 = int_to_ptr.vmem [resolvable:$true] %s381_s4  ;;  %s396_s26 = int_to_ptr.vmem [resolvable:$true] %s395_s26 }
  0xbf   : > { %s9728_s22 = scalar_lea.hbm %s11182_s7, 6144 }
  0xc0   : > { %p9729_p0 = scmp.ne.s32.totalorder %s11182_s7, %s9728_s22  ;;  %p9735_p8 = scmp.lt.u32.totalorder %s9728_s22, %s11182_s7 }
  0xc2   : > { %p9731_p2 = pnand %p9729_p0, %p10071_p1 }
  0xc4   : > { %p9732_p4 = pneg %p9731_p2 }
  0xc6   : > { %p9737_p10 = pnand %p9735_p8, %p9732_p4 }
  0xc8   : > { %9740 = shalt.err (!%p9737_p10)
}
  0xc9   : > { %s9741_s21 = scalar_lea.vmem %s382_s4, 6144  ;;  %p9749_p6 = scmp.lt.s32.totalorder %s382_s4, %s382_s4 }
  0xca   : > { %p9742_p11 = scmp.ne.s32.totalorder %s382_s4, %s9741_s21  ;;  %p9750_p7 = scmp.lt.s32.totalorder %s9741_s21, %s9741_s21 }
  0xcc   : > { %p9744_p3 = pnand %p9742_p11, %p10071_p1  ;;  %p9751_p9 = por %p9750_p7, %p9749_p6 }
  0xce   : > { %p9745_p5 = pneg %p9744_p3 }
  0xd0   : > { %p9752_p12 = pnand %p9751_p9, %p9745_p5 }
  0xd2   : > { %9755 = shalt.err (!%p9752_p12)
}
  0xd3   : > { %s11222_s24 = smov 4   ;;  %s11223_s15 = smov 64  }
  0xd4   : > { %8319 = dma.hbm_to_vmem [thread:$0]  (!%p10055_p13), %s11182_s7, 6144, %s382_s4, [#allocation13], %s11223_s15, %s11223_s15, %s11222_s24  }
  0xd5   : > { %s9756_s2 = scalar_lea.hbm %s11183_s8, 16 }
  0xd6   : > { %p9757_p0 = scmp.ne.s32.totalorder %s11183_s8, %s9756_s2  ;;  %p9763_p8 = scmp.lt.u32.totalorder %s9756_s2, %s11183_s8 }
  0xd8   : > { %p9759_p2 = pnand %p9757_p0, %p10071_p1 }
  0xda   : > { %p9760_p4 = pneg %p9759_p2 }
  0xdc   : > { %p9765_p10 = pnand %p9763_p8, %p9760_p4 }
  0xde   : > { %9768 = shalt.err (!%p9765_p10)
}
  0xdf   : > { %s9769_s29 = scalar_lea.vmem %s396_s26, 16  ;;  %s9776_s4 = scalar_lea.vmem %s396_s26, 32 }
  0xe0   : > { %p9770_p11 = scmp.ne.s32.totalorder %s396_s26, %s9769_s29  ;;  %p9777_p6 = scmp.lt.s32.totalorder %s396_s26, %s396_s26 }
  0xe1   : > { %p9778_p7 = scmp.lt.s32.totalorder %s9776_s4, %s9769_s29 }
  0xe2   : > { %p9772_p3 = pnand %p9770_p11, %p10071_p1 }
  0xe3   : > { %p9779_p9 = por %p9778_p7, %p9777_p6 }
  0xe4   : > { %p9773_p5 = pneg %p9772_p3 }
  0xe6   : > { %p9780_p12 = pnand %p9779_p9, %p9773_p5 }
  0xe8   : > { %9783 = shalt.err (!%p9780_p12)
}
  0xe9   : > { %8322 = dma.hbm_to_vmem [thread:$0]  (!%p10055_p13), %s11183_s8, 16, %s396_s26, [#allocation16]  }
  0xea   : > { %p11224_p0 = scmp.ne.s32.totalorder %s11214_s27, 0 }
  0xec   : > { %421 = sbr.rel (%p11224_p0) target bundleno = 1865 (0x749), region = 56 }
  0xf3   : > { %p11225_p2 = scmp.ne.s32.totalorder %s11215_s28, 0 }
  0xf5   : > { %9865 = dma.done.wait (%p11225_p2), [#allocation4], 256  }
  0xf6   : > { %9867 = vsyncadd (%p11225_p2), [#allocation4], 4294967040 }
  0xf7   : > { %9869 = dma.done.wait (%p11225_p2), [#allocation7], 10256  }
  0xf8   : > { %9871 = vsyncadd (%p11225_p2), [#allocation7], 4294957040 }
  0xf9   : > { %9873 = dma.done.wait (%p11225_p2), [#allocation10], 71840  }
  0xfa   : > { %9875 = vsyncadd (%p11225_p2), [#allocation10], 4294895456 }
  0xfb   : > { %9877 = dma.done.wait (%p11225_p2), [#allocation13], 6256  }
  0xfc   : > { %9879 = vsyncadd (%p11225_p2), [#allocation13], 4294961040 }
  0xfd   : > { %9881 = dma.done.wait (%p11225_p2), [#allocation16], 16  }
  0xfe   : > { %9883 = vsyncadd (%p11225_p2), [#allocation16], 4294967280  ;;  %p495_p13 = scmp.lt.s32.totalorder %s9906_s16, 1  ;;  %v8410_v0 = vld [vmem:[#allocation3] sm:$0xff]   ;;  %v8411_v1 = vld [vmem:[#allocation3 + $0x8] sm:$0xff]   ;;  %vm570_vm0 = vcmask 261120  }
  0xff   : > { %8196 = vmatprep.subr.bf16.mxu1 %v8410_v0  ;;  %v8416_v5 = vld [vmem:[#allocation8] ss:$40 sps:$4 sm:$0xff]   ;;  %v8418_v6 = vld [vmem:[#allocation8 + $0x4] ss:$40 sps:$4 sm:$0xff]   ;;  %v8422_v9 = vld [vmem:[#allocation8 + $0x50] ss:$40 sps:$4 sm:$0xff]  }
 0x100   : > { %s496_s27 = scalar_select %p495_p13, %s9906_s16, 1  ;;  %8197 = vmatpush3.bf16.msra.mxu1 %v8410_v0  ;;  %v8419_v7 = vld [vmem:[#allocation8 + $0xc] ss:$40 sps:$4 sm:$0xff]   ;;  %v8421_v8 = vld [vmem:[#allocation8 + $0x8] ss:$40 sps:$4 sm:$0xff]   ;;  %v9930_v40 = vmov 0  }
 0x101   : > { %8198 = vmatprep.subr.bf16.mxu1 %v8411_v1  ;;  %v8424_v10 = vld [vmem:[#allocation8 + $0x54] ss:$40 sps:$4 sm:$0xff]   ;;  %1081 = vmatprep.subr.bf16.mxu0 %v8419_v7  ;;  %v8427_v13 = vld [vmem:[#allocation8 + $0x58] ss:$40 sps:$4 sm:$0xff]   ;;  %v8430_v14 = vld [vmem:[#allocation8 + $0xa4] ss:$40 sps:$4 sm:$0xff]  }
 0x102   : > { %s8013_s20 = sshll.u32 %s496_s27, 5  ;;  %v8425_v11 = vld [vmem:[#allocation8 + $0x5c] ss:$40 sps:$4 sm:$0xff]   ;;  %1082 = vmatpush1.bf16.msra.mxu0 %v8421_v8  ;;  %v8431_v15 = vld [vmem:[#allocation8 + $0xac] ss:$40 sps:$4 sm:$0xff]   ;;  %1113 = vmatprep.mubr.bf16.mxu0 %v9930_v40  ;;  %s11084_s28 = sand.u32 1, %s9898_s14  }
 0x103   : > { %s502_s24 = scalar_lea.vmem %s11175_s0, %s8013_s20  ;;  %1083 = vmatprep.subr.bf16.mxu0 %v8425_v11  ;;  %v8428_v16 = vld [vmem:[#allocation8 + $0xa0] ss:$40 sps:$4 sm:$0xff]   ;;  %v8436_v18 = vld [vmem:[#allocation8 + $0xf4] ss:$40 sps:$4 sm:$0xff]   ;;  %v8434_v20 = vld [vmem:[#allocation8 + $0xf0] ss:$40 sps:$4 sm:$0xff]  }
 0x104   : > { %v8412_v2 = vld [vmem:[%s502_s24] sm:$0xff]   ;;  %v8413_v3 = vld [vmem:[%s502_s24 + $0x8] sm:$0xff]   ;;  %v8414_v4 = vld [vmem:[%s502_s24 + $0x10] sm:$0xff]   ;;  %8199 = vmatpush3.bf16.msra.mxu1 %v8411_v1  ;;  %s487_s15 = scalar_lea.vmem [#allocation17], %s11084_s28  ;;  %s8009_s1 = sshll.u32 %s9906_s16, 4 }
 0x105   : > { %8200 = vmatprep.mubr.msk.bf16.mxu1 %vm570_vm0, %v8412_v2  ;;  %800 = vmatprep.subr.bf16.mxu1 %v8418_v6  ;;  %v8415_v12 = vld [vmem:[%s502_s24 + $0x18] sm:$0xff]   ;;  %v8439_v21 = vld [vmem:[#allocation8 + $0xf8] ss:$40 sps:$4 sm:$0xff]   ;;  %v8448_v26 = vld [vmem:[#allocation8 + $0x194] ss:$40 sps:$4 sm:$0xff]   ;;  %s11099_s25 = scalar_lea.hbm %s11184_s9, %s8009_s1  ;;  %s7098_s2 = sshll.u32 %s487_s15, 4  ;;  %s7099_s2 = int_to_ptr.vmem [resolvable:$true] %s7098_s2 }
 0x106   : > { %1084 = vmatpush1.bf16.msra.mxu0 %v8427_v13  ;;  %v8433_v17 = vld [vmem:[#allocation8 + $0xa8] ss:$40 sps:$4 sm:$0xff]   ;;  %v8437_v19 = vld [vmem:[#allocation8 + $0xfc] ss:$40 sps:$4 sm:$0xff]   ;;  %v8443_v23 = vld [vmem:[#allocation8 + $0x14c] ss:$40 sps:$4 sm:$0xff]  }
 0x107   : > { %8201 = vmatmul.mubr.msk.bf16.vlgmr.msra.gmra.mrb[0].mxu1 %vm570_vm0, %v8413_v3  ;;  %1085 = vmatprep.subr.bf16.mxu0 %v8431_v15  ;;  %v8442_v22 = vld [vmem:[#allocation8 + $0x144] ss:$40 sps:$4 sm:$0xff]   ;;  %v8440_v24 = vld [vmem:[#allocation8 + $0x140] ss:$40 sps:$4 sm:$0xff]   ;;  %v8446_v28 = vld [vmem:[#allocation8 + $0x190] ss:$40 sps:$4 sm:$0xff]  }
 0x108   : > { %8204 = vmatprep.mubr.msk.bf16.mxu1 %vm570_vm0, %v8414_v4  ;;  %801 = vmatpush1.bf16.msra.mxu1 %v8416_v5  ;;  %v8445_v25 = vld [vmem:[#allocation8 + $0x148] ss:$40 sps:$4 sm:$0xff]   ;;  %v8449_v27 = vld [vmem:[#allocation8 + $0x19c] ss:$40 sps:$4 sm:$0xff]   ;;  %v8451_v29 = vld [vmem:[#allocation8 + $0x198] ss:$40 sps:$4 sm:$0xff]  }
 0x109   : > { %802 = vmatprep.subr.bf16.mxu1 %v8424_v10  ;;  %v8454_v30 = vld [vmem:[#allocation8 + $0x1e4] ss:$40 sps:$4 sm:$0xff]   ;;  %v8452_v32 = vld [vmem:[#allocation8 + $0x1e0] ss:$40 sps:$4 sm:$0xff]   ;;  %v8460_v34 = vld [vmem:[#allocation8 + $0x234] ss:$40 sps:$4 sm:$0xff]  }
 0x10a   : > { %1086 = vmatpush1.bf16.msra.mxu0 %v8433_v17  ;;  %v8455_v31 = vld [vmem:[#allocation8 + $0x1ec] ss:$40 sps:$4 sm:$0xff]   ;;  %v8457_v33 = vld [vmem:[#allocation8 + $0x1e8] ss:$40 sps:$4 sm:$0xff]   ;;  %v8461_v35 = vld [vmem:[#allocation8 + $0x23c] ss:$40 sps:$4 sm:$0xff]  }
 0x10b   : > { %1087 = vmatprep.subr.bf16.mxu0 %v8437_v19  ;;  %v8458_v36 = vld [vmem:[#allocation8 + $0x230] ss:$40 sps:$4 sm:$0xff]   ;;  %v8466_v38 = vld [vmem:[#allocation8 + $0x14] ss:$40 sps:$4 sm:$0xff]   ;;  %s7082_s17 = scalar_lea.sflag [#allocation5], %s11084_s28  ;;  %s9784_s30 = scalar_lea.vmem %s7099_s2, 16 }
 0x10c   : > { %803 = vmatpush1.bf16.msra.mxu1 %v8422_v9  ;;  %v8463_v37 = vld [vmem:[#allocation8 + $0x238] ss:$40 sps:$4 sm:$0xff]   ;;  %v8469_v39 = vld [vmem:[#allocation8 + $0x1c] ss:$40 sps:$4 sm:$0xff]   ;;  %p9785_p1 = scmp.ne.s32.totalorder %s7099_s2, %s9784_s30  ;;  %p11266_p4 = scmp.ne.s32.totalorder %s11210_s23, 0 }
 0x10d   : > { %804 = vmatprep.subr.bf16.mxu1 %v8430_v14  ;;  %v7310_v41 = vld [vmem:[#allocation6] ss:$0 sm:$0xff]  ;;  %v8467_v17 = vld [vmem:[#allocation8 + $0x18] ss:$40 sps:$4 sm:$0xff]   ;;  %s9931_s12 = smov [#allocation17]  }
 0x10e   : > { %1088 = vmatpush1.bf16.msra.mxu0 %v8439_v21  ;;  %v8472_v21 = vld [vmem:[#allocation8 + $0x64] ss:$40 sps:$4 sm:$0xff]   ;;  %p9786_p8 = pnand %p9785_p1, %p11266_p4  ;;  %s9788_s22 = sshll.u32 %s9931_s12, 4  ;;  %s9789_s22 = int_to_ptr.vmem [resolvable:$false] %s9788_s22 }
 0x10f   : > { %8205 = vmatmul.mubr.msk.bf16.gmra.mrb[4].mxu1 %vm570_vm0, %v8415_v12  ;;  %1089 = vmatprep.subr.bf16.mxu0 %v8443_v23  ;;  %s9790_s29 = scalar_lea.vmem %s9789_s22, 32  ;;  %p9791_p11 = scmp.lt.s32.totalorder %s7099_s2, %s9789_s22 }
 0x110   : > { %805 = vmatpush1.bf16.msra.mxu1 %v8428_v16  ;;  %832 = vmatprep.mubr.bf16.mxu1 %v9930_v40  ;;  %v8464_v16 = vld [vmem:[#allocation8 + $0x10] ss:$40 sps:$4 sm:$0xff]   ;;  %p9787_p10 = pneg %p9786_p8  ;;  %p9792_p3 = scmp.lt.s32.totalorder %s9790_s29, %s9784_s30 }
 0x111   : > { %806 = vmatprep.subr.bf16.mxu1 %v8436_v18 }
 0x112   : > { %1090 = vmatpush1.bf16.msra.mxu0 %v8445_v25  ;;  %p9793_p5 = por %p9792_p3, %p9791_p11 }
 0x113   : > { %1091 = vmatprep.subr.bf16.mxu0 %v8449_v27 }
 0x114   : > { %807 = vmatpush1.bf16.msra.mxu1 %v8434_v20  ;;  %p9794_p6 = pnand %p9793_p5, %p9787_p10 }
 0x115   : > { %808 = vmatprep.subr.bf16.mxu1 %v8442_v22  ;;  %v8475_v22 = vld [vmem:[#allocation8 + $0x6c] ss:$40 sps:$4 sm:$0xff]  }
 0x116   : > { %1092 = vmatpush1.bf16.msra.mxu0 %v8451_v29 }
 0x117   : > { %1093 = vmatprep.subr.bf16.mxu0 %v8455_v31 }
 0x118   : > { %809 = vmatpush1.bf16.msra.mxu1 %v8440_v24 }
 0x119   : > { %810 = vmatprep.subr.bf16.mxu1 %v8448_v26 }
 0x11a   : > { %1094 = vmatpush1.bf16.msra.mxu0 %v8457_v33  ;;  %v8473_v33 = vld [vmem:[#allocation8 + $0x68] ss:$40 sps:$4 sm:$0xff]  }
 0x11b   : > { %1095 = vmatprep.subr.bf16.mxu0 %v8461_v35 }
 0x11c   : > { %811 = vmatpush1.bf16.msra.mxu1 %v8446_v28 }
 0x11d   : > { %812 = vmatprep.subr.bf16.mxu1 %v8454_v30 }
 0x11e   : > { %1096 = vmatpush1.bf16.msra.mxu0 %v8463_v37  ;;  %v8481_v37 = vld [vmem:[#allocation8 + $0xbc] ss:$40 sps:$4 sm:$0xff]  }
 0x11f   : > { %1643 = vmatprep.subr.bf16.mxu0 %v8469_v39 }
 0x120   : > { %813 = vmatpush1.bf16.msra.mxu1 %v8452_v32  ;;  %v8470_v32 = vld [vmem:[#allocation8 + $0x60] ss:$40 sps:$4 sm:$0xff]  }
 0x121   : > { %814 = vmatprep.subr.bf16.mxu1 %v8460_v34 }
 0x124   : > { %815 = vmatpush1.bf16.msra.mxu1 %v8458_v36  ;;  %v8478_v36 = vld [vmem:[#allocation8 + $0xb4] ss:$40 sps:$4 sm:$0xff]  }
 0x125   : > { %1362 = vmatprep.subr.bf16.mxu1 %v8466_v38 }
 0x1da   : > { %v8202_v42 = vpop.f32.mrb[0].mxu1 }
 0x1db   : > { %v626_v43 = vadd.f32 %v8202_v42, %v7310_v41  ;;  %v617_v44 = vpop.f32.mrb[1].mxu1 }
 0x1dc   : > { %v618_v45 = vadd.f32 %v7310_v41, %v617_v44  ;;  %v8203_v46 = vpop.f32.mrb[2].mxu1  ;;  %v8479_v44 = vld [vmem:[#allocation8 + $0xb8] ss:$40 sps:$4 sm:$0xff]  }
 0x1dd   : > { %v650_v47 = vmul.f32 0.5, %v626_v43  ;;  %v629_v48 = vadd.f32 %v8203_v46, %v7310_v41  ;;  %v620_v49 = vpop.f32.mrb[3].mxu1 }
 0x1de   : > { %v648_v50 = vmul.f32 0.5, %v618_v45  ;;  %v621_v51 = vadd.f32 %v7310_v41, %v620_v49 }
 0x1df   : > { %9384 = vtanh.f32 %v650_v47  ;;  %v651_v52 = vmul.f32 0.5, %v629_v48  ;;  %v8484_v47 = vld [vmem:[#allocation8 + $0x104] ss:$40 sps:$4 sm:$0xff]  }
 0x1e0   : > { %9386 = vtanh.f32 %v648_v50  ;;  %v649_v53 = vmul.f32 0.5, %v621_v51 }
 0x1e1   : > { %9388 = vtanh.f32 %v651_v52  ;;  %v8485_v52 = vld [vmem:[#allocation8 + $0x108] ss:$40 sps:$4 sm:$0xff]  }
 0x1e2   : > { %9390 = vtanh.f32 %v649_v53  ;;  %v8206_v54 = vpop.f32.mrb[4].mxu1  ;;  %v8490_v53 = vld [vmem:[#allocation8 + $0x154] ss:$40 sps:$4 sm:$0xff]  }
 0x1e3   : > { %v642_v55 = vadd.f32 %v8206_v54, %v7310_v41  ;;  %v633_v56 = vpop.f32.mrb[5].mxu1  ;;  %v8493_v54 = vld [vmem:[#allocation8 + $0x15c] ss:$40 sps:$4 sm:$0xff]  }
 0x1e4   : > { %v10258_v57 = vadd.f32 %v7310_v41, %v633_v56  ;;  %v8207_v58 = vpop.f32.mrb[6].mxu1  ;;  %v8491_v56 = vld [vmem:[#allocation8 + $0x158] ss:$40 sps:$4 sm:$0xff]  }
 0x1e5   : > { %v654_v59 = vmul.f32 0.5, %v642_v55  ;;  %v645_v60 = vadd.f32 %v8207_v58, %v7310_v41  ;;  %v636_v61 = vpop.f32.mrb[7].mxu1  ;;  %v8499_v58 = vld [vmem:[#allocation8 + $0x1ac] ss:$40 sps:$4 sm:$0xff]  }
 0x1e6   : > { %v652_v62 = vmul.f32 0.5, %v10258_v57  ;;  %v637_v63 = vadd.f32 %v7310_v41, %v636_v61  ;;  %v8502_v61 = vld [vmem:[#allocation8 + $0x1f4] ss:$40 sps:$4 sm:$0xff]  }
 0x1e7   : > { %9392 = vtanh.f32 %v654_v59  ;;  %v655_v0 = vmul.f32 0.5, %v645_v60  ;;  %v8494_v59 = vld [vmem:[#allocation8 + $0x1a0] ss:$40 sps:$4 sm:$0xff]  }
 0x1e8   : > { %9394 = vtanh.f32 %v652_v62  ;;  %v653_v1 = vmul.f32 0.5, %v637_v63  ;;  %v8505_v62 = vld [vmem:[#allocation8 + $0x1fc] ss:$40 sps:$4 sm:$0xff]  }
 0x1e9   : > { %v9385_v2 = vpop.eup %9384  ;;  %9396 = vtanh.f32 %v655_v0  ;;  %v8503_v0 = vld [vmem:[#allocation8 + $0x1f8] ss:$40 sps:$4 sm:$0xff]  }
 0x1ea   : > { %v9387_v3 = vpop.eup %9386  ;;  %v666_v4 = vmul.f32 0.5, %v9385_v2  ;;  %9398 = vtanh.f32 %v653_v1  ;;  %v8508_v1 = vld [vmem:[#allocation8 + $0x244] ss:$40 sps:$4 sm:$0xff]  }
 0x1eb   : > { %v9389_v5 = vpop.eup %9388  ;;  %v664_v6 = vmul.f32 0.5, %v9387_v3  ;;  %v8511_v2 = vld [vmem:[#allocation8 + $0x24c] ss:$40 sps:$4 sm:$0xff]   ;;  %v8506_v3 = vld [vmem:[#allocation8 + $0x240] ss:$40 sps:$4 sm:$0xff]  }
 0x1ec   : > { %v9391_v7 = vpop.eup %9390  ;;  %v674_v8 = vadd.f32 0.5, %v666_v4  ;;  %v667_v9 = vmul.f32 0.5, %v9389_v5  ;;  %v8509_v4 = vld [vmem:[#allocation8 + $0x248] ss:$40 sps:$4 sm:$0xff]   ;;  %v8514_v5 = vld [vmem:[#allocation8 + $0x24] ss:$40 sps:$4 sm:$0xff]  }
 0x1ed   : > { %v672_v10 = vadd.f32 0.5, %v664_v6  ;;  %v665_v11 = vmul.f32 0.5, %v9391_v7  ;;  %v8512_v6 = vld [vmem:[#allocation8 + $0x20] ss:$40 sps:$4 sm:$0xff]   ;;  %v8517_v7 = vld [vmem:[#allocation8 + $0x74] ss:$40 sps:$4 sm:$0xff]  }
 0x1ee   : > { %v675_v12 = vadd.f32 0.5, %v667_v9  ;;  %v682_v14 = vmul.f32 %v674_v8, %v626_v43  ;;  %v8476_v43 = vld [vmem:[#allocation8 + $0xb0] ss:$40 sps:$4 sm:$0xff]   ;;  %v8520_v9 = vld [vmem:[#allocation8 + $0xc4] ss:$40 sps:$4 sm:$0xff]  }
 0x1ef   : > { %v673_v13 = vadd.f32 0.5, %v665_v11  ;;  %v680_v19 = vmul.f32 %v672_v10, %v618_v45  ;;  %v8515_v8 = vld [vmem:[#allocation8 + $0x70] ss:$40 sps:$4 sm:$0xff]   ;;  %v8518_v10 = vld [vmem:[#allocation8 + $0xc0] ss:$40 sps:$4 sm:$0xff]  }
 0x1f0   : > { %v683_v15 = vmul.f32 %v675_v12, %v629_v48  ;;  %v8487_v48 = vld [vmem:[#allocation8 + $0x10c] ss:$40 sps:$4 sm:$0xff]   ;;  %v8521_v12 = vld [vmem:[#allocation8 + $0x110] ss:$40 sps:$4 sm:$0xff]  }
 0x1f1   : > { %v9393_v18 = vpop.eup %9392  ;;  %v681_v20 = vmul.f32 %v673_v13, %v621_v51  ;;  %v8482_v51 = vld [vmem:[#allocation8 + $0x100] ss:$40 sps:$4 sm:$0xff]   ;;  %v8523_v11 = vld [vmem:[#allocation8 + $0x114] ss:$40 sps:$4 sm:$0xff]   ;;  %v8526_v13 = vld [vmem:[#allocation8 + $0x164] ss:$40 sps:$4 sm:$0xff]  }
 0x1f2   : > { %v9395_v23 = vpop.eup %9394  ;;  %v10261_v24 = vpack.c.bf16 %v683_v15, %v682_v14  ;;  %v670_v25 = vmul.f32 0.5, %v9393_v18  ;;  %v8524_v14 = vld [vmem:[#allocation8 + $0x160] ss:$40 sps:$4 sm:$0xff]   ;;  %v8529_v15 = vld [vmem:[#allocation8 + $0x1b4] ss:$40 sps:$4 sm:$0xff]  }
 0x1f3   : > { %v9397_v26 = vpop.eup %9396  ;;  %v10263_v27 = vpack.c.bf16 %v681_v20, %v680_v19  ;;  %v668_v28 = vmul.f32 0.5, %v9395_v23  ;;  %v8530_v18 = vld [vmem:[#allocation8 + $0x200] ss:$40 sps:$4 sm:$0xff]   ;;  %v8535_v19 = vld [vmem:[#allocation8 + $0x254] ss:$40 sps:$4 sm:$0xff]  }
 0x1f4   : > { %v9399_v29 = vpop.eup %9398  ;;  %v678_v30 = vadd.f32 0.5, %v670_v25  ;;  %v671_v31 = vmul.f32 0.5, %v9397_v26  ;;  %v8533_v20 = vld [vmem:[#allocation8 + $0x250] ss:$40 sps:$4 sm:$0xff]   ;;  %v8536_v23 = vld [vmem:[#allocation11] ss:$28 sps:$4 sm:$0xff]  }
 0x1f5   : > { %v676_v34 = vadd.f32 0.5, %v668_v28  ;;  %v669_v35 = vmul.f32 0.5, %v9399_v29  ;;  %833 = vmatmul.mubr.bf16.vlgmr.msra.gmra.mrb[8].mxu1 %v10263_v27  ;;  %1114 = vmatmul.mubr.bf16.vlgmr.msra.gmra.mrb[0].mxu0 %v10263_v27  ;;  %v8539_v25 = vld [vmem:[#allocation11 + $0x8] ss:$28 sps:$4 sm:$0xff]   ;;  %v8544_v26 = vld [vmem:[#allocation11 + $0x3c] ss:$28 sps:$4 sm:$0xff]  }
 0x1f6   : > { %v679_v38 = vadd.f32 0.5, %v671_v31  ;;  %1363 = vmatpush1.bf16.msra.mxu1 %v8464_v16  ;;  %1644 = vmatpush1.bf16.msra.mxu0 %v8467_v17  ;;  %v686_v41 = vmul.f32 %v678_v30, %v642_v55  ;;  %v8488_v55 = vld [vmem:[#allocation8 + $0x150] ss:$40 sps:$4 sm:$0xff]   ;;  %v8532_v17 = vld [vmem:[#allocation8 + $0x204] ss:$40 sps:$4 sm:$0xff]  }
 0x1f7   : > { %v677_v39 = vadd.f32 0.5, %v669_v35  ;;  %1364 = vmatprep.subr.bf16.mxu1 %v8472_v21  ;;  %1645 = vmatprep.subr.bf16.mxu0 %v8475_v22  ;;  %v684_v45 = vmul.f32 %v676_v34, %v10258_v57  ;;  %v8496_v57 = vld [vmem:[#allocation8 + $0x1a4] ss:$40 sps:$4 sm:$0xff]   ;;  %v8527_v16 = vld [vmem:[#allocation8 + $0x1b0] ss:$40 sps:$4 sm:$0xff]  }
 0x1f8   : > { %v687_v42 = vmul.f32 %v679_v38, %v645_v60  ;;  %842 = vmatprep.mubr.bf16.mxu1 %v9930_v40  ;;  %1123 = vmatprep.mubr.bf16.mxu0 %v9930_v40  ;;  %v8497_v60 = vld [vmem:[#allocation8 + $0x1a8] ss:$40 sps:$4 sm:$0xff]   ;;  %v8542_v28 = vld [vmem:[#allocation11 + $0x38] ss:$28 sps:$4 sm:$0xff]   ;;  %v8548_v30 = vld [vmem:[#allocation11 + $0x70] ss:$28 sps:$4 sm:$0xff]  }
 0x1f9   : > { %v685_v46 = vmul.f32 %v677_v39, %v637_v63  ;;  %v8500_v63 = vld [vmem:[#allocation8 + $0x1f0] ss:$40 sps:$4 sm:$0xff]   ;;  %v8551_v31 = vld [vmem:[#allocation11 + $0x78] ss:$28 sps:$4 sm:$0xff]   ;;  %v8560_v38 = vld [vmem:[#allocation11 + $0xe0] ss:$28 sps:$4 sm:$0xff]  }
 0x1fa   : > { %v10270_v49 = vpack.c.bf16 %v687_v42, %v686_v41  ;;  %1365 = vmatpush1.bf16.msra.mxu1 %v8470_v32  ;;  %1646 = vmatpush1.bf16.msra.mxu0 %v8473_v33  ;;  %v8538_v21 = vld [vmem:[#allocation11 + $0x4] ss:$28 sps:$4 sm:$0xff]   ;;  %v8541_v22 = vld [vmem:[#allocation11 + $0xc] ss:$28 sps:$4 sm:$0xff]   ;;  %v8550_v29 = vld [vmem:[#allocation11 + $0x74] ss:$28 sps:$4 sm:$0xff]  }
 0x1fb   : > { %v10272_v50 = vpack.c.bf16 %v685_v46, %v684_v45  ;;  %1366 = vmatprep.subr.bf16.mxu1 %v8478_v36  ;;  %1647 = vmatprep.subr.bf16.mxu0 %v8481_v37  ;;  %v8556_v32 = vld [vmem:[#allocation11 + $0xac] ss:$28 sps:$4 sm:$0xff]   ;;  %v8559_v33 = vld [vmem:[#allocation11 + $0xb4] ss:$28 sps:$4 sm:$0xff]   ;;  %v8562_v36 = vld [vmem:[#allocation11 + $0xe4] ss:$28 sps:$4 sm:$0xff]  }
 0x1fc   : > { %v8554_v34 = vld [vmem:[#allocation11 + $0xa8] ss:$28 sps:$4 sm:$0xff]   ;;  %v8557_v35 = vld [vmem:[#allocation11 + $0xb0] ss:$28 sps:$4 sm:$0xff]   ;;  %v8568_v41 = vld [vmem:[#allocation11 + $0x11c] ss:$28 sps:$4 sm:$0xff]  }
 0x1fd   : > { %843 = vmatmul.mubr.bf16.gmra.mrb[12].mxu1 %v10261_v24  ;;  %1124 = vmatmul.mubr.bf16.gmra.mrb[4].mxu0 %v10261_v24  ;;  %v8565_v37 = vld [vmem:[#allocation11 + $0xec] ss:$28 sps:$4 sm:$0xff]   ;;  %v8571_v42 = vld [vmem:[#allocation11 + $0x124] ss:$28 sps:$4 sm:$0xff]   ;;  %v8574_v45 = vld [vmem:[#allocation11 + $0x154] ss:$28 sps:$4 sm:$0xff]  }
 0x1fe   : > { %1367 = vmatpush1.bf16.msra.mxu1 %v8476_v43  ;;  %1648 = vmatpush1.bf16.msra.mxu0 %v8479_v44  ;;  %v8563_v39 = vld [vmem:[#allocation11 + $0xe8] ss:$28 sps:$4 sm:$0xff]   ;;  %v8566_v43 = vld [vmem:[#allocation11 + $0x118] ss:$28 sps:$4 sm:$0xff]   ;;  %v8569_v44 = vld [vmem:[#allocation11 + $0x120] ss:$28 sps:$4 sm:$0xff]  }
 0x1ff   : > { %1368 = vmatprep.subr.bf16.mxu1 %v8484_v47  ;;  %1649 = vmatprep.subr.bf16.mxu0 %v8487_v48  ;;  %v8577_v46 = vld [vmem:[#allocation11 + $0x15c] ss:$28 sps:$4 sm:$0xff]   ;;  %v8572_v47 = vld [vmem:[#allocation11 + $0x150] ss:$28 sps:$4 sm:$0xff]  }
 0x200   : > { %852 = vmatprep.mubr.bf16.mxu1 %v9930_v40  ;;  %1133 = vmatprep.mubr.bf16.mxu0 %v9930_v40  ;;  %v8575_v48 = vld [vmem:[#allocation11 + $0x158] ss:$28 sps:$4 sm:$0xff]  }
 0x202   : > { %1369 = vmatpush1.bf16.msra.mxu1 %v8482_v51  ;;  %1650 = vmatpush1.bf16.msra.mxu0 %v8485_v52  ;;  %v8578_v51 = vld [vmem:[#allocation11 + $0x188] ss:$28 sps:$4 sm:$0xff]   ;;  %v8581_v52 = vld [vmem:[#allocation11 + $0x190] ss:$28 sps:$4 sm:$0xff]  }
 0x203   : > { %1370 = vmatprep.subr.bf16.mxu1 %v8490_v53  ;;  %1651 = vmatprep.subr.bf16.mxu0 %v8493_v54  ;;  %v8586_v53 = vld [vmem:[#allocation11 + $0x1c4] ss:$28 sps:$4 sm:$0xff]   ;;  %v8589_v54 = vld [vmem:[#allocation11 + $0x1cc] ss:$28 sps:$4 sm:$0xff]  }
 0x205   : > { %853 = vmatmul.mubr.bf16.gmra.mrb[16].mxu1 %v10272_v50  ;;  %1134 = vmatmul.mubr.bf16.gmra.mrb[8].mxu0 %v10272_v50 }
 0x206   : > { %1371 = vmatpush1.bf16.msra.mxu1 %v8488_v55  ;;  %1652 = vmatpush1.bf16.msra.mxu0 %v8491_v56  ;;  %v8584_v55 = vld [vmem:[#allocation11 + $0x1c0] ss:$28 sps:$4 sm:$0xff]   ;;  %v8587_v56 = vld [vmem:[#allocation11 + $0x1c8] ss:$28 sps:$4 sm:$0xff]  }
 0x207   : > { %1372 = vmatprep.subr.bf16.mxu1 %v8496_v57  ;;  %1653 = vmatprep.subr.bf16.mxu0 %v8499_v58  ;;  %v8592_v57 = vld [vmem:[#allocation11 + $0x1fc] ss:$28 sps:$4 sm:$0xff]   ;;  %v8595_v58 = vld [vmem:[#allocation11 + $0x204] ss:$28 sps:$4 sm:$0xff]  }
 0x208   : > { %862 = vmatprep.mubr.bf16.mxu1 %v9930_v40  ;;  %1143 = vmatprep.mubr.bf16.mxu0 %v9930_v40 }
 0x20a   : > { %1373 = vmatpush1.bf16.msra.mxu1 %v8494_v59  ;;  %1654 = vmatpush1.bf16.msra.mxu0 %v8497_v60  ;;  %v8590_v59 = vld [vmem:[#allocation11 + $0x1f8] ss:$28 sps:$4 sm:$0xff]   ;;  %v8593_v60 = vld [vmem:[#allocation11 + $0x200] ss:$28 sps:$4 sm:$0xff]  }
 0x20b   : > { %1374 = vmatprep.subr.bf16.mxu1 %v8502_v61  ;;  %1655 = vmatprep.subr.bf16.mxu0 %v8505_v62  ;;  %v8598_v61 = vld [vmem:[#allocation11 + $0x234] ss:$28 sps:$4 sm:$0xff]   ;;  %v8601_v62 = vld [vmem:[#allocation11 + $0x23c] ss:$28 sps:$4 sm:$0xff]  }
 0x20d   : > { %863 = vmatmul.mubr.bf16.gmra.mrb[20].mxu1 %v10270_v49  ;;  %1144 = vmatmul.mubr.bf16.gmra.mrb[12].mxu0 %v10270_v49 }
 0x20e   : > { %1375 = vmatpush1.bf16.msra.mxu1 %v8500_v63  ;;  %1656 = vmatpush1.bf16.msra.mxu0 %v8503_v0  ;;  %v8596_v63 = vld [vmem:[#allocation11 + $0x230] ss:$28 sps:$4 sm:$0xff]   ;;  %v8599_v0 = vld [vmem:[#allocation11 + $0x238] ss:$28 sps:$4 sm:$0xff]  }
 0x20f   : > { %1376 = vmatprep.subr.bf16.mxu1 %v8508_v1  ;;  %1657 = vmatprep.subr.bf16.mxu0 %v8511_v2  ;;  %v8604_v1 = vld [vmem:[#allocation11 + $0x26c] ss:$28 sps:$4 sm:$0xff]   ;;  %v8607_v2 = vld [vmem:[#allocation11 + $0x274] ss:$28 sps:$4 sm:$0xff]  }
 0x210   : > { %1394 = vmatprep.mubr.bf16.mxu1 %v9930_v40  ;;  %1675 = vmatprep.mubr.bf16.mxu0 %v9930_v40 }
 0x212   : > { %1377 = vmatpush1.bf16.msra.mxu1 %v8506_v3  ;;  %1658 = vmatpush1.bf16.msra.mxu0 %v8509_v4  ;;  %v8602_v3 = vld [vmem:[#allocation11 + $0x268] ss:$28 sps:$4 sm:$0xff]   ;;  %v8605_v4 = vld [vmem:[#allocation11 + $0x270] ss:$28 sps:$4 sm:$0xff]  }
 0x213   : > { %1924 = vmatprep.subr.bf16.mxu1 %v8514_v5  ;;  %5747 = vmatprep.subr.bf16.mxu0 %v8538_v21  ;;  %v8610_v5 = vld [vmem:[#allocation11 + $0x2a4] ss:$28 sps:$4 sm:$0xff]   ;;  %v8629_v21 = vld [vmem:[#allocation11 + $0x350] ss:$28 sps:$4 sm:$0xff]  }
 0x215   : > { %1395 = vmatmul.mubr.bf16.vlgmr.msra.gmra.mrb[24].mxu1 %v10263_v27  ;;  %1676 = vmatmul.mubr.bf16.vlgmr.msra.gmra.mrb[16].mxu0 %v10263_v27 }
 0x216   : > { %1925 = vmatpush1.bf16.msra.mxu1 %v8512_v6  ;;  %1404 = vmatprep.mubr.bf16.mxu1 %v9930_v40  ;;  %v8613_v6 = vld [vmem:[#allocation11 + $0x2ac] ss:$28 sps:$4 sm:$0xff]  }
 0x217   : > { %1926 = vmatprep.subr.bf16.mxu1 %v8517_v7  ;;  %1685 = vmatprep.mubr.bf16.mxu0 %v9930_v40  ;;  %v8608_v7 = vld [vmem:[#allocation11 + $0x2a0] ss:$28 sps:$4 sm:$0xff]  }
 0x218   : > { %5748 = vmatpush1.bf16.msra.mxu0 %v8536_v23 }
 0x219   : > { %5749 = vmatprep.subr.bf16.mxu0 %v8544_v26  ;;  %v8637_v26 = vld [vmem:[#allocation11 + $0x38c] ss:$28 sps:$4 sm:$0xff]  }
 0x21a   : > { %1927 = vmatpush1.bf16.msra.mxu1 %v8515_v8  ;;  %v8611_v8 = vld [vmem:[#allocation11 + $0x2a8] ss:$28 sps:$4 sm:$0xff]  }
 0x21b   : > { %1928 = vmatprep.subr.bf16.mxu1 %v8520_v9  ;;  %v8616_v9 = vld [vmem:[#allocation11 + $0x2dc] ss:$28 sps:$4 sm:$0xff]  }
 0x21c   : > { %5750 = vmatpush1.bf16.msra.mxu0 %v8542_v28  ;;  %v989_v28 = vld [vmem:[#allocation9 + $0x2] sm:$0x3] }
 0x21d   : > { %1405 = vmatmul.mubr.bf16.gmra.mrb[28].mxu1 %v10261_v24  ;;  %1686 = vmatmul.mubr.bf16.gmra.mrb[20].mxu0 %v10261_v24 }
 0x21e   : > { %1929 = vmatpush1.bf16.msra.mxu1 %v8518_v10  ;;  %1414 = vmatprep.mubr.bf16.mxu1 %v9930_v40  ;;  %v8619_v10 = vld [vmem:[#allocation11 + $0x2e4] ss:$28 sps:$4 sm:$0xff]  }
 0x21f   : > { %1930 = vmatprep.subr.bf16.mxu1 %v8523_v11  ;;  %1695 = vmatprep.mubr.bf16.mxu0 %v9930_v40  ;;  %v8614_v11 = vld [vmem:[#allocation11 + $0x2d8] ss:$28 sps:$4 sm:$0xff]  }
 0x220   : > { %5751 = vmatprep.subr.bf16.mxu0 %v8550_v29 }
 0x221   : > { %5752 = vmatpush1.bf16.msra.mxu0 %v8548_v30 }
 0x222   : > { %1931 = vmatpush1.bf16.msra.mxu1 %v8521_v12  ;;  %5753 = vmatprep.subr.bf16.mxu0 %v8556_v32  ;;  %v8617_v12 = vld [vmem:[#allocation11 + $0x2e0] ss:$28 sps:$4 sm:$0xff]  }
 0x223   : > { %1932 = vmatprep.subr.bf16.mxu1 %v8526_v13  ;;  %v8622_v13 = vld [vmem:[#allocation11 + $0x314] ss:$28 sps:$4 sm:$0xff]  }
 0x225   : > { %1415 = vmatmul.mubr.bf16.gmra.mrb[32].mxu1 %v10272_v50  ;;  %1696 = vmatmul.mubr.bf16.gmra.mrb[24].mxu0 %v10272_v50 }
 0x226   : > { %1933 = vmatpush1.bf16.msra.mxu1 %v8524_v14  ;;  %1424 = vmatprep.mubr.bf16.mxu1 %v9930_v40  ;;  %v8625_v14 = vld [vmem:[#allocation11 + $0x31c] ss:$28 sps:$4 sm:$0xff]  }
 0x227   : > { %1934 = vmatprep.subr.bf16.mxu1 %v8529_v15  ;;  %1705 = vmatprep.mubr.bf16.mxu0 %v9930_v40  ;;  %v8620_v15 = vld [vmem:[#allocation11 + $0x310] ss:$28 sps:$4 sm:$0xff]  }
 0x228   : > { %5754 = vmatpush1.bf16.msra.mxu0 %v8554_v34 }
 0x229   : > { %5755 = vmatprep.subr.bf16.mxu0 %v8562_v36 }
 0x22a   : > { %1935 = vmatpush1.bf16.msra.mxu1 %v8527_v16  ;;  %v8623_v16 = vld [vmem:[#allocation11 + $0x318] ss:$28 sps:$4 sm:$0xff]  }
 0x22b   : > { %1936 = vmatprep.subr.bf16.mxu1 %v8532_v17  ;;  %v710_v17 = vlaneseq }
 0x22c   : > { %5756 = vmatpush1.bf16.msra.mxu0 %v8560_v38 }
 0x22d   : > { %1425 = vmatmul.mubr.bf16.gmra.mrb[36].mxu1 %v10270_v49  ;;  %1706 = vmatmul.mubr.bf16.gmra.mrb[28].mxu0 %v10270_v49 }
 0x22e   : > { %1937 = vmatpush1.bf16.msra.mxu1 %v8530_v18  ;;  %1956 = vmatprep.mubr.bf16.mxu1 %v9930_v40  ;;  %v8628_v18 = vld [vmem:[#allocation11 + $0x34c] ss:$28 sps:$4 sm:$0xff]  }
 0x22f   : > { %1938 = vmatprep.subr.bf16.mxu1 %v8535_v19  ;;  %5757 = vmatprep.subr.bf16.mxu0 %v8568_v41  ;;  %v8631_v19 = vld [vmem:[#allocation11 + $0x354] ss:$28 sps:$4 sm:$0xff]  }
 0x230   : > { %5758 = vmatpush1.bf16.msra.mxu0 %v8566_v43 }
 0x231   : > { %5759 = vmatprep.subr.bf16.mxu0 %v8574_v45 }
 0x232   : > { %1939 = vmatpush1.bf16.msra.mxu1 %v8533_v20  ;;  %v8626_v20 = vld [vmem:[#allocation11 + $0x348] ss:$28 sps:$4 sm:$0xff]  }
 0x233   : > { %5952 = vmatprep.subr.bf16.mxu1 %v8541_v22  ;;  %v10308_v22 = vshrl.u32 %v710_v17, 7 }
 0x234   : > { %5760 = vmatpush1.bf16.msra.mxu0 %v8572_v47 }
 0x235   : > { %1957 = vmatmul.mubr.bf16.vlgmr.msra.gmra.mrb[40].mxu1 %v10263_v27  ;;  %v8547_v27 = vld [vmem:[#allocation11 + $0x44] ss:$28 sps:$4 sm:$0xff]   ;;  %11226 = vst [vmem:[#allocation33_spill] sm:$0xff] %v10308_v22  ;;  %v10311_v23 = vsub.s32 0, %v10308_v22 }
 0x236   : > { %1966 = vmatprep.mubr.bf16.mxu1 %v9930_v40  ;;  %5953 = vmatpush1.bf16.msra.mxu1 %v8539_v25  ;;  %v8634_v25 = vld [vmem:[#allocation11 + $0x384] ss:$28 sps:$4 sm:$0xff]  }
 0x237   : > { %5954 = vmatprep.subr.bf16.mxu1 %v8547_v27  ;;  %11227 = vst [vmem:[#allocation34_spill] sm:$0xff] %v10311_v23  ;;  %v708_v27 = vld [vmem:[#allocation9] sm:$0x3] }
 0x238   : > { %v10317_v29 = vrot.slane %v708_v27, %v10311_v23 }
 0x23d   : > { %1967 = vmatmul.mubr.bf16.gmra.mrb[44].mxu1 %v10261_v24  ;;  %v8545_v24 = vld [vmem:[#allocation11 + $0x40] ss:$28 sps:$4 sm:$0xff]  }
 0x23e   : > { %1976 = vmatprep.mubr.bf16.mxu1 %v9930_v40  ;;  %5955 = vmatpush1.bf16.msra.mxu1 %v8545_v24  ;;  %v10314_v24 = vsub.s32 1, %v10308_v22 }
 0x240   : > { %11228 = vst [vmem:[#allocation35_spill] sm:$0xff] %v10314_v24  ;;  %v10323_v30 = vrot.slane %v708_v27, %v10314_v24 }
 0x245   : > { %1977 = vmatmul.mubr.bf16.gmra.mrb[48].mxu1 %v10272_v50  ;;  %v8583_v50 = vld [vmem:[#allocation11 + $0x194] ss:$28 sps:$4 sm:$0xff]  }
 0x246   : > { %1986 = vmatprep.mubr.bf16.mxu1 %v9930_v40  ;;  %v8553_v40 = vld [vmem:[#allocation11 + $0x7c] ss:$28 sps:$4 sm:$0xff]  }
 0x247   : > { %5956 = vmatprep.subr.bf16.mxu1 %v8553_v40  ;;  %v10320_v40 = vrot.slane %v989_v28, %v10311_v23 }
 0x248   : > { %5957 = vmatpush1.bf16.msra.mxu1 %v8551_v31  ;;  %v10326_v31 = vrot.slane %v989_v28, %v10314_v24 }
 0x249   : > { %5958 = vmatprep.subr.bf16.mxu1 %v8559_v33 }
 0x24c   : > { %5959 = vmatpush1.bf16.msra.mxu1 %v8557_v35 }
 0x24d   : > { %1987 = vmatmul.mubr.bf16.gmra.mrb[52].mxu1 %v10270_v49  ;;  %5960 = vmatprep.subr.bf16.mxu1 %v8565_v37  ;;  %v8580_v49 = vld [vmem:[#allocation11 + $0x18c] ss:$28 sps:$4 sm:$0xff]  }
 0x24e   : > { %5761 = vmatprep.subr.bf16.mxu0 %v8580_v49 }
 0x24f   : > { %5762 = vmatpush1.bf16.msra.mxu0 %v8578_v51 }
 0x250   : > { %5961 = vmatpush1.bf16.msra.mxu1 %v8563_v39  ;;  %5763 = vmatprep.subr.bf16.mxu0 %v8586_v53 }
 0x251   : > { %5962 = vmatprep.subr.bf16.mxu1 %v8571_v42 }
 0x253   : > { %5764 = vmatpush1.bf16.msra.mxu0 %v8584_v55 }
 0x254   : > { %5963 = vmatpush1.bf16.msra.mxu1 %v8569_v44  ;;  %5765 = vmatprep.subr.bf16.mxu0 %v8592_v57 }
 0x255   : > { %5964 = vmatprep.subr.bf16.mxu1 %v8577_v46 }
 0x257   : > { %5766 = vmatpush1.bf16.msra.mxu0 %v8590_v59 }
 0x258   : > { %5965 = vmatpush1.bf16.msra.mxu1 %v8575_v48  ;;  %5767 = vmatprep.subr.bf16.mxu0 %v8598_v61 }
 0x259   : > { %5966 = vmatprep.subr.bf16.mxu1 %v8583_v50 }
 0x25b   : > { %5768 = vmatpush1.bf16.msra.mxu0 %v8596_v63 }
 0x25c   : > { %5967 = vmatpush1.bf16.msra.mxu1 %v8581_v52  ;;  %5769 = vmatprep.subr.bf16.mxu0 %v8604_v1 }
 0x25d   : > { %5968 = vmatprep.subr.bf16.mxu1 %v8589_v54 }
 0x25f   : > { %5770 = vmatpush1.bf16.msra.mxu0 %v8602_v3 }
 0x260   : > { %5969 = vmatpush1.bf16.msra.mxu1 %v8587_v56  ;;  %5771 = vmatprep.subr.bf16.mxu0 %v8610_v5 }
 0x261   : > { %5970 = vmatprep.subr.bf16.mxu1 %v8595_v58 }
 0x263   : > { %5772 = vmatpush1.bf16.msra.mxu0 %v8608_v7 }
 0x264   : > { %5971 = vmatpush1.bf16.msra.mxu1 %v8593_v60  ;;  %5773 = vmatprep.subr.bf16.mxu0 %v8616_v9 }
 0x265   : > { %5972 = vmatprep.subr.bf16.mxu1 %v8601_v62 }
 0x267   : > { %5774 = vmatpush1.bf16.msra.mxu0 %v8614_v11 }
 0x268   : > { %5973 = vmatpush1.bf16.msra.mxu1 %v8599_v0  ;;  %5775 = vmatprep.subr.bf16.mxu0 %v8622_v13 }
 0x269   : > { %5974 = vmatprep.subr.bf16.mxu1 %v8607_v2 }
 0x26b   : > { %5776 = vmatpush1.bf16.msra.mxu0 %v8620_v15 }
 0x26c   : > { %5975 = vmatpush1.bf16.msra.mxu1 %v8605_v4  ;;  %5777 = vmatprep.subr.bf16.mxu0 %v8628_v18 }
 0x26d   : > { %5976 = vmatprep.subr.bf16.mxu1 %v8613_v6 }
 0x26f   : > { %5778 = vmatpush1.bf16.msra.mxu0 %v8626_v20 }
 0x270   : > { %5977 = vmatpush1.bf16.msra.mxu1 %v8611_v8  ;;  %5788 = vmatprep.subr.bf16.mxu0 %v8634_v25  ;;  %v1270_v8 = vld [vmem:[#allocation9 + $0x4] sm:$0x3] }
 0x271   : > { %5978 = vmatprep.subr.bf16.mxu1 %v8619_v10  ;;  %v10391_v17 = vrot.slane %v1270_v8, %v10311_v23 }
 0x274   : > { %5979 = vmatpush1.bf16.msra.mxu1 %v8617_v12  ;;  %v1551_v12 = vld [vmem:[#allocation9 + $0x6] sm:$0x3] }
 0x275   : > { %5980 = vmatprep.subr.bf16.mxu1 %v8625_v14  ;;  %v10395_v20 = vrot.slane %v1551_v12, %v10311_v23 }
 0x278   : > { %5981 = vmatpush1.bf16.msra.mxu1 %v8623_v16 }
 0x279   : > { %5982 = vmatprep.subr.bf16.mxu1 %v8631_v19 }
 0x27c   : > { %5983 = vmatpush1.bf16.msra.mxu1 %v8629_v21  ;;  %v10398_v21 = vrot.slane %v1270_v8, %v10314_v24 }
 0x27d   : > { %5993 = vmatprep.subr.bf16.mxu1 %v8637_v26 }
 0x2c8   : > { %v834_v32 = vpop.f32.mrb[8].mxu1  ;;  %v1115_v33 = vpop.f32.mrb[0].mxu0 }
 0x2c9   : > { %v10329_v34 = vadd.f32 %v834_v32, %v10317_v29  ;;  %v10332_v35 = vadd.f32 %v1115_v33, %v10320_v40  ;;  %v836_v36 = vpop.f32.mrb[9].mxu1  ;;  %v1117_v37 = vpop.f32.mrb[1].mxu0  ;;  %v10402_v33 = vrot.slane %v1551_v12, %v10314_v24 }
 0x2ca   : > { %v10335_v38 = vadd.f32 %v836_v36, %v10323_v30  ;;  %v10338_v39 = vadd.f32 %v1117_v37, %v10326_v31  ;;  %v838_v41 = vpop.f32.mrb[10].mxu1  ;;  %v1119_v42 = vpop.f32.mrb[2].mxu0 }
 0x2cb   : > { %v873_v43 = vmul.f32 0.5, %v10329_v34  ;;  %v1154_v44 = vmul.f32 0.5, %v10332_v35  ;;  %v10343_v45 = vadd.f32 %v838_v41, %v10317_v29  ;;  %v10346_v46 = vadd.f32 %v1119_v42, %v10320_v40  ;;  %v840_v47 = vpop.f32.mrb[11].mxu1  ;;  %v1121_v48 = vpop.f32.mrb[3].mxu0 }
 0x2cc   : > { %v874_v49 = vmul.f32 0.5, %v10335_v38  ;;  %v1155_v50 = vmul.f32 0.5, %v10338_v39  ;;  %v10351_v51 = vadd.f32 %v840_v47, %v10323_v30  ;;  %v10354_v52 = vadd.f32 %v1121_v48, %v10326_v31 }
 0x2cd   : > { %9400 = vtanh.f32 %v873_v43  ;;  %v875_v53 = vmul.f32 0.5, %v10343_v45  ;;  %v1156_v54 = vmul.f32 0.5, %v10346_v46 }
 0x2ce   : > { %9402 = vtanh.f32 %v1154_v44  ;;  %v876_v55 = vmul.f32 0.5, %v10351_v51  ;;  %v1157_v56 = vmul.f32 0.5, %v10354_v52 }
 0x2cf   : > { %9404 = vtanh.f32 %v874_v49 }
 0x2d0   : > { %9406 = vtanh.f32 %v1155_v50  ;;  %v844_v57 = vpop.f32.mrb[12].mxu1  ;;  %v1125_v58 = vpop.f32.mrb[4].mxu0 }
 0x2d1   : > { %9408 = vtanh.f32 %v875_v53  ;;  %v10361_v59 = vadd.f32 %v844_v57, %v10317_v29  ;;  %v10364_v60 = vadd.f32 %v1125_v58, %v10320_v40  ;;  %v846_v61 = vpop.f32.mrb[13].mxu1  ;;  %v1127_v62 = vpop.f32.mrb[5].mxu0 }
 0x2d2   : > { %9410 = vtanh.f32 %v1156_v54  ;;  %v10367_v63 = vadd.f32 %v846_v61, %v10323_v30  ;;  %v10370_v0 = vadd.f32 %v1127_v62, %v10326_v31  ;;  %v848_v1 = vpop.f32.mrb[14].mxu1  ;;  %v1129_v2 = vpop.f32.mrb[6].mxu0 }
 0x2d3   : > { %9412 = vtanh.f32 %v876_v55  ;;  %v877_v3 = vmul.f32 0.5, %v10361_v59  ;;  %v1158_v4 = vmul.f32 0.5, %v10364_v60  ;;  %v10375_v5 = vadd.f32 %v848_v1, %v10317_v29  ;;  %v850_v6 = vpop.f32.mrb[15].mxu1  ;;  %v1131_v7 = vpop.f32.mrb[7].mxu0 }
 0x2d4   : > { %9414 = vtanh.f32 %v1157_v56  ;;  %v878_v9 = vmul.f32 0.5, %v10367_v63  ;;  %v1159_v10 = vmul.f32 0.5, %v10370_v0  ;;  %v10380_v11 = vadd.f32 %v1129_v2, %v10320_v40 }
 0x2d5   : > { %9416 = vtanh.f32 %v877_v3  ;;  %v879_v13 = vmul.f32 0.5, %v10375_v5  ;;  %v10384_v14 = vadd.f32 %v850_v6, %v10323_v30  ;;  %v10387_v15 = vadd.f32 %v1131_v7, %v10326_v31 }
 0x2d6   : > { %9418 = vtanh.f32 %v1158_v4  ;;  %v1160_v16 = vmul.f32 0.5, %v10380_v11 }
 0x2d7   : > { %v9401_v18 = vpop.eup %9400  ;;  %9420 = vtanh.f32 %v878_v9  ;;  %v880_v19 = vmul.f32 0.5, %v10384_v14  ;;  %v1161_v27 = vmul.f32 0.5, %v10387_v15 }
 0x2d8   : > { %v9403_v25 = vpop.eup %9402  ;;  %v905_v26 = vmul.f32 0.5, %v9401_v18  ;;  %9422 = vtanh.f32 %v1159_v10  ;;  %v854_v28 = vpop.f32.mrb[16].mxu1 }
 0x2d9   : > { %v1135_v32 = vpop.f32.mrb[8].mxu0  ;;  %v9405_v36 = vpop.eup %9404  ;;  %v1186_v37 = vmul.f32 0.5, %v9403_v25  ;;  %9424 = vtanh.f32 %v879_v13  ;;  %v10405_v41 = vadd.f32 %v854_v28, %v10317_v29 }
 0x2da   : > { %v10408_v42 = vadd.f32 %v1135_v32, %v10320_v40  ;;  %v856_v43 = vpop.f32.mrb[17].mxu1  ;;  %v10410_v44 = vpop.f32.mrb[9].mxu0  ;;  %v921_v48 = vadd.f32 0.5, %v905_v26  ;;  %v906_v49 = vmul.f32 0.5, %v9405_v36  ;;  %9426 = vtanh.f32 %v1160_v16 }
 0x2db   : > { %v9407_v47 = vpop.eup %9406  ;;  %v10413_v50 = vadd.f32 %v856_v43, %v10323_v30  ;;  %v10415_v53 = vpop.f32.mrb[18].mxu1  ;;  %v1202_v56 = vadd.f32 0.5, %v1186_v37  ;;  %9428 = vtanh.f32 %v880_v19  ;;  %v881_v58 = vmul.f32 0.5, %v10405_v41 }
 0x2dc   : > { %v10417_v54 = vpop.f32.mrb[10].mxu0  ;;  %v9409_v55 = vpop.eup %9408  ;;  %v1187_v57 = vmul.f32 0.5, %v9407_v47  ;;  %v937_v2 = vmul.f32 %v921_v48, %v10329_v34  ;;  %v922_v3 = vadd.f32 0.5, %v906_v49  ;;  %9430 = vtanh.f32 %v1161_v27 }
 0x2dd   : > { %v10420_v61 = vpop.f32.mrb[19].mxu1  ;;  %v10422_v62 = vpop.f32.mrb[11].mxu0  ;;  %v907_v4 = vmul.f32 0.5, %v9409_v55  ;;  %v1218_v7 = vmul.f32 %v1202_v56, %v10332_v35  ;;  %9432 = vtanh.f32 %v881_v58  ;;  %v1162_v18 = vmul.f32 0.5, %v10408_v42 }
 0x2de   : > { %v9411_v1 = vpop.eup %9410  ;;  %v1203_v8 = vadd.f32 0.5, %v1187_v57  ;;  %v938_v12 = vmul.f32 %v922_v3, %v10335_v38  ;;  %v882_v27 = vmul.f32 0.5, %v10413_v50 }
 0x2df   : > { %v9413_v6 = vpop.eup %9412  ;;  %v1188_v9 = vmul.f32 0.5, %v9411_v1  ;;  %v923_v13 = vadd.f32 0.5, %v907_v4  ;;  %9434 = vtanh.f32 %v1162_v18 }
 0x2e0   : > { %v9415_v10 = vpop.eup %9414  ;;  %v908_v16 = vmul.f32 0.5, %v9413_v6  ;;  %v1219_v25 = vmul.f32 %v1203_v8, %v10338_v39  ;;  %v10431_v37 = vpop.f32.mrb[20].mxu1  ;;  %9436 = vtanh.f32 %v882_v27 }
 0x2e1   : > { %v9417_v19 = vpop.eup %9416  ;;  %v1204_v34 = vadd.f32 0.5, %v1188_v9  ;;  %v1189_v26 = vmul.f32 0.5, %v9415_v10  ;;  %v939_v35 = vmul.f32 %v923_v13, %v10343_v45  ;;  %v10433_v38 = vpop.f32.mrb[12].mxu0 }
 0x2e2   : > { %v9419_v28 = vpop.eup %9418  ;;  %v924_v32 = vadd.f32 0.5, %v908_v16  ;;  %v909_v36 = vmul.f32 0.5, %v9417_v19  ;;  %v10436_v39 = vpop.f32.mrb[21].mxu1 }
 0x2e3   : > { %v9421_v43 = vpop.eup %9420  ;;  %v1220_v47 = vmul.f32 %v1204_v34, %v10346_v46  ;;  %v1205_v48 = vadd.f32 0.5, %v1189_v26  ;;  %v1190_v49 = vmul.f32 0.5, %v9419_v28  ;;  %v10438_v55 = vpop.f32.mrb[13].mxu0  ;;  %v953_v57 = vadd.f32 %v939_v35, %v937_v2 }
 0x2e4   : > { %v9423_v56 = vpop.eup %9422  ;;  %v940_v45 = vmul.f32 %v924_v32, %v10351_v51  ;;  %v925_v58 = vadd.f32 0.5, %v909_v36  ;;  %v910_v1 = vmul.f32 0.5, %v9421_v43  ;;  %v10441_v3 = vpop.f32.mrb[22].mxu1 }
 0x2e5   : > { %v10443_v4 = vpop.f32.mrb[14].mxu0  ;;  %v9425_v6 = vpop.eup %9424  ;;  %v1234_v8 = vadd.f32 %v1220_v47, %v1218_v7  ;;  %v1221_v46 = vmul.f32 %v1205_v48, %v10354_v52  ;;  %v1206_v9 = vadd.f32 0.5, %v1190_v49  ;;  %v1191_v10 = vmul.f32 0.5, %v9423_v56 }
 0x2e6   : > { %v10446_v13 = vpop.f32.mrb[23].mxu1  ;;  %v10448_v16 = vpop.f32.mrb[15].mxu0  ;;  %v960_v2 = vadd.f32 %v940_v45, %v938_v12  ;;  %v941_v51 = vmul.f32 %v925_v58, %v10361_v59  ;;  %v926_v19 = vadd.f32 0.5, %v910_v1  ;;  %v911_v34 = vmul.f32 0.5, %v9425_v6 }
 0x2e7   : > { %v9427_v18 = vpop.eup %9426  ;;  %v1241_v27 = vadd.f32 %v1221_v46, %v1219_v25  ;;  %v1222_v28 = vmul.f32 %v1206_v9, %v10364_v60  ;;  %v1207_v35 = vadd.f32 0.5, %v1191_v10 }
 0x2e8   : > { %v9429_v26 = vpop.eup %9428  ;;  %v1192_v7 = vmul.f32 0.5, %v9427_v18  ;;  %v954_v52 = vadd.f32 %v953_v57, %v941_v51  ;;  %v942_v36 = vmul.f32 %v926_v19, %v10367_v63  ;;  %v927_v43 = vadd.f32 0.5, %v911_v34  ;;  %v10455_v60 = vpop.f32.mrb[24].mxu1 }
 0x2e9   : > { %v9431_v32 = vpop.eup %9430  ;;  %v912_v47 = vmul.f32 0.5, %v9429_v26  ;;  %v1235_v49 = vadd.f32 %v1234_v8, %v1222_v28  ;;  %v1223_v12 = vmul.f32 %v1207_v35, %v10370_v0  ;;  %v10457_v6 = vpop.f32.mrb[16].mxu0  ;;  %v10462_v8 = vadd.f32 %v10410_v44, %v10326_v31 }
 0x2ea   : > { %v9433_v48 = vpop.eup %9432  ;;  %v1208_v56 = vadd.f32 0.5, %v1192_v7  ;;  %v1193_v59 = vmul.f32 0.5, %v9431_v32  ;;  %v961_v45 = vadd.f32 %v960_v2, %v942_v36  ;;  %v943_v58 = vmul.f32 %v927_v43, %v10375_v5  ;;  %v10464_v0 = vpop.f32.mrb[25].mxu1 }
 0x2eb   : > { %v928_v25 = vadd.f32 0.5, %v912_v47  ;;  %v913_v1 = vmul.f32 0.5, %v9433_v48  ;;  %v1242_v57 = vadd.f32 %v1241_v27, %v1223_v12  ;;  %v10466_v9 = vpop.f32.mrb[17].mxu0  ;;  %v9435_v10 = vpop.eup %9434  ;;  %v10471_v51 = vadd.f32 %v10415_v53, %v10317_v29 }
 0x2ec   : > { %v1224_v63 = vmul.f32 %v1208_v56, %v10380_v11  ;;  %v1209_v46 = vadd.f32 0.5, %v1193_v59  ;;  %v955_v5 = vadd.f32 %v954_v52, %v943_v58  ;;  %v10473_v19 = vpop.f32.mrb[26].mxu1  ;;  %v10475_v11 = vpop.f32.mrb[18].mxu0  ;;  %v1194_v27 = vmul.f32 0.5, %v9435_v10 }
 0x2ed   : > { %v944_v18 = vmul.f32 %v928_v25, %v10384_v14  ;;  %v929_v2 = vadd.f32 0.5, %v913_v1  ;;  %v9437_v34 = vpop.eup %9436  ;;  %v1163_v28 = vmul.f32 0.5, %v10462_v8  ;;  %v10479_v35 = vpop.f32.mrb[27].mxu1  ;;  %v883_v52 = vmul.f32 0.5, %v10471_v51 }
 0x2ee   : > { %v1236_v44 = vadd.f32 %v1235_v49, %v1224_v63  ;;  %v1225_v26 = vmul.f32 %v1209_v46, %v10387_v15  ;;  %v10481_v7 = vpop.f32.mrb[19].mxu0  ;;  %v914_v53 = vmul.f32 0.5, %v9437_v34  ;;  %v1210_v43 = vadd.f32 0.5, %v1194_v27 }
 0x2ef   : > { %v962_v14 = vadd.f32 %v961_v45, %v944_v18  ;;  %v945_v32 = vmul.f32 %v929_v2, %v10405_v41  ;;  %9438 = vtanh.f32 %v1163_v28  ;;  %v10489_v15 = vadd.f32 %v10417_v54, %v10320_v40 }
 0x2f0   : > { %v10485_v36 = vadd.f32 %v1242_v57, %v1225_v26  ;;  %v930_v48 = vadd.f32 0.5, %v914_v53  ;;  %9440 = vtanh.f32 %v883_v52  ;;  %v10495_v49 = vadd.f32 %v10420_v61, %v10323_v30  ;;  %v10517_v58 = vpop.f32.mrb[28].mxu1 }
 0x2f1   : > { %v10491_v47 = vadd.f32 %v955_v5, %v945_v32  ;;  %v1226_v41 = vmul.f32 %v1210_v43, %v10408_v42  ;;  %v1164_v12 = vmul.f32 0.5, %v10489_v15  ;;  %v10501_v56 = vadd.f32 %v10422_v62, %v10326_v31  ;;  %v10519_v62 = vpop.f32.mrb[20].mxu0  ;;  %v10525_v1 = vpop.f32.mrb[29].mxu1 }
 0x2f2   : > { %v10505_v54 = vadd.f32 %v10431_v37, %v10317_v29  ;;  %v946_v59 = vmul.f32 %v930_v48, %v10413_v50  ;;  %v884_v45 = vmul.f32 0.5, %v10495_v49  ;;  %v10511_v61 = vadd.f32 %v10433_v38, %v10320_v40  ;;  %v10527_v57 = vpop.f32.mrb[21].mxu0  ;;  %v10533_v46 = vpop.f32.mrb[30].mxu1 }
 0x2f3   : > { %v10515_v42 = vadd.f32 %v10436_v39, %v10323_v30  ;;  %v10521_v25 = vadd.f32 %v1236_v44, %v1226_v41  ;;  %9442 = vtanh.f32 %v1164_v12  ;;  %v1165_v37 = vmul.f32 0.5, %v10501_v56  ;;  %v10535_v10 = vpop.f32.mrb[22].mxu0  ;;  %v10549_v34 = vpop.f32.mrb[31].mxu1 }
 0x2f4   : > { %v885_v50 = vmul.f32 0.5, %v10505_v54  ;;  %v10529_v38 = vadd.f32 %v962_v14, %v946_v59  ;;  %9444 = vtanh.f32 %v884_v45  ;;  %v1166_v39 = vmul.f32 0.5, %v10511_v61  ;;  %v10551_v44 = vpop.f32.mrb[23].mxu0 }
 0x2f5   : > { %v886_v63 = vmul.f32 0.5, %v10515_v42  ;;  %9446 = vtanh.f32 %v1165_v37  ;;  %v10539_v5 = vadd.f32 %v10438_v55, %v10326_v31  ;;  %v10543_v18 = vadd.f32 %v10441_v3, %v10317_v29 }
 0x2f6   : > { %v10547_v2 = vadd.f32 %v10443_v4, %v10320_v40  ;;  %9448 = vtanh.f32 %v885_v50  ;;  %v10555_v26 = vadd.f32 %v10446_v13, %v10323_v30  ;;  %v10559_v55 = vadd.f32 %v10448_v16, %v10326_v31 }
 0x2f7   : > { %v10563_v29 = vadd.f32 %v10455_v60, %v10391_v17  ;;  %9450 = vtanh.f32 %v1166_v39  ;;  %v1167_v40 = vmul.f32 0.5, %v10539_v5  ;;  %v887_v3 = vmul.f32 0.5, %v10543_v18 }
 0x2f8   : > { %v1168_v4 = vmul.f32 0.5, %v10547_v2  ;;  %9452 = vtanh.f32 %v886_v63  ;;  %v888_v27 = vmul.f32 0.5, %v10555_v26  ;;  %v1169_v30 = vmul.f32 0.5, %v10559_v55  ;;  %v10593_v43 = vpop.f32.mrb[24].mxu0 }
 0x2f9   : > { %v1435_v13 = vmul.f32 0.5, %v10563_v29  ;;  %v9439_v31 = vpop.eup %9438  ;;  %9454 = vtanh.f32 %v1167_v40  ;;  %v10573_v16 = vadd.f32 %v10457_v6, %v10395_v20  ;;  %v10577_v60 = vadd.f32 %v10464_v0, %v10398_v21  ;;  %v10591_v6 = vpop.f32.mrb[32].mxu1 }
 0x2fa   : > { %v10581_v28 = vadd.f32 %v10466_v9, %v10402_v33  ;;  %v9441_v14 = vpop.eup %9440  ;;  %v1195_v32 = vmul.f32 0.5, %v9439_v31  ;;  %9456 = vtanh.f32 %v887_v3  ;;  %v10585_v53 = vadd.f32 %v10473_v19, %v10391_v17  ;;  %v10596_v48 = vpop.f32.mrb[33].mxu1 }
 0x2fb   : > { %v10589_v52 = vadd.f32 %v10475_v11, %v10395_v20  ;;  %v915_v0 = vmul.f32 0.5, %v9441_v14  ;;  %9458 = vtanh.f32 %v1168_v4  ;;  %v1716_v9 = vmul.f32 0.5, %v10573_v16  ;;  %v10598_v41 = vpop.f32.mrb[25].mxu0  ;;  %v10601_v59 = vpop.f32.mrb[34].mxu1 }
 0x2fc   : > { %v1211_v12 = vadd.f32 0.5, %v1195_v32  ;;  %9460 = vtanh.f32 %v888_v27  ;;  %v1436_v19 = vmul.f32 0.5, %v10577_v60  ;;  %11229 = vst [vmem:[#allocation36_spill] sm:$0xff] %v10601_v59  ;;  %v10603_v11 = vpop.f32.mrb[26].mxu0  ;;  %v1717_v50 = vmul.f32 0.5, %v10581_v28  ;;  %v10607_v63 = vpop.f32.mrb[35].mxu1 }
 0x2fd   : > { %11230 = vst [vmem:[#allocation37_spill] sm:$0xff] %v10603_v11  ;;  %v9443_v45 = vpop.eup %9442  ;;  %v931_v37 = vadd.f32 0.5, %v915_v0  ;;  %9462 = vtanh.f32 %v1169_v30  ;;  %v1437_v39 = vmul.f32 0.5, %v10585_v53  ;;  %11231 = vst [vmem:[#allocation38_spill] sm:$0xff] %v10607_v63  ;;  %v10609_v40 = vpop.f32.mrb[27].mxu0  ;;  %v1718_v31 = vmul.f32 0.5, %v10589_v52 }
 0x2fe   : > { %11232 = vst [vmem:[#allocation39_spill] sm:$0xff] %v10609_v40  ;;  %v9445_v3 = vpop.eup %9444  ;;  %v1227_v4 = vmul.f32 %v1211_v12, %v10462_v8  ;;  %v1196_v27 = vmul.f32 0.5, %v9443_v45  ;;  %9464 = vtanh.f32 %v1435_v13  ;;  %v10616_v30 = vadd.f32 %v10479_v35, %v10398_v21 }
 0x2ff   : > { %v9447_v14 = vpop.eup %9446  ;;  %v947_v32 = vmul.f32 %v931_v37, %v10471_v51  ;;  %v916_v0 = vmul.f32 0.5, %v9445_v3  ;;  %9466 = vtanh.f32 %v1716_v9 }
 0x300   : > { %v9449_v22 = vpop.eup %9448  ;;  %v1244_v63 = vadd.f32 %v10485_v36, %v1227_v4  ;;  %v1212_v40 = vadd.f32 0.5, %v1196_v27  ;;  %v1197_v11 = vmul.f32 0.5, %v9447_v14  ;;  %9468 = vtanh.f32 %v1436_v19  ;;  %v10621_v35 = vpop.f32.mrb[36].mxu1 }
 0x301   : > { %v9451_v8 = vpop.eup %9450  ;;  %v957_v13 = vadd.f32 %v10491_v47, %v947_v32  ;;  %v932_v12 = vadd.f32 0.5, %v916_v0  ;;  %v917_v45 = vmul.f32 0.5, %v9449_v22  ;;  %9470 = vtanh.f32 %v1717_v50  ;;  %v10623_v3 = vpop.f32.mrb[28].mxu0 }
 0x302   : > { %v9453_v59 = vpop.eup %9452  ;;  %v1228_v51 = vmul.f32 %v1212_v40, %v10489_v15  ;;  %v1213_v9 = vadd.f32 0.5, %v1197_v11  ;;  %v1198_v37 = vmul.f32 0.5, %v9451_v8  ;;  %9472 = vtanh.f32 %v1437_v39  ;;  %v10626_v47 = vpop.f32.mrb[37].mxu1 }
 0x303   : > { %v9455_v36 = vpop.eup %9454  ;;  %v948_v4 = vmul.f32 %v932_v12, %v10495_v49  ;;  %v933_v19 = vadd.f32 0.5, %v917_v45  ;;  %v918_v27 = vmul.f32 0.5, %v9453_v59  ;;  %9474 = vtanh.f32 %v1718_v31  ;;  %v10628_v22 = vpop.f32.mrb[29].mxu0 }
 0x304   : > { %11233 = vst [vmem:[#allocation40_spill] sm:$0xff] %v10628_v22  ;;  %v9457_v50 = vpop.eup %9456  ;;  %v1238_v15 = vadd.f32 %v10521_v25, %v1228_v51  ;;  %v1229_v11 = vmul.f32 %v1213_v9, %v10501_v56  ;;  %v1214_v39 = vadd.f32 0.5, %v1198_v37  ;;  %v1199_v40 = vmul.f32 0.5, %v9455_v36  ;;  %v10632_v14 = vpop.f32.mrb[38].mxu1 }
 0x305   : > { %11234 = vst [vmem:[#allocation41_spill] sm:$0xff] %v10632_v14  ;;  %v10634_v32 = vpop.f32.mrb[30].mxu0  ;;  %v9459_v0 = vpop.eup %9458  ;;  %v964_v49 = vadd.f32 %v10529_v38, %v948_v4  ;;  %v949_v59 = vmul.f32 %v933_v19, %v10505_v54  ;;  %v934_v31 = vadd.f32 0.5, %v918_v27  ;;  %v919_v8 = vmul.f32 0.5, %v9457_v50 }
 0x306   : > { %11235 = vst [vmem:[#allocation42_spill] sm:$0xff] %v10634_v32  ;;  %v10638_v12 = vpop.f32.mrb[39].mxu1  ;;  %v10640_v45 = vpop.f32.mrb[31].mxu0  ;;  %v1245_v51 = vadd.f32 %v1244_v63, %v1229_v11  ;;  %v1230_v56 = vmul.f32 %v1214_v39, %v10511_v61  ;;  %v1215_v9 = vadd.f32 0.5, %v1199_v40  ;;  %v1200_v37 = vmul.f32 0.5, %v9459_v0 }
 0x307   : > { %11236 = vst [vmem:[#allocation43_spill] sm:$0xff] %v10638_v12  ;;  %11237 = vst [vmem:[#allocation44_spill] sm:$0xff] %v10640_v45  ;;  %v9461_v25 = vpop.eup %9460  ;;  %v958_v14 = vadd.f32 %v957_v13, %v949_v59  ;;  %v950_v32 = vmul.f32 %v934_v31, %v10515_v42  ;;  %v935_v22 = vadd.f32 0.5, %v919_v8  ;;  %v1832_v59 = vld [vmem:[#allocation9 + $0x8] sm:$0x3] }
 0x308   : > { %v9463_v36 = vpop.eup %9462  ;;  %v920_v38 = vmul.f32 0.5, %v9461_v25  ;;  %v1239_v54 = vadd.f32 %v1238_v15, %v1230_v56  ;;  %v1231_v19 = vmul.f32 %v1215_v9, %v10539_v5  ;;  %v1216_v27 = vadd.f32 0.5, %v1200_v37  ;;  %v10647_v31 = vpop.f32.mrb[40].mxu1 }
 0x309   : > { %v9465_v4 = vpop.eup %9464  ;;  %v1201_v50 = vmul.f32 0.5, %v9463_v36  ;;  %v965_v45 = vadd.f32 %v964_v49, %v950_v32  ;;  %v951_v63 = vmul.f32 %v935_v22, %v10543_v18  ;;  %v10650_v56 = vpop.f32.mrb[41].mxu1  ;;  %v1438_v36 = vmul.f32 0.5, %v10616_v30 }
 0x30a   : > { %v9467_v12 = vpop.eup %9466  ;;  %v936_v11 = vadd.f32 0.5, %v920_v38  ;;  %v1467_v61 = vmul.f32 0.5, %v9465_v4  ;;  %v1246_v40 = vadd.f32 %v1245_v51, %v1231_v19  ;;  %v1232_v13 = vmul.f32 %v1216_v27, %v10547_v2  ;;  %v10655_v2 = vpop.f32.mrb[42].mxu1 }
 0x30b   : > { %v9469_v39 = vpop.eup %9468  ;;  %v1217_v0 = vadd.f32 0.5, %v1201_v50  ;;  %v1748_v42 = vmul.f32 0.5, %v9467_v12  ;;  %v959_v8 = vadd.f32 %v958_v14, %v951_v63  ;;  %v10659_v14 = vrot.slane %v1832_v59, %v10311_v23 }
 0x30c   : > { %v9471_v15 = vpop.eup %9470  ;;  %v952_v5 = vmul.f32 %v936_v11, %v10555_v26  ;;  %v1483_v25 = vadd.f32 0.5, %v1467_v61  ;;  %v10652_v18 = vadd.f32 %v1239_v54, %v1232_v13  ;;  %v1468_v49 = vmul.f32 0.5, %v9469_v39  ;;  %v10661_v26 = vpop.f32.mrb[43].mxu1 }
 0x30d   : > { %v9473_v32 = vpop.eup %9472  ;;  %v1233_v22 = vmul.f32 %v1217_v0, %v10559_v55  ;;  %v1749_v51 = vmul.f32 0.5, %v9471_v15  ;;  %v2110_v9 = vrot.slane %v959_v8, 4  ;;  %v1764_v4 = vadd.f32 0.5, %v1748_v42 }
 0x30e   : > { %11238 = vst [vmem:[#allocation45_spill] sm:$0xff] %v10652_v18  ;;  %v9475_v12 = vpop.eup %9474  ;;  %v966_v37 = vadd.f32 %v965_v45, %v952_v5  ;;  %v10665_v54 = vadd.f32 %v10481_v7, %v10402_v33  ;;  %v10668_v55 = vrot.slane %v1832_v59, %v10314_v24  ;;  %v1499_v45 = vmul.f32 %v1483_v25, %v10563_v29 }
 0x30f   : > { %v1247_v38 = vadd.f32 %v1246_v40, %v1233_v22  ;;  %v2111_v19 = vadd.f32 %v2110_v9, %v959_v8  ;;  %v1469_v50 = vmul.f32 0.5, %v9473_v32  ;;  %v1484_v11 = vadd.f32 0.5, %v1468_v49 }
 0x310   : > { %v2116_v27 = vrot.slane %v966_v37, 4  ;;  %v1765_v61 = vadd.f32 0.5, %v1749_v51  ;;  %v1750_v39 = vmul.f32 0.5, %v9475_v12  ;;  %9476 = vtanh.f32 %v1438_v36  ;;  %v10673_v5 = vpop.f32.mrb[44].mxu1 }
 0x311   : > { %v2128_v63 = vrot.slane %v1247_v38, 4  ;;  %v2112_v13 = vrot.slane %v2111_v19, 2  ;;  %v1485_v40 = vadd.f32 0.5, %v1469_v50  ;;  %v1780_v7 = vmul.f32 %v1764_v4, %v10573_v16  ;;  %v10680_v32 = vpop.f32.mrb[45].mxu1 }
 0x312   : > { %v2117_v0 = vadd.f32 %v2116_v27, %v966_v37  ;;  %v1766_v15 = vadd.f32 0.5, %v1750_v39  ;;  %v1719_v59 = vmul.f32 0.5, %v10665_v54  ;;  %v10678_v25 = vadd.f32 %v10517_v58, %v10391_v17  ;;  %v10689_v12 = vpop.f32.mrb[46].mxu1 }
 0x313   : > { %v2129_v42 = vadd.f32 %v2128_v63, %v1247_v38  ;;  %v2113_v8 = vadd.f32 %v2112_v13, %v2111_v19  ;;  %v1501_v29 = vmul.f32 %v1485_v40, %v10585_v53  ;;  %v10683_v49 = vmul.f32 %v1484_v11, %v10577_v60  ;;  %v10694_v36 = vpop.f32.mrb[47].mxu1 }
 0x314   : > { %v2118_v22 = vrot.slane %v2117_v0, 2  ;;  %v10686_v16 = vmul.f32 %v1765_v61, %v10581_v28  ;;  %v1782_v51 = vmul.f32 %v1766_v15, %v10589_v52  ;;  %9478 = vtanh.f32 %v1719_v59 }
 0x315   : > { %v2114_v9 = vrot.slane %v2113_v8, 1  ;;  %v2130_v37 = vrot.slane %v2129_v42, 2  ;;  %v10691_v53 = vadd.f32 %v1501_v29, %v1499_v45  ;;  %v1439_v58 = vmul.f32 0.5, %v10678_v25 }
 0x316   : > { %v10696_v38 = vadd.f32 %v2118_v22, %v2117_v0  ;;  %v10698_v60 = vadd.f32 %v1782_v51, %v1780_v7  ;;  %v10702_v28 = vadd.f32 %v10519_v62, %v10395_v20  ;;  %v10706_v52 = vadd.f32 %v10525_v1, %v10398_v21 }
 0x317   : > { %v2115_v4 = vadd.f32 %v2114_v9, %v2113_v8  ;;  %9480 = vtanh.f32 %v1439_v58  ;;  %v10710_v19 = vadd.f32 %v10527_v57, %v10402_v33  ;;  %v10714_v27 = vadd.f32 %v10533_v46, %v10391_v17  ;;  %v11243_v58 = vld [vmem:[#allocation37_spill] sm:$0xff] }
 0x318   : > { %v1720_v45 = vmul.f32 0.5, %v10702_v28  ;;  %v1440_v50 = vmul.f32 0.5, %v10706_v52  ;;  %v10720_v62 = vadd.f32 %v10535_v10, %v10395_v20  ;;  %v10724_v1 = vadd.f32 %v10549_v34, %v10398_v21  ;;  %v10741_v34 = vpop.f32.mrb[48].mxu1 }
 0x319   : > { %v10726_v63 = vadd.f32 %v2130_v37, %v2129_v42  ;;  %v1721_v57 = vmul.f32 0.5, %v10710_v19  ;;  %v1441_v11 = vmul.f32 0.5, %v10714_v27  ;;  %v10732_v46 = vadd.f32 %v10551_v44, %v10402_v33  ;;  %v10749_v42 = vpop.f32.mrb[49].mxu1 }
 0x31a   : > { %v10734_v61 = vmul.f32 0.015625, %v2115_v4  ;;  %9482 = vtanh.f32 %v1720_v45  ;;  %v1722_v10 = vmul.f32 0.5, %v10720_v62  ;;  %v10739_v39 = vadd.f32 %v10591_v6, %v10391_v17  ;;  %v9477_v13 = vpop.eup %9476  ;;  %11239 = vst [vmem:[#allocation46_spill] sm:$0xff] %v10749_v42  ;;  %v10756_v59 = vpop.f32.mrb[50].mxu1 }
 0x31b   : > { %9484 = vtanh.f32 %v1440_v50  ;;  %v1442_v0 = vmul.f32 0.5, %v10724_v1  ;;  %v1723_v40 = vmul.f32 0.5, %v10732_v46  ;;  %v10747_v44 = vadd.f32 %v10593_v43, %v10395_v20  ;;  %11240 = vst [vmem:[#allocation47_spill] sm:$0xff] %v10756_v59  ;;  %v11241_v43 = vld [vmem:[#allocation36_spill] sm:$0xff]  ;;  %v10767_v51 = vpop.f32.mrb[51].mxu1 }
 0x31c   : > { %v1470_v7 = vmul.f32 0.5, %v9477_v13  ;;  %9486 = vtanh.f32 %v1721_v57  ;;  %v1443_v15 = vmul.f32 0.5, %v10739_v39  ;;  %v10754_v6 = vadd.f32 %v10596_v48, %v10398_v21  ;;  %11242 = vst [vmem:[#allocation36_spill] sm:$0xff] %v10767_v51  ;;  %v11244_v13 = vld [vmem:[#allocation38_spill] sm:$0xff] }
 0x31d   : > { %9488 = vtanh.f32 %v1441_v11  ;;  %v1724_v8 = vmul.f32 0.5, %v10747_v44  ;;  %v10761_v22 = vadd.f32 %v10598_v41, %v10402_v33  ;;  %v10765_v29 = vadd.f32 %v11241_v43, %v10391_v17 }
 0x31e   : > { %v9479_v9 = vpop.eup %9478  ;;  %v1486_v37 = vadd.f32 0.5, %v1470_v7  ;;  %9490 = vtanh.f32 %v1722_v10  ;;  %v1444_v48 = vmul.f32 0.5, %v10754_v6  ;;  %v10772_v4 = vadd.f32 %v11243_v58, %v10395_v20  ;;  %v11245_v58 = vld [vmem:[#allocation39_spill] sm:$0xff] }
 0x31f   : > { %v1751_v45 = vmul.f32 0.5, %v9479_v9  ;;  %9492 = vtanh.f32 %v1442_v0  ;;  %v1725_v41 = vmul.f32 0.5, %v10761_v22  ;;  %v1445_v50 = vmul.f32 0.5, %v10765_v29 }
 0x320   : > { %v1502_v57 = vmul.f32 %v1486_v37, %v10616_v30  ;;  %9494 = vtanh.f32 %v1723_v40  ;;  %v1726_v11 = vmul.f32 0.5, %v10772_v4  ;;  %v10780_v10 = vadd.f32 %v11244_v13, %v10398_v21  ;;  %v10792_v24 = vpop.f32.mrb[52].mxu1 }
 0x321   : > { %v9481_v7 = vpop.eup %9480  ;;  %v1767_v43 = vadd.f32 0.5, %v1751_v45  ;;  %9496 = vtanh.f32 %v1443_v15  ;;  %v10784_v9 = vadd.f32 %v11245_v58, %v10402_v33  ;;  %v10788_v0 = vadd.f32 %v10621_v35, %v10391_v17  ;;  %11246 = vst [vmem:[#allocation37_spill] sm:$0xff] %v10792_v24  ;;  %v10797_v58 = vpop.f32.mrb[53].mxu1 }
 0x322   : > { %v1522_v30 = vadd.f32 %v1502_v57, %v10683_v49  ;;  %v1471_v40 = vmul.f32 0.5, %v9481_v7  ;;  %9498 = vtanh.f32 %v1724_v8  ;;  %v1446_v37 = vmul.f32 0.5, %v10780_v10  ;;  %11247 = vst [vmem:[#allocation38_spill] sm:$0xff] %v10797_v58  ;;  %v10807_v57 = vpop.f32.mrb[54].mxu1 }
 0x323   : > { %v1783_v13 = vmul.f32 %v1767_v43, %v10665_v54  ;;  %9500 = vtanh.f32 %v1444_v48  ;;  %v1727_v15 = vmul.f32 0.5, %v10784_v9  ;;  %v1447_v45 = vmul.f32 0.5, %v10788_v0  ;;  %11248 = vst [vmem:[#allocation39_spill] sm:$0xff] %v10807_v57  ;;  %v11249_v43 = vld [vmem:[#allocation40_spill] sm:$0xff] }
 0x324   : > { %v9483_v23 = vpop.eup %9482  ;;  %v1487_v35 = vadd.f32 0.5, %v1471_v40  ;;  %9502 = vtanh.f32 %v1725_v41  ;;  %v10801_v49 = vadd.f32 %v10623_v3, %v10395_v20  ;;  %v10805_v8 = vadd.f32 %v10626_v47, %v10398_v21  ;;  %v10814_v41 = vpop.f32.mrb[55].mxu1 }
 0x325   : > { %v9485_v54 = vpop.eup %9484  ;;  %v1803_v48 = vadd.f32 %v1783_v13, %v10686_v16  ;;  %v1752_v7 = vmul.f32 0.5, %v9483_v23  ;;  %9504 = vtanh.f32 %v1445_v50  ;;  %v10812_v18 = vadd.f32 %v11249_v43, %v10402_v33  ;;  %11250 = vst [vmem:[#allocation40_spill] sm:$0xff] %v10814_v41 }
 0x326   : > { %v9487_v40 = vpop.eup %9486  ;;  %v1503_v3 = vmul.f32 %v1487_v35, %v10678_v25  ;;  %v1472_v58 = vmul.f32 0.5, %v9485_v54  ;;  %9506 = vtanh.f32 %v1726_v11  ;;  %v1728_v47 = vmul.f32 0.5, %v10801_v49 }
 0x327   : > { %v9489_v24 = vpop.eup %9488  ;;  %v1768_v57 = vadd.f32 0.5, %v1752_v7  ;;  %v1753_v51 = vmul.f32 0.5, %v9487_v40  ;;  %9508 = vtanh.f32 %v1446_v37  ;;  %v10819_v23 = vmul.f32 0.5, %v10805_v8 }
 0x328   : > { %v9491_v16 = vpop.eup %9490  ;;  %v1516_v50 = vadd.f32 %v10691_v53, %v1503_v3  ;;  %v1488_v13 = vadd.f32 0.5, %v1472_v58  ;;  %v1473_v43 = vmul.f32 0.5, %v9489_v24  ;;  %9510 = vtanh.f32 %v1727_v15 }
 0x329   : > { %v9493_v41 = vpop.eup %9492  ;;  %v1784_v25 = vmul.f32 %v1768_v57, %v10702_v28  ;;  %v1769_v35 = vadd.f32 0.5, %v1753_v51  ;;  %v1754_v11 = vmul.f32 0.5, %v9491_v16  ;;  %9512 = vtanh.f32 %v1447_v45 }
 0x32a   : > { %v9495_v54 = vpop.eup %9494  ;;  %v1504_v7 = vmul.f32 %v1488_v13, %v10706_v52  ;;  %v1489_v40 = vadd.f32 0.5, %v1473_v43  ;;  %v1474_v37 = vmul.f32 0.5, %v9493_v41  ;;  %9514 = vtanh.f32 %v1728_v47 }
 0x32b   : > { %v9497_v59 = vpop.eup %9496  ;;  %v1797_v42 = vadd.f32 %v10698_v60, %v1784_v25  ;;  %v1785_v53 = vmul.f32 %v1769_v35, %v10710_v19  ;;  %v1770_v58 = vadd.f32 0.5, %v1754_v11  ;;  %v1755_v24 = vmul.f32 0.5, %v9495_v54 }
 0x32c   : > { %v9499_v15 = vpop.eup %9498  ;;  %v1523_v3 = vadd.f32 %v1522_v30, %v1504_v7  ;;  %v1505_v28 = vmul.f32 %v1489_v40, %v10714_v27  ;;  %v1490_v51 = vadd.f32 0.5, %v1474_v37  ;;  %v1475_v57 = vmul.f32 0.5, %v9497_v59 }
 0x32d   : > { %v9501_v45 = vpop.eup %9500  ;;  %v1804_v16 = vadd.f32 %v1803_v48, %v1785_v53  ;;  %v1786_v52 = vmul.f32 %v1770_v58, %v10720_v62  ;;  %v1771_v13 = vadd.f32 0.5, %v1755_v24  ;;  %v1756_v41 = vmul.f32 0.5, %v9499_v15 }
 0x32e   : > { %v9503_v47 = vpop.eup %9502  ;;  %v1517_v43 = vadd.f32 %v1516_v50, %v1505_v28  ;;  %v1506_v60 = vmul.f32 %v1490_v51, %v10724_v1  ;;  %v1491_v25 = vadd.f32 0.5, %v1475_v57  ;;  %v1476_v19 = vmul.f32 0.5, %v9501_v45 }
 0x32f   : > { %v9505_v35 = vpop.eup %9504  ;;  %v1798_v11 = vadd.f32 %v1797_v42, %v1786_v52  ;;  %v1787_v30 = vmul.f32 %v1771_v13, %v10732_v46  ;;  %v1772_v54 = vadd.f32 0.5, %v1756_v41  ;;  %v1757_v27 = vmul.f32 0.5, %v9503_v47 }
 0x330   : > { %v9507_v7 = vpop.eup %9506  ;;  %v1524_v59 = vadd.f32 %v1523_v3, %v1506_v60  ;;  %v1507_v48 = vmul.f32 %v1491_v25, %v10739_v39  ;;  %v1492_v40 = vadd.f32 0.5, %v1476_v19  ;;  %v1477_v62 = vmul.f32 0.5, %v9505_v35 }
 0x331   : > { %v9509_v37 = vpop.eup %9508  ;;  %v1805_v53 = vadd.f32 %v1804_v16, %v1787_v30  ;;  %v1788_v50 = vmul.f32 %v1772_v54, %v10747_v44  ;;  %v1773_v58 = vadd.f32 0.5, %v1757_v27  ;;  %v1758_v1 = vmul.f32 0.5, %v9507_v7 }
 0x332   : > { %v9511_v24 = vpop.eup %9510  ;;  %v1518_v15 = vadd.f32 %v1517_v43, %v1507_v48  ;;  %v1508_v42 = vmul.f32 %v1492_v40, %v10754_v6  ;;  %v1493_v28 = vadd.f32 0.5, %v1477_v62  ;;  %v1478_v46 = vmul.f32 0.5, %v9509_v37  ;;  %v11254_v37 = vld [vmem:[#allocation44_spill] sm:$0xff] }
 0x333   : > { %v9513_v51 = vpop.eup %9512  ;;  %v1799_v57 = vadd.f32 %v1798_v11, %v1788_v50  ;;  %v1789_v3 = vmul.f32 %v1773_v58, %v10761_v22  ;;  %v1774_v45 = vadd.f32 0.5, %v1758_v1  ;;  %v1759_v39 = vmul.f32 0.5, %v9511_v24 }
 0x334   : > { %v9515_v52 = vpop.eup %9514  ;;  %v1525_v13 = vadd.f32 %v1524_v59, %v1508_v42  ;;  %v1509_v16 = vmul.f32 %v1493_v28, %v10765_v29  ;;  %v1494_v41 = vadd.f32 0.5, %v1478_v46  ;;  %v1479_v44 = vmul.f32 0.5, %v9513_v51  ;;  %v11252_v59 = vld [vmem:[#allocation42_spill] sm:$0xff] }
 0x335   : > { %v1806_v47 = vadd.f32 %v1805_v53, %v1789_v3  ;;  %v1790_v60 = vmul.f32 %v1774_v45, %v10772_v4  ;;  %v1775_v43 = vadd.f32 0.5, %v1759_v39  ;;  %v1760_v25 = vmul.f32 0.5, %v9515_v52  ;;  %v11251_v4 = vld [vmem:[#allocation41_spill] sm:$0xff] }
 0x336   : > { %v1519_v6 = vadd.f32 %v1518_v15, %v1509_v16  ;;  %v1510_v19 = vmul.f32 %v1494_v41, %v10780_v10  ;;  %v1495_v35 = vadd.f32 0.5, %v1479_v44  ;;  %9516 = vtanh.f32 %v10819_v23  ;;  %v8635_v41 = vld [vmem:[#allocation11 + $0x388] ss:$28 sps:$4 sm:$0xff]  }
 0x337   : > { %v1800_v22 = vadd.f32 %v1799_v57, %v1790_v60  ;;  %v1791_v11 = vmul.f32 %v1775_v43, %v10784_v9  ;;  %v1776_v30 = vadd.f32 0.5, %v1760_v25  ;;  %v1729_v54 = vmul.f32 0.5, %v10812_v18  ;;  %v11253_v9 = vld [vmem:[#allocation43_spill] sm:$0xff] }
 0x338   : > { %v10840_v29 = vadd.f32 %v1525_v13, %v1510_v19  ;;  %v1511_v27 = vmul.f32 %v1495_v35, %v10788_v0  ;;  %v10845_v7 = vadd.f32 %v11251_v4, %v10391_v17  ;;  %v10849_v10 = vadd.f32 %v11252_v59, %v10395_v20  ;;  %v8640_v25 = vld [vmem:[#allocation11 + $0x3bc] ss:$28 sps:$4 sm:$0xff]  }
 0x339   : > { %v10851_v48 = vadd.f32 %v1806_v47, %v1791_v11  ;;  %v1792_v23 = vmul.f32 %v1776_v30, %v10801_v49  ;;  %9518 = vtanh.f32 %v1729_v54  ;;  %v10856_v40 = vadd.f32 %v11253_v9, %v10398_v21  ;;  %v11255_v19 = vld [vmem:[#allocation46_spill] sm:$0xff] }
 0x33a   : > { %v10858_v62 = vadd.f32 %v1519_v6, %v1511_v27  ;;  %v1449_v0 = vmul.f32 0.5, %v10845_v7  ;;  %v1730_v17 = vmul.f32 0.5, %v10849_v10  ;;  %v10864_v53 = vadd.f32 %v11254_v37, %v10402_v33  ;;  %v8643_v6 = vld [vmem:[#allocation11 + $0x3c4] ss:$28 sps:$4 sm:$0xff]  }
 0x33b   : > { %v10866_v20 = vadd.f32 %v1800_v22, %v1792_v23  ;;  %v1450_v50 = vmul.f32 0.5, %v10856_v40  ;;  %v10871_v49 = vadd.f32 %v10647_v31, %v10659_v14  ;;  %v10875_v21 = vadd.f32 %v10650_v56, %v10668_v55  ;;  %v11256_v22 = vld [vmem:[#allocation47_spill] sm:$0xff]  ;;  %v11257_v27 = vld [vmem:[#allocation36_spill] sm:$0xff] }
 0x33c   : > { %9520 = vtanh.f32 %v1449_v0  ;;  %v1731_v58 = vmul.f32 0.5, %v10864_v53  ;;  %v10880_v1 = vadd.f32 %v10655_v2, %v10659_v14  ;;  %v10884_v33 = vadd.f32 %v10661_v26, %v10668_v55  ;;  %v8638_v0 = vld [vmem:[#allocation11 + $0x3b8] ss:$28 sps:$4 sm:$0xff]  }
 0x33d   : > { %9522 = vtanh.f32 %v1730_v17  ;;  %v1997_v24 = vmul.f32 0.5, %v10871_v49  ;;  %v1998_v31 = vmul.f32 0.5, %v10875_v21  ;;  %v2120_v15 = vrot.slane %v10696_v38, 1  ;;  %v8641_v17 = vld [vmem:[#allocation11 + $0x3c0] ss:$28 sps:$4 sm:$0xff]  }
 0x33e   : > { %9524 = vtanh.f32 %v1450_v50  ;;  %v1999_v56 = vmul.f32 0.5, %v10880_v1  ;;  %v2000_v42 = vmul.f32 0.5, %v10884_v33  ;;  %v2132_v28 = vrot.slane %v10726_v63, 1 }
 0x33f   : > { %9526 = vtanh.f32 %v1731_v58  ;;  %v2121_v2 = vadd.f32 %v2120_v15, %v10696_v38  ;;  %v10895_v26 = vadd.f32 %v10673_v5, %v10659_v14  ;;  %v10899_v46 = vadd.f32 %v10680_v32, %v10668_v55  ;;  %v8649_v15 = vld [vmem:[#allocation11 + $0x3fc] ss:$28 sps:$4 sm:$0xff]  }
 0x340   : > { %v9517_v51 = vpop.eup %9516  ;;  %9528 = vtanh.f32 %v1997_v24  ;;  %v2133_v57 = vadd.f32 %v2132_v28, %v10726_v63  ;;  %v10904_v3 = vadd.f32 %v10689_v12, %v10659_v14  ;;  %v10908_v45 = vadd.f32 %v10694_v36, %v10668_v55  ;;  %v8632_v36 = vld [vmem:[#allocation11 + $0x380] ss:$28 sps:$4 sm:$0xff]  }
 0x341   : > { %v1480_v38 = vmul.f32 0.5, %v9517_v51  ;;  %9530 = vtanh.f32 %v1998_v31  ;;  %v2171_v5 = vmul.f32 0.015625, %v2121_v2  ;;  %v2001_v39 = vmul.f32 0.5, %v10895_v26  ;;  %v8646_v31 = vld [vmem:[#allocation11 + $0x3f4] ss:$28 sps:$4 sm:$0xff]  }
 0x342   : > { %v10913_v32 = vpack.c.bf16 %v10734_v61, %v10734_v61  ;;  %9532 = vtanh.f32 %v1999_v56  ;;  %v2173_v52 = vmul.f32 0.015625, %v2133_v57  ;;  %v2002_v63 = vmul.f32 0.5, %v10899_v46 }
 0x343   : > { %v9519_v13 = vpop.eup %9518  ;;  %v1496_v12 = vadd.f32 0.5, %v1480_v38  ;;  %9534 = vtanh.f32 %v2000_v42  ;;  %v10916_v16 = vpack.c.bf16 %v2171_v5, %v2171_v5  ;;  %v2003_v44 = vmul.f32 0.5, %v10904_v3 }
 0x344   : > { %v1761_v47 = vmul.f32 0.5, %v9519_v13  ;;  %9536 = vtanh.f32 %v2001_v39  ;;  %v2004_v60 = vmul.f32 0.5, %v10908_v45  ;;  %v10922_v61 = vadd.f32 %v10741_v34, %v10659_v14  ;;  %v8644_v13 = vld [vmem:[#allocation11 + $0x3f0] ss:$28 sps:$4 sm:$0xff]  }
 0x345   : > { %v1512_v43 = vmul.f32 %v1496_v12, %v10805_v8  ;;  %5779 = vmatprep.mubr.bf16.mxu0 %v10916_v16  ;;  %5984 = vmatprep.mubr.bf16.mxu1 %v10916_v16  ;;  %9538 = vtanh.f32 %v2002_v63  ;;  %v10929_v35 = vadd.f32 %v11255_v19, %v10668_v55  ;;  %v10933_v11 = vadd.f32 %v11256_v22, %v10659_v14  ;;  %v8647_v12 = vld [vmem:[#allocation11 + $0x3f8] ss:$28 sps:$4 sm:$0xff]  }
 0x346   : > { %v9521_v30 = vpop.eup %9520  ;;  %v1777_v34 = vadd.f32 0.5, %v1761_v47  ;;  %5780 = vmatmul.mubr.bf16.vlgmr.msra.gmra.mrb[32].mxu0 %v10913_v32  ;;  %5985 = vmatmul.mubr.bf16.vlgmr.msra.gmra.mrb[56].mxu1 %v10913_v32  ;;  %v10937_v8 = vpack.c.bf16 %v2173_v52, %v2173_v52  ;;  %v2005_v54 = vmul.f32 0.5, %v10922_v61  ;;  %v10942_v4 = vadd.f32 %v11257_v27, %v10668_v55 }
 0x347   : > { %v9523_v59 = vpop.eup %9522  ;;  %v1527_v23 = vadd.f32 %v10840_v29, %v1512_v43  ;;  %v1481_v9 = vmul.f32 0.5, %v9521_v30  ;;  %5789 = vmatpush1.bf16.msra.mxu0 %v8632_v36  ;;  %5994 = vmatpush1.bf16.msra.mxu1 %v8635_v41  ;;  %9540 = vtanh.f32 %v2003_v44  ;;  %v2006_v37 = vmul.f32 0.5, %v10929_v35 }
 0x348   : > { %v9525_v50 = vpop.eup %9524  ;;  %v1793_v58 = vmul.f32 %v1777_v34, %v10812_v18  ;;  %v1762_v24 = vmul.f32 0.5, %v9523_v59  ;;  %5820 = vmatprep.mubr.bf16.mxu0 %v10937_v8  ;;  %6025 = vmatprep.mubr.bf16.mxu1 %v10937_v8  ;;  %9542 = vtanh.f32 %v2004_v60  ;;  %v2007_v29 = vmul.f32 0.5, %v10933_v11  ;;  %v8655_v60 = vld [vmem:[#allocation11 + $0x434] ss:$28 sps:$4 sm:$0xff]  }
 0x349   : > { %v9527_v56 = vpop.eup %9526  ;;  %v1497_v42 = vadd.f32 0.5, %v1481_v9  ;;  %v1482_v28 = vmul.f32 0.5, %v9525_v50  ;;  %5790 = vmatprep.subr.bf16.mxu0 %v8640_v25  ;;  %5995 = vmatprep.subr.bf16.mxu1 %v8643_v6  ;;  %9544 = vtanh.f32 %v2005_v54  ;;  %v2008_v2 = vmul.f32 0.5, %v10942_v4 }
 0x34a   : > { %v9529_v51 = vpop.eup %9528  ;;  %v1808_v18 = vadd.f32 %v10851_v48, %v1793_v58  ;;  %v1778_v57 = vadd.f32 0.5, %v1762_v24  ;;  %v1763_v38 = vmul.f32 0.5, %v9527_v56  ;;  %9546 = vtanh.f32 %v2006_v37  ;;  %v8652_v48 = vld [vmem:[#allocation11 + $0x42c] ss:$28 sps:$4 sm:$0xff]   ;;  %v8658_v37 = vld [vmem:[#allocation11 + $0x464] ss:$28 sps:$4 sm:$0xff]  }
 0x34b   : > { %v9531_v5 = vpop.eup %9530  ;;  %v1513_v39 = vmul.f32 %v1497_v42, %v10845_v7  ;;  %v1498_v52 = vadd.f32 0.5, %v1482_v28  ;;  %v2029_v63 = vmul.f32 0.5, %v9529_v51  ;;  %5791 = vmatpush1.bf16.msra.mxu0 %v8638_v0  ;;  %5996 = vmatpush1.bf16.msra.mxu1 %v8641_v17  ;;  %9548 = vtanh.f32 %v2007_v29  ;;  %v8653_v0 = vld [vmem:[#allocation11 + $0x430] ss:$28 sps:$4 sm:$0xff]   ;;  %v8659_v51 = vld [vmem:[#allocation11 + $0x468] ss:$28 sps:$4 sm:$0xff]  }
 0x34c   : > { %v9533_v36 = vpop.eup %9532  ;;  %v1794_v41 = vmul.f32 %v1778_v57, %v10849_v10  ;;  %v1779_v44 = vadd.f32 0.5, %v1763_v38  ;;  %v2030_v47 = vmul.f32 0.5, %v9531_v5  ;;  %5792 = vmatprep.subr.bf16.mxu0 %v8646_v31  ;;  %5997 = vmatprep.subr.bf16.mxu1 %v8649_v15  ;;  %9550 = vtanh.f32 %v2008_v2  ;;  %v8656_v2 = vld [vmem:[#allocation11 + $0x460] ss:$28 sps:$4 sm:$0xff]  }
 0x34d   : > { %v9535_v43 = vpop.eup %9534  ;;  %v10955_v7 = vadd.f32 %v10858_v62, %v1513_v39  ;;  %v1514_v25 = vmul.f32 %v1498_v52, %v10856_v40  ;;  %v2045_v6 = vadd.f32 0.5, %v2029_v63  ;;  %v2031_v19 = vmul.f32 0.5, %v9533_v36  ;;  %v8650_v62 = vld [vmem:[#allocation11 + $0x428] ss:$28 sps:$4 sm:$0xff]  }
 0x34e   : > { %v9537_v22 = vpop.eup %9536  ;;  %v10959_v30 = vadd.f32 %v10866_v20, %v1794_v41  ;;  %v1795_v10 = vmul.f32 %v1779_v44, %v10864_v53  ;;  %v2046_v34 = vadd.f32 0.5, %v2030_v47  ;;  %v2032_v54 = vmul.f32 0.5, %v9535_v43  ;;  %v8661_v20 = vld [vmem:[#allocation11 + $0x46c] ss:$28 sps:$4 sm:$0xff]   ;;  %v8662_v47 = vld [vmem:[#allocation11 + $0x498] ss:$28 sps:$4 sm:$0xff]  }
 0x34f   : > { %v9539_v27 = vpop.eup %9538  ;;  %v10962_v59 = vadd.f32 %v1527_v23, %v1514_v25  ;;  %v2047_v9 = vadd.f32 0.5, %v2031_v19  ;;  %5793 = vmatpush1.bf16.msra.mxu0 %v8644_v13  ;;  %5998 = vmatpush1.bf16.msra.mxu1 %v8647_v12  ;;  %v2061_v53 = vmul.f32 %v2045_v6, %v10871_v49  ;;  %v2033_v24 = vmul.f32 0.5, %v9537_v22  ;;  %v8664_v49 = vld [vmem:[#allocation11 + $0x49c] ss:$28 sps:$4 sm:$0xff]   ;;  %v11258_v13 = vld [vmem:[#allocation37_spill] sm:$0xff] }
 0x350   : > { %v10964_v17 = vadd.f32 %v1808_v18, %v1795_v10  ;;  %v2048_v40 = vadd.f32 0.5, %v2032_v54  ;;  %5794 = vmatprep.subr.bf16.mxu0 %v8652_v48  ;;  %5999 = vmatprep.subr.bf16.mxu1 %v8655_v60  ;;  %v2062_v31 = vmul.f32 %v2046_v34, %v10875_v21  ;;  %v2034_v29 = vmul.f32 0.5, %v9539_v27  ;;  %v8665_v48 = vld [vmem:[#allocation11 + $0x4a0] ss:$28 sps:$4 sm:$0xff]  }
 0x351   : > { %v9541_v50 = vpop.eup %9540  ;;  %v2063_v58 = vmul.f32 %v2047_v9, %v10880_v1  ;;  %v2049_v28 = vadd.f32 0.5, %v2033_v24  ;;  %v8667_v1 = vld [vmem:[#allocation11 + $0x4a4] ss:$28 sps:$4 sm:$0xff]   ;;  %v10974_v12 = vadd.f32 %v11258_v13, %v10659_v14  ;;  %v8673_v6 = vld [vmem:[#allocation11 + $0x4dc] ss:$28 sps:$4 sm:$0xff]   ;;  %v11262_v13 = vld [vmem:[#allocation45_spill] sm:$0xff] }
 0x352   : > { %v9543_v23 = vpop.eup %9542  ;;  %v2064_v15 = vmul.f32 %v2048_v40, %v10884_v33  ;;  %v2050_v38 = vadd.f32 0.5, %v2034_v29  ;;  %v2035_v39 = vmul.f32 0.5, %v9541_v50  ;;  %v11259_v9 = vld [vmem:[#allocation38_spill] sm:$0xff]  ;;  %v8676_v24 = vld [vmem:[#allocation11 + $0x50c] ss:$28 sps:$4 sm:$0xff]   ;;  %v11260_v29 = vld [vmem:[#allocation39_spill] sm:$0xff] }
 0x353   : > { %v9545_v56 = vpop.eup %9544  ;;  %v2077_v42 = vadd.f32 %v2063_v58, %v2061_v53  ;;  %5795 = vmatpush1.bf16.msra.mxu0 %v8650_v62  ;;  %6000 = vmatpush1.bf16.msra.mxu1 %v8653_v0  ;;  %v2065_v21 = vmul.f32 %v2049_v28, %v10895_v26  ;;  %v2036_v63 = vmul.f32 0.5, %v9543_v23  ;;  %v8670_v26 = vld [vmem:[#allocation11 + $0x4d4] ss:$28 sps:$4 sm:$0xff]   ;;  %v2009_v27 = vmul.f32 0.5, %v10974_v12 }
 0x354   : > { %v9547_v18 = vpop.eup %9546  ;;  %v2084_v57 = vadd.f32 %v2064_v15, %v2062_v31  ;;  %5796 = vmatprep.subr.bf16.mxu0 %v8658_v37  ;;  %6001 = vmatprep.subr.bf16.mxu1 %v8661_v20  ;;  %v2066_v52 = vmul.f32 %v2050_v38, %v10899_v46  ;;  %v2051_v41 = vadd.f32 0.5, %v2035_v39  ;;  %v2037_v44 = vmul.f32 0.5, %v9545_v56  ;;  %v8671_v50 = vld [vmem:[#allocation11 + $0x4d8] ss:$28 sps:$4 sm:$0xff]   ;;  %v8685_v38 = vld [vmem:[#allocation11 + $0x54c] ss:$28 sps:$4 sm:$0xff]  }
 0x355   : > { %v9549_v5 = vpop.eup %9548  ;;  %v2078_v36 = vadd.f32 %v2077_v42, %v2065_v21  ;;  %v2052_v43 = vadd.f32 0.5, %v2036_v63  ;;  %v2038_v25 = vmul.f32 0.5, %v9547_v18  ;;  %v10981_v62 = vadd.f32 %v11259_v9, %v10668_v55  ;;  %v8679_v23 = vld [vmem:[#allocation11 + $0x514] ss:$28 sps:$4 sm:$0xff]   ;;  %v8674_v18 = vld [vmem:[#allocation11 + $0x508] ss:$28 sps:$4 sm:$0xff]  }
 0x356   : > { %v9551_v33 = vpop.eup %9550  ;;  %v2085_v60 = vadd.f32 %v2084_v57, %v2066_v52  ;;  %v2067_v46 = vmul.f32 %v2051_v41, %v10904_v3  ;;  %v2053_v19 = vadd.f32 0.5, %v2037_v44  ;;  %v2039_v22 = vmul.f32 0.5, %v9549_v5  ;;  %v8668_v3 = vld [vmem:[#allocation11 + $0x4d0] ss:$28 sps:$4 sm:$0xff]   ;;  %v8691_v5 = vld [vmem:[#allocation11 + $0x584] ss:$28 sps:$4 sm:$0xff]  }
 0x357   : > { %5797 = vmatpush1.bf16.msra.mxu0 %v8656_v2  ;;  %6002 = vmatpush1.bf16.msra.mxu1 %v8659_v51  ;;  %v2040_v10 = vmul.f32 0.5, %v9551_v33  ;;  %v2068_v34 = vmul.f32 %v2052_v43, %v10908_v45  ;;  %v2054_v54 = vadd.f32 0.5, %v2038_v25  ;;  %9552 = vtanh.f32 %v2009_v27  ;;  %v8677_v57 = vld [vmem:[#allocation11 + $0x510] ss:$28 sps:$4 sm:$0xff]   ;;  %v8686_v33 = vld [vmem:[#allocation11 + $0x578] ss:$28 sps:$4 sm:$0xff]  }
 0x358   : > { %5798 = vmatprep.subr.bf16.mxu0 %v8664_v49  ;;  %6003 = vmatprep.subr.bf16.mxu1 %v8667_v1  ;;  %v2079_v0 = vadd.f32 %v2078_v36, %v2067_v46  ;;  %v2069_v40 = vmul.f32 %v2053_v19, %v10922_v61  ;;  %v2055_v37 = vadd.f32 0.5, %v2039_v22  ;;  %v2010_v45 = vmul.f32 0.5, %v10981_v62  ;;  %v8683_v49 = vld [vmem:[#allocation11 + $0x548] ss:$28 sps:$4 sm:$0xff]   ;;  %v8688_v1 = vld [vmem:[#allocation11 + $0x57c] ss:$28 sps:$4 sm:$0xff]  }
 0x359   : > { %v2056_v20 = vadd.f32 0.5, %v2040_v10  ;;  %v2086_v53 = vadd.f32 %v2085_v60, %v2068_v34  ;;  %v2070_v58 = vmul.f32 %v2054_v54, %v10929_v35  ;;  %v10990_v56 = vadd.f32 %v11260_v29, %v10659_v14  ;;  %v11261_v35 = vld [vmem:[#allocation40_spill] sm:$0xff]  ;;  %v8689_v52 = vld [vmem:[#allocation11 + $0x580] ss:$28 sps:$4 sm:$0xff]   ;;  %v8694_v41 = vld [vmem:[#allocation11 + $0x5b4] ss:$28 sps:$4 sm:$0xff]  }
 0x35a   : > { %v2080_v31 = vadd.f32 %v2079_v0, %v2069_v40  ;;  %v2071_v15 = vmul.f32 %v2055_v37, %v10933_v11  ;;  %9554 = vtanh.f32 %v2010_v45  ;;  %v10994_v28 = vadd.f32 %v11261_v35, %v10668_v55  ;;  %v8682_v14 = vld [vmem:[#allocation11 + $0x544] ss:$28 sps:$4 sm:$0xff]   ;;  %v8697_v44 = vld [vmem:[#allocation11 + $0x5bc] ss:$28 sps:$4 sm:$0xff]   ;;  %v8700_v34 = vld [vmem:[#allocation11 + $0x5ec] ss:$28 sps:$4 sm:$0xff]  }
 0x35b   : > { %5799 = vmatpush1.bf16.msra.mxu0 %v8662_v47  ;;  %6004 = vmatpush1.bf16.msra.mxu1 %v8665_v48  ;;  %v2072_v61 = vmul.f32 %v2056_v20, %v10942_v4  ;;  %v2087_v42 = vadd.f32 %v2086_v53, %v2070_v58  ;;  %v2011_v51 = vmul.f32 0.5, %v10990_v56  ;;  %v8680_v55 = vld [vmem:[#allocation11 + $0x540] ss:$28 sps:$4 sm:$0xff]   ;;  %v2122_v36 = vrot.slane %v11262_v13, 4  ;;  %v8695_v46 = vld [vmem:[#allocation11 + $0x5b8] ss:$28 sps:$4 sm:$0xff]  }
 0x35c   : > { %5800 = vmatprep.subr.bf16.mxu0 %v8670_v26  ;;  %6005 = vmatprep.subr.bf16.mxu1 %v8673_v6  ;;  %v2081_v2 = vadd.f32 %v2080_v31, %v2071_v15  ;;  %v2012_v4 = vmul.f32 0.5, %v10994_v28  ;;  %v2140_v47 = vrot.slane %v10962_v59, 4  ;;  %v8692_v6 = vld [vmem:[#allocation11 + $0x5b0] ss:$28 sps:$4 sm:$0xff]   ;;  %v8706_v45 = vld [vmem:[#allocation11 + $0x624] ss:$28 sps:$4 sm:$0xff]  }
 0x35d   : > { %v2088_v11 = vadd.f32 %v2087_v42, %v2072_v61  ;;  %9556 = vtanh.f32 %v2011_v51  ;;  %v2123_v22 = vadd.f32 %v2122_v36, %v11262_v13  ;;  %v8703_v54 = vld [vmem:[#allocation11 + $0x5f4] ss:$28 sps:$4 sm:$0xff]   ;;  %v8704_v15 = vld [vmem:[#allocation11 + $0x620] ss:$28 sps:$4 sm:$0xff]   ;;  %v8707_v61 = vld [vmem:[#allocation11 + $0x628] ss:$28 sps:$4 sm:$0xff]  }
 0x35e   : > { %9558 = vtanh.f32 %v2012_v4  ;;  %v2141_v27 = vadd.f32 %v2140_v47, %v10962_v59  ;;  %v8712_v42 = vld [vmem:[#allocation11 + $0x65c] ss:$28 sps:$4 sm:$0xff]   ;;  %v8716_v4 = vld [vmem:[#allocation11 + $0x690] ss:$28 sps:$4 sm:$0xff]  }
 0x35f   : > { %5801 = vmatpush1.bf16.msra.mxu0 %v8668_v3  ;;  %6006 = vmatpush1.bf16.msra.mxu1 %v8671_v50  ;;  %v8698_v3 = vld [vmem:[#allocation11 + $0x5e8] ss:$28 sps:$4 sm:$0xff]   ;;  %v8701_v50 = vld [vmem:[#allocation11 + $0x5f0] ss:$28 sps:$4 sm:$0xff]   ;;  %v2124_v53 = vrot.slane %v2123_v22, 2 }
 0x360   : > { %5802 = vmatprep.subr.bf16.mxu0 %v8676_v24  ;;  %6007 = vmatprep.subr.bf16.mxu1 %v8679_v23  ;;  %v8709_v24 = vld [vmem:[#allocation11 + $0x62c] ss:$28 sps:$4 sm:$0xff]   ;;  %v2142_v23 = vrot.slane %v2141_v27, 2  ;;  %v8713_v51 = vld [vmem:[#allocation11 + $0x660] ss:$28 sps:$4 sm:$0xff]  }
 0x361   : > { %v9553_v21 = vpop.eup %9552  ;;  %v2125_v29 = vadd.f32 %v2124_v53, %v2123_v22  ;;  %v8728_v13 = vld [vmem:[#allocation11 + $0x700] ss:$28 sps:$4 sm:$0xff]   ;;  %v8751_v22 = vld [vmem:[#allocation11 + $0x7b4] ss:$28 sps:$4 sm:$0xff]  }
 0x362   : > { %v2041_v39 = vmul.f32 0.5, %v9553_v21  ;;  %v2143_v35 = vadd.f32 %v2142_v23, %v2141_v27  ;;  %v8725_v21 = vld [vmem:[#allocation11 + $0x6d0] ss:$28 sps:$4 sm:$0xff]   ;;  %v8736_v47 = vld [vmem:[#allocation11 + $0x73c] ss:$28 sps:$4 sm:$0xff]  }
 0x363   : > { %5803 = vmatpush1.bf16.msra.mxu0 %v8674_v18  ;;  %6008 = vmatpush1.bf16.msra.mxu1 %v8677_v57  ;;  %v8721_v18 = vld [vmem:[#allocation11 + $0x69c] ss:$28 sps:$4 sm:$0xff]   ;;  %v2126_v57 = vrot.slane %v2125_v29, 1  ;;  %v8757_v27 = vld [vmem:[#allocation11 + $0x7ec] ss:$28 sps:$4 sm:$0xff]  }
 0x364   : > { %5804 = vmatprep.subr.bf16.mxu0 %v8682_v14  ;;  %6009 = vmatprep.subr.bf16.mxu1 %v8685_v38  ;;  %v9555_v63 = vpop.eup %9554  ;;  %v2057_v48 = vadd.f32 0.5, %v2041_v39  ;;  %v8719_v14 = vld [vmem:[#allocation11 + $0x698] ss:$28 sps:$4 sm:$0xff]   ;;  %v8724_v38 = vld [vmem:[#allocation11 + $0x6cc] ss:$28 sps:$4 sm:$0xff]  }
 0x365   : > { %v2042_v60 = vmul.f32 0.5, %v9555_v63  ;;  %v8764_v53 = vld [vmem:[#allocation11 + $0x850] ss:$28 sps:$4 sm:$0xff]   ;;  %v8770_v23 = vld [vmem:[#allocation11 + $0x888] ss:$28 sps:$4 sm:$0xff]  }
 0x366   : > { %v2073_v25 = vmul.f32 %v2057_v48, %v10974_v12  ;;  %v8739_v48 = vld [vmem:[#allocation11 + $0x744] ss:$28 sps:$4 sm:$0xff]  }
 0x367   : > { %5805 = vmatpush1.bf16.msra.mxu0 %v8680_v55  ;;  %6010 = vmatpush1.bf16.msra.mxu1 %v8683_v49  ;;  %v9557_v43 = vpop.eup %9556  ;;  %v2058_v26 = vadd.f32 0.5, %v2042_v60  ;;  %v8727_v55 = vld [vmem:[#allocation11 + $0x6d4] ss:$28 sps:$4 sm:$0xff]   ;;  %v2127_v49 = vadd.f32 %v2126_v57, %v2125_v29  ;;  %v8776_v29 = vld [vmem:[#allocation11 + $0x8c0] ss:$28 sps:$4 sm:$0xff]  }
 0x368   : > { %5806 = vmatprep.subr.bf16.mxu0 %v8688_v1  ;;  %6011 = vmatprep.subr.bf16.mxu1 %v8691_v5  ;;  %v9559_v19 = vpop.eup %9558  ;;  %v2043_v10 = vmul.f32 0.5, %v9557_v43  ;;  %v2082_v9 = vadd.f32 %v2081_v2, %v2073_v25  ;;  %v8710_v2 = vld [vmem:[#allocation11 + $0x658] ss:$28 sps:$4 sm:$0xff]   ;;  %v8722_v5 = vld [vmem:[#allocation11 + $0x6c8] ss:$28 sps:$4 sm:$0xff]  }
 0x369   : > { %v2074_v0 = vmul.f32 %v2058_v26, %v10981_v62  ;;  %v2044_v40 = vmul.f32 0.5, %v9559_v19  ;;  %v2172_v39 = vmul.f32 0.015625, %v2127_v49  ;;  %v8734_v60 = vld [vmem:[#allocation11 + $0x738] ss:$28 sps:$4 sm:$0xff]   ;;  %v8737_v43 = vld [vmem:[#allocation11 + $0x740] ss:$28 sps:$4 sm:$0xff]  }
 0x36a   : > { %v2059_v12 = vadd.f32 0.5, %v2043_v10  ;;  %v8742_v25 = vld [vmem:[#allocation11 + $0x774] ss:$28 sps:$4 sm:$0xff]   ;;  %v8745_v26 = vld [vmem:[#allocation11 + $0x77c] ss:$28 sps:$4 sm:$0xff]  }
 0x36b   : > { %5807 = vmatpush1.bf16.msra.mxu0 %v8686_v33  ;;  %6012 = vmatpush1.bf16.msra.mxu1 %v8689_v52  ;;  %v2089_v37 = vadd.f32 %v2088_v11, %v2074_v0  ;;  %v2060_v20 = vadd.f32 0.5, %v2044_v40  ;;  %v2144_v11 = vrot.slane %v2143_v35, 1  ;;  %v8730_v33 = vld [vmem:[#allocation11 + $0x704] ss:$28 sps:$4 sm:$0xff]   ;;  %v8733_v52 = vld [vmem:[#allocation11 + $0x70c] ss:$28 sps:$4 sm:$0xff]   ;;  %v11010_v36 = vpack.c.bf16 %v2172_v39, %v2172_v39 }
 0x36c   : > { %5808 = vmatprep.subr.bf16.mxu0 %v8694_v41  ;;  %6013 = vmatprep.subr.bf16.mxu1 %v8697_v44  ;;  %v2075_v58 = vmul.f32 %v2059_v12, %v10990_v56  ;;  %v8715_v56 = vld [vmem:[#allocation11 + $0x664] ss:$28 sps:$4 sm:$0xff]   ;;  %v8748_v19 = vld [vmem:[#allocation11 + $0x7ac] ss:$28 sps:$4 sm:$0xff]   ;;  %v8760_v40 = vld [vmem:[#allocation11 + $0x81c] ss:$28 sps:$4 sm:$0xff]  }
 0x36d   : > { %v2076_v59 = vmul.f32 %v2060_v20, %v10994_v28  ;;  %v8718_v28 = vld [vmem:[#allocation11 + $0x694] ss:$28 sps:$4 sm:$0xff]   ;;  %v2145_v1 = vadd.f32 %v2144_v11, %v2143_v35  ;;  %v8731_v41 = vld [vmem:[#allocation11 + $0x708] ss:$28 sps:$4 sm:$0xff]   ;;  %v8761_v20 = vld [vmem:[#allocation11 + $0x820] ss:$28 sps:$4 sm:$0xff]  }
 0x36e   : > { %v11006_v31 = vadd.f32 %v2082_v9, %v2075_v58  ;;  %v8746_v10 = vld [vmem:[#allocation11 + $0x7a8] ss:$28 sps:$4 sm:$0xff]   ;;  %v8752_v9 = vld [vmem:[#allocation11 + $0x7e0] ss:$28 sps:$4 sm:$0xff]   ;;  %v8767_v58 = vld [vmem:[#allocation11 + $0x858] ss:$28 sps:$4 sm:$0xff]  }
 0x36f   : > { %5809 = vmatpush1.bf16.msra.mxu0 %v8692_v6  ;;  %6014 = vmatpush1.bf16.msra.mxu1 %v8695_v46  ;;  %v11008_v62 = vadd.f32 %v2089_v37, %v2076_v59  ;;  %v2175_v63 = vmul.f32 0.015625, %v2145_v1  ;;  %v8740_v6 = vld [vmem:[#allocation11 + $0x770] ss:$28 sps:$4 sm:$0xff]   ;;  %v8743_v46 = vld [vmem:[#allocation11 + $0x778] ss:$28 sps:$4 sm:$0xff]   ;;  %v2152_v11 = vrot.slane %v10964_v17, 4 }
 0x370   : > { %5810 = vmatprep.subr.bf16.mxu0 %v8700_v34  ;;  %6015 = vmatprep.subr.bf16.mxu1 %v8703_v54  ;;  %v8749_v34 = vld [vmem:[#allocation11 + $0x7b0] ss:$28 sps:$4 sm:$0xff]   ;;  %v8754_v54 = vld [vmem:[#allocation11 + $0x7e4] ss:$28 sps:$4 sm:$0xff]   ;;  %v8758_v37 = vld [vmem:[#allocation11 + $0x818] ss:$28 sps:$4 sm:$0xff]  }
 0x371   : > { %v11012_v44 = vpack.c.bf16 %v2175_v63, %v2175_v63  ;;  %v8755_v0 = vld [vmem:[#allocation11 + $0x7e8] ss:$28 sps:$4 sm:$0xff]   ;;  %v8773_v59 = vld [vmem:[#allocation11 + $0x890] ss:$28 sps:$4 sm:$0xff]   ;;  %v8793_v57 = vld [vmem:[#allocation11 + $0x93c] ss:$28 sps:$4 sm:$0xff]   ;;  %v2153_v1 = vadd.f32 %v2152_v11, %v10964_v17 }
 0x372   : > { %v8763_v12 = vld [vmem:[#allocation11 + $0x824] ss:$28 sps:$4 sm:$0xff]   ;;  %v8799_v49 = vld [vmem:[#allocation11 + $0x974] ss:$28 sps:$4 sm:$0xff]  }
 0x373   : > { %5811 = vmatpush1.bf16.msra.mxu0 %v8698_v3  ;;  %6016 = vmatpush1.bf16.msra.mxu1 %v8701_v50  ;;  %v8766_v3 = vld [vmem:[#allocation11 + $0x854] ss:$28 sps:$4 sm:$0xff]   ;;  %v8769_v50 = vld [vmem:[#allocation11 + $0x85c] ss:$28 sps:$4 sm:$0xff]   ;;  %v8787_v35 = vld [vmem:[#allocation11 + $0x904] ss:$28 sps:$4 sm:$0xff]  }
 0x374   : > { %5812 = vmatprep.subr.bf16.mxu0 %v8706_v45  ;;  %6017 = vmatprep.subr.bf16.mxu1 %v8709_v24  ;;  %v8772_v45 = vld [vmem:[#allocation11 + $0x88c] ss:$28 sps:$4 sm:$0xff]   ;;  %v8775_v24 = vld [vmem:[#allocation11 + $0x894] ss:$28 sps:$4 sm:$0xff]   ;;  %v2154_v63 = vrot.slane %v2153_v1, 2 }
 0x375   : > { %v8797_v39 = vld [vmem:[#allocation11 + $0x970] ss:$28 sps:$4 sm:$0xff]   ;;  %v8851_v11 = vld [vmem:[#allocation11 + $0xb68] ss:$28 sps:$4 sm:$0xff]  }
 0x376   : > { %v2155_v17 = vadd.f32 %v2154_v63, %v2153_v1  ;;  %v8865_v1 = vld [vmem:[#allocation11 + $0xbdc] ss:$28 sps:$4 sm:$0xff]   ;;  %v8869_v63 = vld [vmem:[#allocation11 + $0xc10] ss:$28 sps:$4 sm:$0xff]  }
 0x377   : > { %5813 = vmatpush1.bf16.msra.mxu0 %v8704_v15  ;;  %6018 = vmatpush1.bf16.msra.mxu1 %v8707_v61  ;;  %v8778_v15 = vld [vmem:[#allocation11 + $0x8c4] ss:$28 sps:$4 sm:$0xff]   ;;  %v8781_v61 = vld [vmem:[#allocation11 + $0x8cc] ss:$28 sps:$4 sm:$0xff]  }
 0x378   : > { %5814 = vmatprep.subr.bf16.mxu0 %v8712_v42  ;;  %6019 = vmatprep.subr.bf16.mxu1 %v8715_v56  ;;  %v8779_v42 = vld [vmem:[#allocation11 + $0x8c8] ss:$28 sps:$4 sm:$0xff]   ;;  %v8784_v56 = vld [vmem:[#allocation11 + $0x8fc] ss:$28 sps:$4 sm:$0xff]  }
 0x37b   : > { %5815 = vmatpush1.bf16.msra.mxu0 %v8710_v2  ;;  %6020 = vmatpush1.bf16.msra.mxu1 %v8713_v51  ;;  %v8782_v2 = vld [vmem:[#allocation11 + $0x8f8] ss:$28 sps:$4 sm:$0xff]   ;;  %v2134_v51 = vrot.slane %v10955_v7, 4 }
 0x37c   : > { %5816 = vmatprep.subr.bf16.mxu0 %v8718_v28  ;;  %6021 = vmatprep.subr.bf16.mxu1 %v8721_v18  ;;  %v8785_v28 = vld [vmem:[#allocation11 + $0x900] ss:$28 sps:$4 sm:$0xff]   ;;  %v8790_v18 = vld [vmem:[#allocation11 + $0x934] ss:$28 sps:$4 sm:$0xff]  }
 0x37f   : > { %5817 = vmatpush1.bf16.msra.mxu0 %v8716_v4  ;;  %6022 = vmatpush1.bf16.msra.mxu1 %v8719_v14  ;;  %v8788_v4 = vld [vmem:[#allocation11 + $0x930] ss:$28 sps:$4 sm:$0xff]   ;;  %v2135_v14 = vadd.f32 %v2134_v51, %v10955_v7  ;;  %v8800_v7 = vld [vmem:[#allocation11 + $0x9a0] ss:$28 sps:$4 sm:$0xff]  }
 0x380   : > { %5818 = vmatprep.subr.bf16.mxu0 %v8724_v38  ;;  %6023 = vmatprep.subr.bf16.mxu1 %v8727_v55  ;;  %v8791_v38 = vld [vmem:[#allocation11 + $0x938] ss:$28 sps:$4 sm:$0xff]   ;;  %v8796_v55 = vld [vmem:[#allocation11 + $0x96c] ss:$28 sps:$4 sm:$0xff]  }
 0x381   : > { %v8845_v51 = vld [vmem:[#allocation11 + $0xb30] ss:$28 sps:$4 sm:$0xff]  }
 0x383   : > { %5819 = vmatpush1.bf16.msra.mxu0 %v8722_v5  ;;  %6024 = vmatpush1.bf16.msra.mxu1 %v8725_v21  ;;  %v8794_v5 = vld [vmem:[#allocation11 + $0x968] ss:$28 sps:$4 sm:$0xff]   ;;  %v2136_v21 = vrot.slane %v2135_v14, 2 }
 0x384   : > { %5829 = vmatprep.subr.bf16.mxu0 %v8730_v33  ;;  %6034 = vmatprep.subr.bf16.mxu1 %v8733_v52  ;;  %v8802_v33 = vld [vmem:[#allocation11 + $0x9a4] ss:$28 sps:$4 sm:$0xff]   ;;  %v8805_v52 = vld [vmem:[#allocation11 + $0x9ac] ss:$28 sps:$4 sm:$0xff]  }
 0x386   : > { %5821 = vmatmul.mubr.bf16.vlgmr.msra.gmra.mrb[32].mxu0 %v11010_v36  ;;  %6026 = vmatmul.mubr.bf16.vlgmr.msra.gmra.mrb[56].mxu1 %v11010_v36 }
 0x387   : > { %5830 = vmatpush1.bf16.msra.mxu0 %v8728_v13  ;;  %5861 = vmatprep.mubr.bf16.mxu0 %v11012_v44  ;;  %v2137_v13 = vadd.f32 %v2136_v21, %v2135_v14  ;;  %v8859_v14 = vld [vmem:[#allocation11 + $0xba4] ss:$28 sps:$4 sm:$0xff]   ;;  %v8863_v21 = vld [vmem:[#allocation11 + $0xbd8] ss:$28 sps:$4 sm:$0xff]  }
 0x388   : > { %6035 = vmatpush1.bf16.msra.mxu1 %v8731_v41  ;;  %6066 = vmatprep.mubr.bf16.mxu1 %v11012_v44  ;;  %v8803_v41 = vld [vmem:[#allocation11 + $0x9a8] ss:$28 sps:$4 sm:$0xff]  }
 0x389   : > { %5831 = vmatprep.subr.bf16.mxu0 %v8736_v47  ;;  %6036 = vmatprep.subr.bf16.mxu1 %v8739_v48  ;;  %v8808_v47 = vld [vmem:[#allocation11 + $0x9dc] ss:$28 sps:$4 sm:$0xff]   ;;  %v8811_v48 = vld [vmem:[#allocation11 + $0x9e4] ss:$28 sps:$4 sm:$0xff]  }
 0x38b   : > { %5832 = vmatpush1.bf16.msra.mxu0 %v8734_v60  ;;  %v8806_v60 = vld [vmem:[#allocation11 + $0x9d8] ss:$28 sps:$4 sm:$0xff]  }
 0x38c   : > { %6037 = vmatpush1.bf16.msra.mxu1 %v8737_v43  ;;  %5833 = vmatprep.subr.bf16.mxu0 %v8742_v25  ;;  %v8809_v43 = vld [vmem:[#allocation11 + $0x9e0] ss:$28 sps:$4 sm:$0xff]   ;;  %v8814_v25 = vld [vmem:[#allocation11 + $0xa14] ss:$28 sps:$4 sm:$0xff]  }
 0x38d   : > { %6038 = vmatprep.subr.bf16.mxu1 %v8745_v26  ;;  %v2138_v26 = vrot.slane %v2137_v13, 1 }
 0x38f   : > { %5834 = vmatpush1.bf16.msra.mxu0 %v8740_v6  ;;  %v8817_v6 = vld [vmem:[#allocation11 + $0xa1c] ss:$28 sps:$4 sm:$0xff]  }
 0x390   : > { %6039 = vmatpush1.bf16.msra.mxu1 %v8743_v46  ;;  %5835 = vmatprep.subr.bf16.mxu0 %v8748_v19  ;;  %v2156_v46 = vrot.slane %v2155_v17, 1  ;;  %v8812_v19 = vld [vmem:[#allocation11 + $0xa10] ss:$28 sps:$4 sm:$0xff]  }
 0x391   : > { %6040 = vmatprep.subr.bf16.mxu1 %v8751_v22  ;;  %v8815_v22 = vld [vmem:[#allocation11 + $0xa18] ss:$28 sps:$4 sm:$0xff]  }
 0x393   : > { %5836 = vmatpush1.bf16.msra.mxu0 %v8746_v10  ;;  %v8820_v10 = vld [vmem:[#allocation11 + $0xa4c] ss:$28 sps:$4 sm:$0xff]  }
 0x394   : > { %6041 = vmatpush1.bf16.msra.mxu1 %v8749_v34  ;;  %5837 = vmatprep.subr.bf16.mxu0 %v8754_v54  ;;  %v2139_v34 = vadd.f32 %v2138_v26, %v2137_v13  ;;  %v8823_v54 = vld [vmem:[#allocation11 + $0xa54] ss:$28 sps:$4 sm:$0xff]   ;;  %v8877_v13 = vld [vmem:[#allocation11 + $0xc4c] ss:$28 sps:$4 sm:$0xff]  }
 0x395   : > { %6042 = vmatprep.subr.bf16.mxu1 %v8757_v27  ;;  %v2157_v27 = vadd.f32 %v2156_v46, %v2155_v17  ;;  %v8883_v17 = vld [vmem:[#allocation11 + $0xc84] ss:$28 sps:$4 sm:$0xff]   ;;  %v8886_v26 = vld [vmem:[#allocation11 + $0xcb4] ss:$28 sps:$4 sm:$0xff]   ;;  %v2164_v46 = vrot.slane %v11008_v62, 4 }
 0x397   : > { %5838 = vmatpush1.bf16.msra.mxu0 %v8752_v9  ;;  %v8818_v9 = vld [vmem:[#allocation11 + $0xa48] ss:$28 sps:$4 sm:$0xff]  }
 0x398   : > { %6043 = vmatpush1.bf16.msra.mxu1 %v8755_v0  ;;  %5839 = vmatprep.subr.bf16.mxu0 %v8760_v40  ;;  %v8821_v0 = vld [vmem:[#allocation11 + $0xa50] ss:$28 sps:$4 sm:$0xff]   ;;  %v2174_v40 = vmul.f32 0.015625, %v2139_v34 }
 0x399   : > { %6044 = vmatprep.subr.bf16.mxu1 %v8763_v12  ;;  %v8826_v12 = vld [vmem:[#allocation11 + $0xa84] ss:$28 sps:$4 sm:$0xff]   ;;  %v8892_v34 = vld [vmem:[#allocation11 + $0xcec] ss:$28 sps:$4 sm:$0xff]  }
 0x39b   : > { %5840 = vmatpush1.bf16.msra.mxu0 %v8758_v37  ;;  %v8829_v37 = vld [vmem:[#allocation11 + $0xa8c] ss:$28 sps:$4 sm:$0xff]  }
 0x39c   : > { %6045 = vmatpush1.bf16.msra.mxu1 %v8761_v20  ;;  %5841 = vmatprep.subr.bf16.mxu0 %v8766_v3  ;;  %v2177_v20 = vmul.f32 0.015625, %v2157_v27  ;;  %v8824_v3 = vld [vmem:[#allocation11 + $0xa80] ss:$28 sps:$4 sm:$0xff]   ;;  %v2165_v27 = vadd.f32 %v2164_v46, %v11008_v62  ;;  %v8947_v46 = vld [vmem:[#allocation11 + $0xee8] ss:$28 sps:$4 sm:$0xff]  }
 0x39d   : > { %6046 = vmatprep.subr.bf16.mxu1 %v8769_v50  ;;  %v11022_v50 = vpack.c.bf16 %v2174_v40, %v2174_v40  ;;  %v8893_v40 = vld [vmem:[#allocation11 + $0xcf0] ss:$28 sps:$4 sm:$0xff]  }
 0x39f   : > { %5842 = vmatpush1.bf16.msra.mxu0 %v8764_v53  ;;  %v8827_v53 = vld [vmem:[#allocation11 + $0xa88] ss:$28 sps:$4 sm:$0xff]  }
 0x3a0   : > { %6047 = vmatpush1.bf16.msra.mxu1 %v8767_v58  ;;  %5843 = vmatprep.subr.bf16.mxu0 %v8772_v45  ;;  %v8832_v58 = vld [vmem:[#allocation11 + $0xabc] ss:$28 sps:$4 sm:$0xff]   ;;  %v11025_v45 = vpack.c.bf16 %v2177_v20, %v2177_v20  ;;  %v2166_v20 = vrot.slane %v2165_v27, 2 }
 0x3a1   : > { %6048 = vmatprep.subr.bf16.mxu1 %v8775_v24  ;;  %v8835_v24 = vld [vmem:[#allocation11 + $0xac4] ss:$28 sps:$4 sm:$0xff]  }
 0x3a2   : > { %v2167_v62 = vadd.f32 %v2166_v20, %v2165_v27  ;;  %v8961_v27 = vld [vmem:[#allocation11 + $0xf5c] ss:$28 sps:$4 sm:$0xff]   ;;  %v8965_v20 = vld [vmem:[#allocation11 + $0xf90] ss:$28 sps:$4 sm:$0xff]  }
 0x3a3   : > { %5844 = vmatpush1.bf16.msra.mxu0 %v8770_v23  ;;  %v8830_v23 = vld [vmem:[#allocation11 + $0xab8] ss:$28 sps:$4 sm:$0xff]  }
 0x3a4   : > { %6049 = vmatpush1.bf16.msra.mxu1 %v8773_v59  ;;  %5845 = vmatprep.subr.bf16.mxu0 %v8778_v15  ;;  %v8833_v59 = vld [vmem:[#allocation11 + $0xac0] ss:$28 sps:$4 sm:$0xff]   ;;  %v8838_v15 = vld [vmem:[#allocation11 + $0xaf4] ss:$28 sps:$4 sm:$0xff]  }
 0x3a5   : > { %6050 = vmatprep.subr.bf16.mxu1 %v8781_v61  ;;  %v8841_v61 = vld [vmem:[#allocation11 + $0xafc] ss:$28 sps:$4 sm:$0xff]  }
 0x3a7   : > { %5846 = vmatpush1.bf16.msra.mxu0 %v8776_v29  ;;  %v8836_v29 = vld [vmem:[#allocation11 + $0xaf0] ss:$28 sps:$4 sm:$0xff]  }
 0x3a8   : > { %6051 = vmatpush1.bf16.msra.mxu1 %v8779_v42  ;;  %5847 = vmatprep.subr.bf16.mxu0 %v8784_v56  ;;  %v8839_v42 = vld [vmem:[#allocation11 + $0xaf8] ss:$28 sps:$4 sm:$0xff]   ;;  %v8844_v56 = vld [vmem:[#allocation11 + $0xb2c] ss:$28 sps:$4 sm:$0xff]  }
 0x3a9   : > { %6052 = vmatprep.subr.bf16.mxu1 %v8787_v35  ;;  %v8847_v35 = vld [vmem:[#allocation11 + $0xb34] ss:$28 sps:$4 sm:$0xff]  }
 0x3ab   : > { %5848 = vmatpush1.bf16.msra.mxu0 %v8782_v2  ;;  %v8842_v2 = vld [vmem:[#allocation11 + $0xb28] ss:$28 sps:$4 sm:$0xff]  }
 0x3ac   : > { %6053 = vmatpush1.bf16.msra.mxu1 %v8785_v28  ;;  %5849 = vmatprep.subr.bf16.mxu0 %v8790_v18  ;;  %v8850_v28 = vld [vmem:[#allocation11 + $0xb64] ss:$28 sps:$4 sm:$0xff]   ;;  %v8853_v18 = vld [vmem:[#allocation11 + $0xb6c] ss:$28 sps:$4 sm:$0xff]  }
 0x3ad   : > { %6054 = vmatprep.subr.bf16.mxu1 %v8793_v57  ;;  %v8848_v57 = vld [vmem:[#allocation11 + $0xb60] ss:$28 sps:$4 sm:$0xff]  }
 0x3af   : > { %5850 = vmatpush1.bf16.msra.mxu0 %v8788_v4  ;;  %v8856_v4 = vld [vmem:[#allocation11 + $0xb9c] ss:$28 sps:$4 sm:$0xff]  }
 0x3b0   : > { %6055 = vmatpush1.bf16.msra.mxu1 %v8791_v38  ;;  %5851 = vmatprep.subr.bf16.mxu0 %v8796_v55  ;;  %v8854_v38 = vld [vmem:[#allocation11 + $0xb98] ss:$28 sps:$4 sm:$0xff]   ;;  %v8857_v55 = vld [vmem:[#allocation11 + $0xba0] ss:$28 sps:$4 sm:$0xff]  }
 0x3b1   : > { %6056 = vmatprep.subr.bf16.mxu1 %v8799_v49  ;;  %v8862_v49 = vld [vmem:[#allocation11 + $0xbd4] ss:$28 sps:$4 sm:$0xff]  }
 0x3b3   : > { %5852 = vmatpush1.bf16.msra.mxu0 %v8794_v5  ;;  %v8860_v5 = vld [vmem:[#allocation11 + $0xbd0] ss:$28 sps:$4 sm:$0xff]  }
 0x3b4   : > { %6057 = vmatpush1.bf16.msra.mxu1 %v8797_v39  ;;  %5853 = vmatprep.subr.bf16.mxu0 %v8802_v33  ;;  %v8868_v39 = vld [vmem:[#allocation11 + $0xc0c] ss:$28 sps:$4 sm:$0xff]   ;;  %v8871_v33 = vld [vmem:[#allocation11 + $0xc14] ss:$28 sps:$4 sm:$0xff]  }
 0x3b5   : > { %6058 = vmatprep.subr.bf16.mxu1 %v8805_v52  ;;  %v8866_v52 = vld [vmem:[#allocation11 + $0xc08] ss:$28 sps:$4 sm:$0xff]  }
 0x3b7   : > { %5854 = vmatpush1.bf16.msra.mxu0 %v8800_v7  ;;  %v8874_v7 = vld [vmem:[#allocation11 + $0xc44] ss:$28 sps:$4 sm:$0xff]  }
 0x3b8   : > { %6059 = vmatpush1.bf16.msra.mxu1 %v8803_v41  ;;  %5855 = vmatprep.subr.bf16.mxu0 %v8808_v47  ;;  %v8872_v41 = vld [vmem:[#allocation11 + $0xc40] ss:$28 sps:$4 sm:$0xff]   ;;  %v8875_v47 = vld [vmem:[#allocation11 + $0xc48] ss:$28 sps:$4 sm:$0xff]  }
 0x3b9   : > { %6060 = vmatprep.subr.bf16.mxu1 %v8811_v48  ;;  %v8880_v48 = vld [vmem:[#allocation11 + $0xc7c] ss:$28 sps:$4 sm:$0xff]  }
 0x3bb   : > { %5856 = vmatpush1.bf16.msra.mxu0 %v8806_v60  ;;  %v8878_v60 = vld [vmem:[#allocation11 + $0xc78] ss:$28 sps:$4 sm:$0xff]  }
 0x3bc   : > { %6061 = vmatpush1.bf16.msra.mxu1 %v8809_v43  ;;  %5857 = vmatprep.subr.bf16.mxu0 %v8814_v25  ;;  %v2146_v43 = vrot.slane %v10959_v30, 4  ;;  %v8881_v25 = vld [vmem:[#allocation11 + $0xc80] ss:$28 sps:$4 sm:$0xff]  }
 0x3bd   : > { %6062 = vmatprep.subr.bf16.mxu1 %v8817_v6  ;;  %v8889_v6 = vld [vmem:[#allocation11 + $0xcbc] ss:$28 sps:$4 sm:$0xff]  }
 0x3bf   : > { %5858 = vmatpush1.bf16.msra.mxu0 %v8812_v19  ;;  %v8884_v19 = vld [vmem:[#allocation11 + $0xcb0] ss:$28 sps:$4 sm:$0xff]  }
 0x3c0   : > { %6063 = vmatpush1.bf16.msra.mxu1 %v8815_v22  ;;  %5859 = vmatprep.subr.bf16.mxu0 %v8820_v10  ;;  %v2147_v22 = vadd.f32 %v2146_v43, %v10959_v30  ;;  %v8887_v10 = vld [vmem:[#allocation11 + $0xcb8] ss:$28 sps:$4 sm:$0xff]   ;;  %v8896_v30 = vld [vmem:[#allocation11 + $0xd20] ss:$28 sps:$4 sm:$0xff]   ;;  %v8941_v43 = vld [vmem:[#allocation11 + $0xeb0] ss:$28 sps:$4 sm:$0xff]  }
 0x3c1   : > { %6064 = vmatprep.subr.bf16.mxu1 %v8823_v54  ;;  %v8895_v54 = vld [vmem:[#allocation11 + $0xcf4] ss:$28 sps:$4 sm:$0xff]  }
 0x3c3   : > { %5860 = vmatpush1.bf16.msra.mxu0 %v8818_v9  ;;  %v8890_v9 = vld [vmem:[#allocation11 + $0xce8] ss:$28 sps:$4 sm:$0xff]  }
 0x3c4   : > { %6065 = vmatpush1.bf16.msra.mxu1 %v8821_v0  ;;  %5870 = vmatprep.subr.bf16.mxu0 %v8826_v12  ;;  %v2148_v0 = vrot.slane %v2147_v22, 2  ;;  %v8898_v12 = vld [vmem:[#allocation11 + $0xd24] ss:$28 sps:$4 sm:$0xff]  }
 0x3c5   : > { %6075 = vmatprep.subr.bf16.mxu1 %v8829_v37  ;;  %v8901_v37 = vld [vmem:[#allocation11 + $0xd2c] ss:$28 sps:$4 sm:$0xff]  }
 0x3c6   : > { %5862 = vmatmul.mubr.bf16.vlgmr.msra.gmra.mrb[32].mxu0 %v11022_v50 }
 0x3c7   : > { %6067 = vmatmul.mubr.bf16.vlgmr.msra.gmra.mrb[56].mxu1 %v11022_v50  ;;  %5871 = vmatpush1.bf16.msra.mxu0 %v8824_v3  ;;  %v2149_v3 = vadd.f32 %v2148_v0, %v2147_v22  ;;  %v8955_v22 = vld [vmem:[#allocation11 + $0xf24] ss:$28 sps:$4 sm:$0xff]   ;;  %v8959_v0 = vld [vmem:[#allocation11 + $0xf58] ss:$28 sps:$4 sm:$0xff]  }
 0x3c8   : > { %5902 = vmatprep.mubr.bf16.mxu0 %v11025_v45  ;;  %6076 = vmatpush1.bf16.msra.mxu1 %v8827_v53  ;;  %v8899_v53 = vld [vmem:[#allocation11 + $0xd28] ss:$28 sps:$4 sm:$0xff]  }
 0x3c9   : > { %6107 = vmatprep.mubr.bf16.mxu1 %v11025_v45  ;;  %5872 = vmatprep.subr.bf16.mxu0 %v8832_v58  ;;  %v8904_v58 = vld [vmem:[#allocation11 + $0xd5c] ss:$28 sps:$4 sm:$0xff]  }
 0x3ca   : > { %6077 = vmatprep.subr.bf16.mxu1 %v8835_v24  ;;  %v8907_v24 = vld [vmem:[#allocation11 + $0xd64] ss:$28 sps:$4 sm:$0xff]  }
 0x3cb   : > { %5873 = vmatpush1.bf16.msra.mxu0 %v8830_v23  ;;  %v8902_v23 = vld [vmem:[#allocation11 + $0xd58] ss:$28 sps:$4 sm:$0xff]  }
 0x3cc   : > { %6078 = vmatpush1.bf16.msra.mxu1 %v8833_v59  ;;  %5874 = vmatprep.subr.bf16.mxu0 %v8838_v15  ;;  %v8905_v59 = vld [vmem:[#allocation11 + $0xd60] ss:$28 sps:$4 sm:$0xff]   ;;  %v8910_v15 = vld [vmem:[#allocation11 + $0xd94] ss:$28 sps:$4 sm:$0xff]  }
 0x3cd   : > { %6079 = vmatprep.subr.bf16.mxu1 %v8841_v61  ;;  %v2150_v61 = vrot.slane %v2149_v3, 1 }
 0x3cf   : > { %5875 = vmatpush1.bf16.msra.mxu0 %v8836_v29  ;;  %v8913_v29 = vld [vmem:[#allocation11 + $0xd9c] ss:$28 sps:$4 sm:$0xff]  }
 0x3d0   : > { %6080 = vmatpush1.bf16.msra.mxu1 %v8839_v42  ;;  %5876 = vmatprep.subr.bf16.mxu0 %v8844_v56  ;;  %v2168_v42 = vrot.slane %v2167_v62, 1  ;;  %v8908_v56 = vld [vmem:[#allocation11 + $0xd90] ss:$28 sps:$4 sm:$0xff]  }
 0x3d1   : > { %6081 = vmatprep.subr.bf16.mxu1 %v8847_v35  ;;  %v8911_v35 = vld [vmem:[#allocation11 + $0xd98] ss:$28 sps:$4 sm:$0xff]  }
 0x3d3   : > { %5877 = vmatpush1.bf16.msra.mxu0 %v8842_v2  ;;  %v8916_v2 = vld [vmem:[#allocation11 + $0xdcc] ss:$28 sps:$4 sm:$0xff]  }
 0x3d4   : > { %6082 = vmatpush1.bf16.msra.mxu1 %v8845_v51  ;;  %5878 = vmatprep.subr.bf16.mxu0 %v8850_v28  ;;  %v2151_v51 = vadd.f32 %v2150_v61, %v2149_v3  ;;  %v8919_v28 = vld [vmem:[#allocation11 + $0xdd4] ss:$28 sps:$4 sm:$0xff]   ;;  %v8973_v3 = vld [vmem:[#allocation11 + $0xfcc] ss:$28 sps:$4 sm:$0xff]  }
 0x3d5   : > { %6083 = vmatprep.subr.bf16.mxu1 %v8853_v18  ;;  %v2169_v18 = vadd.f32 %v2168_v42, %v2167_v62  ;;  %v8979_v62 = vld [vmem:[#allocation11 + $0x1004] ss:$28 sps:$4 sm:$0xff]   ;;  %v8982_v61 = vld [vmem:[#allocation11 + $0x1034] ss:$28 sps:$4 sm:$0xff]  }
 0x3d6   : > { %v8980_v42 = vld [vmem:[#allocation11 + $0x1030] ss:$28 sps:$4 sm:$0xff]  }
 0x3d7   : > { %5879 = vmatpush1.bf16.msra.mxu0 %v8848_v57  ;;  %v8914_v57 = vld [vmem:[#allocation11 + $0xdc8] ss:$28 sps:$4 sm:$0xff]  }
 0x3d8   : > { %6084 = vmatpush1.bf16.msra.mxu1 %v8851_v11  ;;  %5880 = vmatprep.subr.bf16.mxu0 %v8856_v4  ;;  %v8917_v11 = vld [vmem:[#allocation11 + $0xdd0] ss:$28 sps:$4 sm:$0xff]   ;;  %v2176_v4 = vmul.f32 0.015625, %v2151_v51 }
 0x3d9   : > { %6085 = vmatprep.subr.bf16.mxu1 %v8859_v14  ;;  %v8922_v14 = vld [vmem:[#allocation11 + $0xe04] ss:$28 sps:$4 sm:$0xff]   ;;  %v8991_v51 = vld [vmem:[#allocation11 + $0x1074] ss:$28 sps:$4 sm:$0xff]  }
 0x3db   : > { %5881 = vmatpush1.bf16.msra.mxu0 %v8854_v38  ;;  %v8925_v38 = vld [vmem:[#allocation11 + $0xe0c] ss:$28 sps:$4 sm:$0xff]  }
 0x3dc   : > { %6086 = vmatpush1.bf16.msra.mxu1 %v8857_v55  ;;  %5882 = vmatprep.subr.bf16.mxu0 %v8862_v49  ;;  %v2179_v55 = vmul.f32 0.015625, %v2169_v18  ;;  %v8920_v49 = vld [vmem:[#allocation11 + $0xe00] ss:$28 sps:$4 sm:$0xff]  }
 0x3dd   : > { %6087 = vmatprep.subr.bf16.mxu1 %v8865_v1  ;;  %v11034_v1 = vpack.c.bf16 %v2176_v4, %v2176_v4  ;;  %v8997_v4 = vld [vmem:[#allocation11 + $0x10ac] ss:$28 sps:$4 sm:$0xff]  }
 0x3df   : > { %5883 = vmatpush1.bf16.msra.mxu0 %v8860_v5  ;;  %v8923_v5 = vld [vmem:[#allocation11 + $0xe08] ss:$28 sps:$4 sm:$0xff]  }
 0x3e0   : > { %6088 = vmatpush1.bf16.msra.mxu1 %v8863_v21  ;;  %5884 = vmatprep.subr.bf16.mxu0 %v8868_v39  ;;  %v8928_v21 = vld [vmem:[#allocation11 + $0xe3c] ss:$28 sps:$4 sm:$0xff]   ;;  %v11037_v39 = vpack.c.bf16 %v2179_v55, %v2179_v55 }
 0x3e1   : > { %6089 = vmatprep.subr.bf16.mxu1 %v8871_v33  ;;  %v8931_v33 = vld [vmem:[#allocation11 + $0xe44] ss:$28 sps:$4 sm:$0xff]   ;;  %v9000_v55 = vld [vmem:[#allocation11 + $0x10dc] ss:$28 sps:$4 sm:$0xff]  }
 0x3e3   : > { %5885 = vmatpush1.bf16.msra.mxu0 %v8866_v52  ;;  %v8926_v52 = vld [vmem:[#allocation11 + $0xe38] ss:$28 sps:$4 sm:$0xff]  }
 0x3e4   : > { %6090 = vmatpush1.bf16.msra.mxu1 %v8869_v63  ;;  %5886 = vmatprep.subr.bf16.mxu0 %v8874_v7  ;;  %v8929_v63 = vld [vmem:[#allocation11 + $0xe40] ss:$28 sps:$4 sm:$0xff]   ;;  %v8934_v7 = vld [vmem:[#allocation11 + $0xe74] ss:$28 sps:$4 sm:$0xff]  }
 0x3e5   : > { %6091 = vmatprep.subr.bf16.mxu1 %v8877_v13  ;;  %v8937_v13 = vld [vmem:[#allocation11 + $0xe7c] ss:$28 sps:$4 sm:$0xff]  }
 0x3e7   : > { %5887 = vmatpush1.bf16.msra.mxu0 %v8872_v41  ;;  %v8932_v41 = vld [vmem:[#allocation11 + $0xe70] ss:$28 sps:$4 sm:$0xff]  }
 0x3e8   : > { %6092 = vmatpush1.bf16.msra.mxu1 %v8875_v47  ;;  %5888 = vmatprep.subr.bf16.mxu0 %v8880_v48  ;;  %v8935_v47 = vld [vmem:[#allocation11 + $0xe78] ss:$28 sps:$4 sm:$0xff]   ;;  %v8940_v48 = vld [vmem:[#allocation11 + $0xeac] ss:$28 sps:$4 sm:$0xff]  }
 0x3e9   : > { %6093 = vmatprep.subr.bf16.mxu1 %v8883_v17  ;;  %v8943_v17 = vld [vmem:[#allocation11 + $0xeb4] ss:$28 sps:$4 sm:$0xff]  }
 0x3eb   : > { %5889 = vmatpush1.bf16.msra.mxu0 %v8878_v60  ;;  %v8938_v60 = vld [vmem:[#allocation11 + $0xea8] ss:$28 sps:$4 sm:$0xff]  }
 0x3ec   : > { %6094 = vmatpush1.bf16.msra.mxu1 %v8881_v25  ;;  %5890 = vmatprep.subr.bf16.mxu0 %v8886_v26  ;;  %v8946_v25 = vld [vmem:[#allocation11 + $0xee4] ss:$28 sps:$4 sm:$0xff]   ;;  %v8949_v26 = vld [vmem:[#allocation11 + $0xeec] ss:$28 sps:$4 sm:$0xff]  }
 0x3ed   : > { %6095 = vmatprep.subr.bf16.mxu1 %v8889_v6  ;;  %v8944_v6 = vld [vmem:[#allocation11 + $0xee0] ss:$28 sps:$4 sm:$0xff]  }
 0x3ef   : > { %5891 = vmatpush1.bf16.msra.mxu0 %v8884_v19  ;;  %v8952_v19 = vld [vmem:[#allocation11 + $0xf1c] ss:$28 sps:$4 sm:$0xff]  }
 0x3f0   : > { %6096 = vmatpush1.bf16.msra.mxu1 %v8887_v10  ;;  %5892 = vmatprep.subr.bf16.mxu0 %v8892_v34  ;;  %v8950_v10 = vld [vmem:[#allocation11 + $0xf18] ss:$28 sps:$4 sm:$0xff]   ;;  %v8953_v34 = vld [vmem:[#allocation11 + $0xf20] ss:$28 sps:$4 sm:$0xff]  }
 0x3f1   : > { %6097 = vmatprep.subr.bf16.mxu1 %v8895_v54  ;;  %v8958_v54 = vld [vmem:[#allocation11 + $0xf54] ss:$28 sps:$4 sm:$0xff]  }
 0x3f3   : > { %5893 = vmatpush1.bf16.msra.mxu0 %v8890_v9  ;;  %v8956_v9 = vld [vmem:[#allocation11 + $0xf50] ss:$28 sps:$4 sm:$0xff]  }
 0x3f4   : > { %6098 = vmatpush1.bf16.msra.mxu1 %v8893_v40  ;;  %5894 = vmatprep.subr.bf16.mxu0 %v8898_v12  ;;  %v8964_v40 = vld [vmem:[#allocation11 + $0xf8c] ss:$28 sps:$4 sm:$0xff]   ;;  %v8967_v12 = vld [vmem:[#allocation11 + $0xf94] ss:$28 sps:$4 sm:$0xff]  }
 0x3f5   : > { %6099 = vmatprep.subr.bf16.mxu1 %v8901_v37  ;;  %v8962_v37 = vld [vmem:[#allocation11 + $0xf88] ss:$28 sps:$4 sm:$0xff]  }
 0x3f7   : > { %5895 = vmatpush1.bf16.msra.mxu0 %v8896_v30  ;;  %v8970_v30 = vld [vmem:[#allocation11 + $0xfc4] ss:$28 sps:$4 sm:$0xff]  }
 0x3f8   : > { %6100 = vmatpush1.bf16.msra.mxu1 %v8899_v53  ;;  %5896 = vmatprep.subr.bf16.mxu0 %v8904_v58  ;;  %v8968_v53 = vld [vmem:[#allocation11 + $0xfc0] ss:$28 sps:$4 sm:$0xff]   ;;  %v8971_v58 = vld [vmem:[#allocation11 + $0xfc8] ss:$28 sps:$4 sm:$0xff]  }
 0x3f9   : > { %6101 = vmatprep.subr.bf16.mxu1 %v8907_v24  ;;  %v8976_v24 = vld [vmem:[#allocation11 + $0xffc] ss:$28 sps:$4 sm:$0xff]  }
 0x3fb   : > { %5897 = vmatpush1.bf16.msra.mxu0 %v8902_v23  ;;  %v8974_v23 = vld [vmem:[#allocation11 + $0xff8] ss:$28 sps:$4 sm:$0xff]  }
 0x3fc   : > { %6102 = vmatpush1.bf16.msra.mxu1 %v8905_v59  ;;  %5898 = vmatprep.subr.bf16.mxu0 %v8910_v15  ;;  %v2158_v59 = vrot.slane %v11006_v31, 4  ;;  %v8977_v15 = vld [vmem:[#allocation11 + $0x1000] ss:$28 sps:$4 sm:$0xff]  }
 0x3fd   : > { %6103 = vmatprep.subr.bf16.mxu1 %v8913_v29  ;;  %v8985_v29 = vld [vmem:[#allocation11 + $0x103c] ss:$28 sps:$4 sm:$0xff]  }
 0x3ff   : > { %5899 = vmatpush1.bf16.msra.mxu0 %v8908_v56  ;;  %v2159_v56 = vadd.f32 %v2158_v59, %v11006_v31  ;;  %v8995_v31 = vld [vmem:[#allocation11 + $0x10a8] ss:$28 sps:$4 sm:$0xff]   ;;  %v9045_v59 = vld [vmem:[#allocation11 + $0x130] ss:$28 sps:$4 sm:$0xff]  }
 0x400   : > { %6104 = vmatpush1.bf16.msra.mxu1 %v8911_v35  ;;  %5900 = vmatprep.subr.bf16.mxu0 %v8916_v2  ;;  %v8983_v35 = vld [vmem:[#allocation11 + $0x1038] ss:$28 sps:$4 sm:$0xff]   ;;  %v8988_v2 = vld [vmem:[#allocation11 + $0x106c] ss:$28 sps:$4 sm:$0xff]  }
 0x401   : > { %6105 = vmatprep.subr.bf16.mxu1 %v8919_v28  ;;  %v8986_v28 = vld [vmem:[#allocation11 + $0x1068] ss:$28 sps:$4 sm:$0xff]   ;;  %v2160_v18 = vrot.slane %v2159_v56, 2 }
 0x403   : > { %5901 = vmatpush1.bf16.msra.mxu0 %v8914_v57  ;;  %v8989_v57 = vld [vmem:[#allocation11 + $0x1070] ss:$28 sps:$4 sm:$0xff]  }
 0x404   : > { %6106 = vmatpush1.bf16.msra.mxu1 %v8917_v11  ;;  %5911 = vmatprep.subr.bf16.mxu0 %v8922_v14  ;;  %v8994_v11 = vld [vmem:[#allocation11 + $0x10a4] ss:$28 sps:$4 sm:$0xff]  }
 0x405   : > { %6116 = vmatprep.subr.bf16.mxu1 %v8925_v38  ;;  %v8992_v14 = vld [vmem:[#allocation11 + $0x10a0] ss:$28 sps:$4 sm:$0xff]   ;;  %v2161_v38 = vadd.f32 %v2160_v18, %v2159_v56  ;;  %v9059_v18 = vld [vmem:[#allocation11 + $0x558] ss:$28 sps:$4 sm:$0xff]  }
 0x406   : > { %5903 = vmatmul.mubr.bf16.vlgmr.msra.gmra.mrb[32].mxu0 %v11034_v1  ;;  %v9053_v56 = vld [vmem:[#allocation11 + $0x19c] ss:$28 sps:$4 sm:$0xff]  }
 0x407   : > { %6108 = vmatmul.mubr.bf16.vlgmr.msra.gmra.mrb[56].mxu1 %v11034_v1  ;;  %5912 = vmatpush1.bf16.msra.mxu0 %v8920_v49  ;;  %v9003_v49 = vld [vmem:[#allocation11 + $0x10e4] ss:$28 sps:$4 sm:$0xff]  }
 0x408   : > { %5943 = vmatprep.mubr.bf16.mxu0 %v11037_v39  ;;  %6117 = vmatpush1.bf16.msra.mxu1 %v8923_v5  ;;  %v8998_v5 = vld [vmem:[#allocation11 + $0x10d8] ss:$28 sps:$4 sm:$0xff]  }
 0x409   : > { %6148 = vmatprep.mubr.bf16.mxu1 %v11037_v39  ;;  %5913 = vmatprep.subr.bf16.mxu0 %v8928_v21  ;;  %v9001_v21 = vld [vmem:[#allocation11 + $0x10e0] ss:$28 sps:$4 sm:$0xff]  }
 0x40a   : > { %6118 = vmatprep.subr.bf16.mxu1 %v8931_v33  ;;  %v9006_v33 = vld [vmem:[#allocation11 + $0x1114] ss:$28 sps:$4 sm:$0xff]  }
 0x40b   : > { %5914 = vmatpush1.bf16.msra.mxu0 %v8926_v52  ;;  %v2162_v52 = vrot.slane %v2161_v38, 1 }
 0x40c   : > { %6119 = vmatpush1.bf16.msra.mxu1 %v8929_v63  ;;  %5915 = vmatprep.subr.bf16.mxu0 %v8934_v7  ;;  %v9009_v63 = vld [vmem:[#allocation11 + $0x111c] ss:$28 sps:$4 sm:$0xff]   ;;  %v9004_v7 = vld [vmem:[#allocation11 + $0x1110] ss:$28 sps:$4 sm:$0xff]  }
 0x40d   : > { %6120 = vmatprep.subr.bf16.mxu1 %v8937_v13  ;;  %v9007_v13 = vld [vmem:[#allocation11 + $0x1118] ss:$28 sps:$4 sm:$0xff]  }
 0x40f   : > { %5916 = vmatpush1.bf16.msra.mxu0 %v8932_v41  ;;  %v9012_v41 = vld [vmem:[#allocation11 + $0x114c] ss:$28 sps:$4 sm:$0xff]  }
 0x410   : > { %6121 = vmatpush1.bf16.msra.mxu1 %v8935_v47  ;;  %5917 = vmatprep.subr.bf16.mxu0 %v8940_v48  ;;  %v2163_v47 = vadd.f32 %v2162_v52, %v2161_v38  ;;  %v9015_v48 = vld [vmem:[#allocation11 + $0x1154] ss:$28 sps:$4 sm:$0xff]   ;;  %v9061_v38 = vld [vmem:[#allocation11 + $0x208] ss:$28 sps:$4 sm:$0xff]   ;;  %v9074_v52 = vld [vmem:[#allocation11 + $0x600] ss:$28 sps:$4 sm:$0xff]  }
 0x411   : > { %6122 = vmatprep.subr.bf16.mxu1 %v8943_v17  ;;  %v9010_v17 = vld [vmem:[#allocation11 + $0x1148] ss:$28 sps:$4 sm:$0xff]  }
 0x413   : > { %5918 = vmatpush1.bf16.msra.mxu0 %v8938_v60  ;;  %v9013_v60 = vld [vmem:[#allocation11 + $0x1150] ss:$28 sps:$4 sm:$0xff]  }
 0x414   : > { %6123 = vmatpush1.bf16.msra.mxu1 %v8941_v43  ;;  %5919 = vmatprep.subr.bf16.mxu0 %v8946_v25  ;;  %v2178_v43 = vmul.f32 0.015625, %v2163_v47  ;;  %v9018_v25 = vld [vmem:[#allocation11 + $0x14] ss:$28 sps:$4 sm:$0xff]  }
 0x415   : > { %6124 = vmatprep.subr.bf16.mxu1 %v8949_v26  ;;  %v9019_v26 = vld [vmem:[#allocation11 + $0x1d8] ss:$28 sps:$4 sm:$0xff]   ;;  %v9076_v47 = vld [vmem:[#allocation11 + $0x2b0] ss:$28 sps:$4 sm:$0xff]  }
 0x417   : > { %5920 = vmatpush1.bf16.msra.mxu0 %v8944_v6  ;;  %v9016_v6 = vld [vmem:[#allocation11 + $0x10] ss:$28 sps:$4 sm:$0xff]  }
 0x418   : > { %6125 = vmatpush1.bf16.msra.mxu1 %v8947_v46  ;;  %5921 = vmatprep.subr.bf16.mxu0 %v8952_v19  ;;  %v11044_v46 = vpack.c.bf16 %v2178_v43, %v2178_v43  ;;  %v9020_v19 = vld [vmem:[#allocation11 + $0x18] ss:$28 sps:$4 sm:$0xff]   ;;  %v9081_v43 = vld [vmem:[#allocation11 + $0x2e8] ss:$28 sps:$4 sm:$0xff]  }
 0x419   : > { %6126 = vmatprep.subr.bf16.mxu1 %v8955_v22  ;;  %v9023_v22 = vld [vmem:[#allocation11 + $0x4c] ss:$28 sps:$4 sm:$0xff]  }
 0x41b   : > { %5922 = vmatpush1.bf16.msra.mxu0 %v8950_v10  ;;  %v9024_v10 = vld [vmem:[#allocation11 + $0x210] ss:$28 sps:$4 sm:$0xff]  }
 0x41c   : > { %6127 = vmatpush1.bf16.msra.mxu1 %v8953_v34  ;;  %5923 = vmatprep.subr.bf16.mxu0 %v8958_v54  ;;  %v9021_v34 = vld [vmem:[#allocation11 + $0x48] ss:$28 sps:$4 sm:$0xff]   ;;  %v9025_v54 = vld [vmem:[#allocation11 + $0x50] ss:$28 sps:$4 sm:$0xff]  }
 0x41d   : > { %6128 = vmatprep.subr.bf16.mxu1 %v8961_v27  ;;  %v9028_v27 = vld [vmem:[#allocation11 + $0x84] ss:$28 sps:$4 sm:$0xff]  }
 0x41f   : > { %5924 = vmatpush1.bf16.msra.mxu0 %v8956_v9  ;;  %v9029_v9 = vld [vmem:[#allocation11 + $0x248] ss:$28 sps:$4 sm:$0xff]  }
 0x420   : > { %6129 = vmatpush1.bf16.msra.mxu1 %v8959_v0  ;;  %5925 = vmatprep.subr.bf16.mxu0 %v8964_v40  ;;  %v9026_v0 = vld [vmem:[#allocation11 + $0x80] ss:$28 sps:$4 sm:$0xff]   ;;  %v9030_v40 = vld [vmem:[#allocation11 + $0x88] ss:$28 sps:$4 sm:$0xff]  }
 0x421   : > { %6130 = vmatprep.subr.bf16.mxu1 %v8967_v12  ;;  %v9033_v12 = vld [vmem:[#allocation11 + $0xbc] ss:$28 sps:$4 sm:$0xff]  }
 0x423   : > { %5926 = vmatpush1.bf16.msra.mxu0 %v8962_v37  ;;  %v9034_v37 = vld [vmem:[#allocation11 + $0x280] ss:$28 sps:$4 sm:$0xff]  }
 0x424   : > { %6131 = vmatpush1.bf16.msra.mxu1 %v8965_v20  ;;  %5927 = vmatprep.subr.bf16.mxu0 %v8970_v30  ;;  %v9031_v20 = vld [vmem:[#allocation11 + $0xb8] ss:$28 sps:$4 sm:$0xff]   ;;  %v9035_v30 = vld [vmem:[#allocation11 + $0xc0] ss:$28 sps:$4 sm:$0xff]  }
 0x425   : > { %6132 = vmatprep.subr.bf16.mxu1 %v8973_v3  ;;  %v9038_v3 = vld [vmem:[#allocation11 + $0xf4] ss:$28 sps:$4 sm:$0xff]  }
 0x427   : > { %5928 = vmatpush1.bf16.msra.mxu0 %v8968_v53  ;;  %v9039_v53 = vld [vmem:[#allocation11 + $0x2b8] ss:$28 sps:$4 sm:$0xff]  }
 0x428   : > { %6133 = vmatpush1.bf16.msra.mxu1 %v8971_v58  ;;  %5929 = vmatprep.subr.bf16.mxu0 %v8976_v24  ;;  %v9040_v58 = vld [vmem:[#allocation11 + $0xf8] ss:$28 sps:$4 sm:$0xff]   ;;  %v9043_v24 = vld [vmem:[#allocation11 + $0x12c] ss:$28 sps:$4 sm:$0xff]  }
 0x429   : > { %6134 = vmatprep.subr.bf16.mxu1 %v8979_v62  ;;  %v9044_v62 = vld [vmem:[#allocation11 + $0x2f0] ss:$28 sps:$4 sm:$0xff]  }
 0x42b   : > { %5930 = vmatpush1.bf16.msra.mxu0 %v8974_v23  ;;  %v9041_v23 = vld [vmem:[#allocation11 + $0x128] ss:$28 sps:$4 sm:$0xff]  }
 0x42c   : > { %6135 = vmatpush1.bf16.msra.mxu1 %v8977_v15  ;;  %5931 = vmatprep.subr.bf16.mxu0 %v8982_v61  ;;  %v9048_v15 = vld [vmem:[#allocation11 + $0x164] ss:$28 sps:$4 sm:$0xff]  }
 0x42d   : > { %6136 = vmatprep.subr.bf16.mxu1 %v8985_v29  ;;  %v9049_v61 = vld [vmem:[#allocation11 + $0x328] ss:$28 sps:$4 sm:$0xff]   ;;  %v9046_v29 = vld [vmem:[#allocation11 + $0x160] ss:$28 sps:$4 sm:$0xff]  }
 0x42f   : > { %5932 = vmatpush1.bf16.msra.mxu0 %v8980_v42  ;;  %v9050_v42 = vld [vmem:[#allocation11 + $0x168] ss:$28 sps:$4 sm:$0xff]  }
 0x430   : > { %6137 = vmatpush1.bf16.msra.mxu1 %v8983_v35  ;;  %5933 = vmatprep.subr.bf16.mxu0 %v8988_v2  ;;  %v9054_v35 = vld [vmem:[#allocation11 + $0x360] ss:$28 sps:$4 sm:$0xff]   ;;  %v9051_v2 = vld [vmem:[#allocation11 + $0x198] ss:$28 sps:$4 sm:$0xff]  }
 0x431   : > { %6138 = vmatprep.subr.bf16.mxu1 %v8991_v51  ;;  %v9055_v51 = vld [vmem:[#allocation11 + $0x1a0] ss:$28 sps:$4 sm:$0xff]  }
 0x433   : > { %5934 = vmatpush1.bf16.msra.mxu0 %v8986_v28  ;;  %v9058_v28 = vld [vmem:[#allocation11 + $0x1d4] ss:$28 sps:$4 sm:$0xff]  }
 0x434   : > { %6139 = vmatpush1.bf16.msra.mxu1 %v8989_v57  ;;  %5935 = vmatprep.subr.bf16.mxu0 %v8994_v11  ;;  %v9056_v57 = vld [vmem:[#allocation11 + $0x1d0] ss:$28 sps:$4 sm:$0xff]   ;;  %v9060_v11 = vld [vmem:[#allocation11 + $0x398] ss:$28 sps:$4 sm:$0xff]  }
 0x435   : > { %6140 = vmatprep.subr.bf16.mxu1 %v8997_v4  ;;  %v9063_v4 = vld [vmem:[#allocation11 + $0x20c] ss:$28 sps:$4 sm:$0xff]  }
 0x437   : > { %5936 = vmatpush1.bf16.msra.mxu0 %v8992_v14  ;;  %v9064_v14 = vld [vmem:[#allocation11 + $0x590] ss:$28 sps:$4 sm:$0xff]  }
 0x438   : > { %6141 = vmatpush1.bf16.msra.mxu1 %v8995_v31  ;;  %5937 = vmatprep.subr.bf16.mxu0 %v9000_v55  ;;  %v9065_v31 = vld [vmem:[#allocation11 + $0x3d0] ss:$28 sps:$4 sm:$0xff]   ;;  %v9068_v55 = vld [vmem:[#allocation11 + $0x244] ss:$28 sps:$4 sm:$0xff]  }
 0x439   : > { %6142 = vmatprep.subr.bf16.mxu1 %v9003_v49  ;;  %v9069_v49 = vld [vmem:[#allocation11 + $0x5c8] ss:$28 sps:$4 sm:$0xff]  }
 0x43b   : > { %5938 = vmatpush1.bf16.msra.mxu0 %v8998_v5  ;;  %v9066_v5 = vld [vmem:[#allocation11 + $0x240] ss:$28 sps:$4 sm:$0xff]  }
 0x43c   : > { %6143 = vmatpush1.bf16.msra.mxu1 %v9001_v21  ;;  %5939 = vmatprep.subr.bf16.mxu0 %v9006_v33  ;;  %v9070_v21 = vld [vmem:[#allocation11 + $0x408] ss:$28 sps:$4 sm:$0xff]   ;;  %v9073_v33 = vld [vmem:[#allocation11 + $0x27c] ss:$28 sps:$4 sm:$0xff]  }
 0x43d   : > { %6144 = vmatprep.subr.bf16.mxu1 %v9009_v63  ;;  %v9071_v63 = vld [vmem:[#allocation11 + $0x278] ss:$28 sps:$4 sm:$0xff]  }
 0x43f   : > { %5940 = vmatpush1.bf16.msra.mxu0 %v9004_v7  ;;  %v9075_v7 = vld [vmem:[#allocation11 + $0x440] ss:$28 sps:$4 sm:$0xff]  }
 0x440   : > { %6145 = vmatpush1.bf16.msra.mxu1 %v9007_v13  ;;  %5941 = vmatprep.subr.bf16.mxu0 %v9012_v41  ;;  %v9078_v13 = vld [vmem:[#allocation11 + $0x2b4] ss:$28 sps:$4 sm:$0xff]  }
 0x441   : > { %6146 = vmatprep.subr.bf16.mxu1 %v9015_v48  ;;  %v9079_v41 = vld [vmem:[#allocation11 + $0x638] ss:$28 sps:$4 sm:$0xff]  }
 0x442   : > { %v9080_v48 = vld [vmem:[#allocation11 + $0x478] ss:$28 sps:$4 sm:$0xff]  }
 0x443   : > { %5942 = vmatpush1.bf16.msra.mxu0 %v9010_v17  ;;  %v9083_v17 = vld [vmem:[#allocation11 + $0x2ec] ss:$28 sps:$4 sm:$0xff]  }
 0x444   : > { %6147 = vmatpush1.bf16.msra.mxu1 %v9013_v60  ;;  %6157 = vmatprep.subr.bf16.mxu0 %v9018_v25  ;;  %v9084_v60 = vld [vmem:[#allocation11 + $0x670] ss:$28 sps:$4 sm:$0xff]  }
 0x445   : > { %8020 = vmatprep.subr.bf16.mxu1 %v9019_v26  ;;  %v9085_v25 = vld [vmem:[#allocation11 + $0x4b0] ss:$28 sps:$4 sm:$0xff]   ;;  %v9088_v26 = vld [vmem:[#allocation11 + $0x324] ss:$28 sps:$4 sm:$0xff]  }
 0x446   : > { %5944 = vmatmul.mubr.bf16.vlgmr.msra.gmra.mrb[32].mxu0 %v11044_v46 }
 0x447   : > { %6149 = vmatmul.mubr.bf16.vlgmr.msra.gmra.mrb[56].mxu1 %v11044_v46  ;;  %6158 = vmatpush1.bf16.msra.mxu0 %v9016_v6  ;;  %v9089_v6 = vld [vmem:[#allocation11 + $0x6a8] ss:$28 sps:$4 sm:$0xff]  }
 0x448   : > { %6189 = vmatprep.mubr.bf16.mxu0 %v10916_v16  ;;  %8021 = vmatpush3.bf16.msra.mxu1 %v9020_v19  ;;  %v9086_v19 = vld [vmem:[#allocation11 + $0x320] ss:$28 sps:$4 sm:$0xff]  }
 0x449   : > { %6394 = vmatprep.mubr.bf16.mxu1 %v10916_v16  ;;  %6159 = vmatprep.subr.bf16.mxu0 %v9023_v22  ;;  %v9036_v16 = vld [vmem:[#allocation11 + $0xf0] ss:$28 sps:$4 sm:$0xff]   ;;  %v9090_v22 = vld [vmem:[#allocation11 + $0x4e8] ss:$28 sps:$4 sm:$0xff]  }
 0x44a   : > { %8022 = vmatprep.subr.bf16.mxu1 %v9024_v10  ;;  %v9093_v10 = vld [vmem:[#allocation11 + $0x35c] ss:$28 sps:$4 sm:$0xff]  }
 0x44b   : > { %6160 = vmatpush1.bf16.msra.mxu0 %v9021_v34  ;;  %v9094_v34 = vld [vmem:[#allocation11 + $0x6e0] ss:$28 sps:$4 sm:$0xff]  }
 0x44c   : > { %8023 = vmatpush3.bf16.msra.mxu1 %v9025_v54  ;;  %6161 = vmatprep.subr.bf16.mxu0 %v9028_v27  ;;  %v9091_v54 = vld [vmem:[#allocation11 + $0x358] ss:$28 sps:$4 sm:$0xff]   ;;  %v9095_v27 = vld [vmem:[#allocation11 + $0x520] ss:$28 sps:$4 sm:$0xff]  }
 0x44d   : > { %8024 = vmatprep.subr.bf16.mxu1 %v9029_v9  ;;  %v9098_v9 = vld [vmem:[#allocation11 + $0x394] ss:$28 sps:$4 sm:$0xff]  }
 0x44f   : > { %6162 = vmatpush1.bf16.msra.mxu0 %v9026_v0  ;;  %v9099_v0 = vld [vmem:[#allocation11 + $0x8d8] ss:$28 sps:$4 sm:$0xff]  }
 0x450   : > { %8025 = vmatpush3.bf16.msra.mxu1 %v9030_v40  ;;  %6163 = vmatprep.subr.bf16.mxu0 %v9033_v12  ;;  %v9096_v40 = vld [vmem:[#allocation11 + $0x390] ss:$28 sps:$4 sm:$0xff]   ;;  %v9100_v12 = vld [vmem:[#allocation11 + $0x718] ss:$28 sps:$4 sm:$0xff]  }
 0x451   : > { %8026 = vmatprep.subr.bf16.mxu1 %v9034_v37  ;;  %v9103_v37 = vld [vmem:[#allocation11 + $0x3cc] ss:$28 sps:$4 sm:$0xff]  }
 0x453   : > { %6164 = vmatpush1.bf16.msra.mxu0 %v9031_v20  ;;  %v9104_v20 = vld [vmem:[#allocation11 + $0x910] ss:$28 sps:$4 sm:$0xff]  }
 0x454   : > { %8027 = vmatpush3.bf16.msra.mxu1 %v9035_v30  ;;  %6165 = vmatprep.subr.bf16.mxu0 %v9038_v3  ;;  %v9101_v30 = vld [vmem:[#allocation11 + $0x3c8] ss:$28 sps:$4 sm:$0xff]   ;;  %v9105_v3 = vld [vmem:[#allocation11 + $0x750] ss:$28 sps:$4 sm:$0xff]  }
 0x455   : > { %8028 = vmatprep.subr.bf16.mxu1 %v9039_v53  ;;  %v9108_v53 = vld [vmem:[#allocation11 + $0x404] ss:$28 sps:$4 sm:$0xff]  }
 0x457   : > { %6166 = vmatpush1.bf16.msra.mxu0 %v9036_v16  ;;  %v9109_v16 = vld [vmem:[#allocation11 + $0x948] ss:$28 sps:$4 sm:$0xff]  }
 0x458   : > { %8029 = vmatpush3.bf16.msra.mxu1 %v9040_v58  ;;  %6167 = vmatprep.subr.bf16.mxu0 %v9043_v24  ;;  %v9106_v58 = vld [vmem:[#allocation11 + $0x400] ss:$28 sps:$4 sm:$0xff]  }
 0x459   : > { %8030 = vmatprep.subr.bf16.mxu1 %v9044_v62  ;;  %v9113_v24 = vld [vmem:[#allocation11 + $0x43c] ss:$28 sps:$4 sm:$0xff]  }
 0x45a   : > { %v9114_v62 = vld [vmem:[#allocation11 + $0x980] ss:$28 sps:$4 sm:$0xff]  }
 0x45b   : > { %6168 = vmatpush1.bf16.msra.mxu0 %v9041_v23  ;;  %v9111_v23 = vld [vmem:[#allocation11 + $0x438] ss:$28 sps:$4 sm:$0xff]  }
 0x45c   : > { %8031 = vmatpush3.bf16.msra.mxu1 %v9045_v59  ;;  %6169 = vmatprep.subr.bf16.mxu0 %v9048_v15  ;;  %v9118_v59 = vld [vmem:[#allocation11 + $0x474] ss:$28 sps:$4 sm:$0xff]  }
 0x45d   : > { %8032 = vmatprep.subr.bf16.mxu1 %v9049_v61  ;;  %v9119_v15 = vld [vmem:[#allocation11 + $0x9b8] ss:$28 sps:$4 sm:$0xff]   ;;  %v9116_v61 = vld [vmem:[#allocation11 + $0x470] ss:$28 sps:$4 sm:$0xff]  }
 0x45f   : > { %6170 = vmatpush1.bf16.msra.mxu0 %v9046_v29  ;;  %v9120_v29 = vld [vmem:[#allocation11 + $0x7f8] ss:$28 sps:$4 sm:$0xff]  }
 0x460   : > { %8033 = vmatpush3.bf16.msra.mxu1 %v9050_v42  ;;  %6171 = vmatprep.subr.bf16.mxu0 %v9053_v56  ;;  %v9123_v42 = vld [vmem:[#allocation11 + $0x4ac] ss:$28 sps:$4 sm:$0xff]  }
 0x461   : > { %8034 = vmatprep.subr.bf16.mxu1 %v9054_v35  ;;  %v9124_v56 = vld [vmem:[#allocation11 + $0x9f0] ss:$28 sps:$4 sm:$0xff]   ;;  %v9121_v35 = vld [vmem:[#allocation11 + $0x4a8] ss:$28 sps:$4 sm:$0xff]  }
 0x463   : > { %6172 = vmatpush1.bf16.msra.mxu0 %v9051_v2  ;;  %v9125_v2 = vld [vmem:[#allocation11 + $0x830] ss:$28 sps:$4 sm:$0xff]  }
 0x464   : > { %8035 = vmatpush3.bf16.msra.mxu1 %v9055_v51  ;;  %6173 = vmatprep.subr.bf16.mxu0 %v9058_v28  ;;  %v9128_v51 = vld [vmem:[#allocation11 + $0x4e4] ss:$28 sps:$4 sm:$0xff]  }
 0x465   : > { %8042 = vmatprep.subr.bf16.mxu1 %v9059_v18  ;;  %v9129_v28 = vld [vmem:[#allocation11 + $0xa28] ss:$28 sps:$4 sm:$0xff]   ;;  %v9126_v18 = vld [vmem:[#allocation11 + $0x4e0] ss:$28 sps:$4 sm:$0xff]  }
 0x467   : > { %6395 = vmatmul.mubr.bf16.vlgmr.msra.gmra.mrb[60].mxu1 %v10913_v32  ;;  %6174 = vmatpush1.bf16.msra.mxu0 %v9056_v57  ;;  %v9130_v57 = vld [vmem:[#allocation11 + $0x868] ss:$28 sps:$4 sm:$0xff]  }
 0x468   : > { %8043 = vmatpush3.bf16.msra.mxu1 %v9060_v11  ;;  %6434 = vmatprep.mubr.bf16.mxu1 %v10937_v8  ;;  %v9133_v11 = vld [vmem:[#allocation11 + $0x51c] ss:$28 sps:$4 sm:$0xff]  }
 0x469   : > { %6175 = vmatprep.subr.bf16.mxu0 %v9063_v4  ;;  %8044 = vmatprep.subr.bf16.mxu1 %v9064_v14  ;;  %v9134_v4 = vld [vmem:[#allocation11 + $0xa60] ss:$28 sps:$4 sm:$0xff]   ;;  %v9131_v14 = vld [vmem:[#allocation11 + $0x518] ss:$28 sps:$4 sm:$0xff]  }
 0x46b   : > { %6176 = vmatpush1.bf16.msra.mxu0 %v9061_v38  ;;  %v9135_v38 = vld [vmem:[#allocation11 + $0x8a0] ss:$28 sps:$4 sm:$0xff]  }
 0x46c   : > { %8045 = vmatpush3.bf16.msra.mxu1 %v9065_v31  ;;  %6177 = vmatprep.subr.bf16.mxu0 %v9068_v55  ;;  %v9138_v31 = vld [vmem:[#allocation11 + $0x554] ss:$28 sps:$4 sm:$0xff]  }
 0x46d   : > { %8046 = vmatprep.subr.bf16.mxu1 %v9069_v49  ;;  %v9139_v55 = vld [vmem:[#allocation11 + $0xc58] ss:$28 sps:$4 sm:$0xff]   ;;  %v9136_v49 = vld [vmem:[#allocation11 + $0x550] ss:$28 sps:$4 sm:$0xff]  }
 0x46f   : > { %6178 = vmatpush1.bf16.msra.mxu0 %v9066_v5  ;;  %v9140_v5 = vld [vmem:[#allocation11 + $0xa98] ss:$28 sps:$4 sm:$0xff]  }
 0x470   : > { %8047 = vmatpush3.bf16.msra.mxu1 %v9070_v21  ;;  %6179 = vmatprep.subr.bf16.mxu0 %v9073_v33  ;;  %v9143_v21 = vld [vmem:[#allocation11 + $0x58c] ss:$28 sps:$4 sm:$0xff]  }
 0x471   : > { %8048 = vmatprep.subr.bf16.mxu1 %v9074_v52  ;;  %v9144_v33 = vld [vmem:[#allocation11 + $0xc90] ss:$28 sps:$4 sm:$0xff]   ;;  %v9141_v52 = vld [vmem:[#allocation11 + $0x588] ss:$28 sps:$4 sm:$0xff]  }
 0x473   : > { %6180 = vmatpush1.bf16.msra.mxu0 %v9071_v63  ;;  %v9145_v63 = vld [vmem:[#allocation11 + $0xad0] ss:$28 sps:$4 sm:$0xff]  }
 0x474   : > { %8049 = vmatpush3.bf16.msra.mxu1 %v9075_v7  ;;  %6181 = vmatprep.subr.bf16.mxu0 %v9078_v13  ;;  %v9148_v7 = vld [vmem:[#allocation11 + $0x5c4] ss:$28 sps:$4 sm:$0xff]  }
 0x475   : > { %8050 = vmatprep.subr.bf16.mxu1 %v9079_v41  ;;  %v9149_v13 = vld [vmem:[#allocation11 + $0xcc8] ss:$28 sps:$4 sm:$0xff]   ;;  %v9146_v41 = vld [vmem:[#allocation11 + $0x5c0] ss:$28 sps:$4 sm:$0xff]  }
 0x477   : > { %6182 = vmatpush1.bf16.msra.mxu0 %v9076_v47  ;;  %v9150_v47 = vld [vmem:[#allocation11 + $0xb08] ss:$28 sps:$4 sm:$0xff]  }
 0x478   : > { %8051 = vmatpush3.bf16.msra.mxu1 %v9080_v48  ;;  %6183 = vmatprep.subr.bf16.mxu0 %v9083_v17  ;;  %v9153_v48 = vld [vmem:[#allocation11 + $0x5fc] ss:$28 sps:$4 sm:$0xff]  }
 0x479   : > { %8052 = vmatprep.subr.bf16.mxu1 %v9084_v60  ;;  %v9154_v17 = vld [vmem:[#allocation11 + $0xd00] ss:$28 sps:$4 sm:$0xff]   ;;  %v9151_v60 = vld [vmem:[#allocation11 + $0x5f8] ss:$28 sps:$4 sm:$0xff]  }
 0x47b   : > { %6184 = vmatpush1.bf16.msra.mxu0 %v9081_v43  ;;  %v9155_v43 = vld [vmem:[#allocation11 + $0xb40] ss:$28 sps:$4 sm:$0xff]  }
 0x47c   : > { %8053 = vmatpush3.bf16.msra.mxu1 %v9085_v25  ;;  %6185 = vmatprep.subr.bf16.mxu0 %v9088_v26  ;;  %v9158_v25 = vld [vmem:[#allocation11 + $0x634] ss:$28 sps:$4 sm:$0xff]  }
 0x47d   : > { %8054 = vmatprep.subr.bf16.mxu1 %v9089_v6  ;;  %v9159_v26 = vld [vmem:[#allocation11 + $0xd38] ss:$28 sps:$4 sm:$0xff]   ;;  %v9156_v6 = vld [vmem:[#allocation11 + $0x630] ss:$28 sps:$4 sm:$0xff]  }
 0x47f   : > { %6186 = vmatpush1.bf16.msra.mxu0 %v9086_v19  ;;  %v9160_v19 = vld [vmem:[#allocation11 + $0xb78] ss:$28 sps:$4 sm:$0xff]  }
 0x480   : > { %8055 = vmatpush3.bf16.msra.mxu1 %v9090_v22  ;;  %6187 = vmatprep.subr.bf16.mxu0 %v9093_v10  ;;  %v9163_v22 = vld [vmem:[#allocation11 + $0x66c] ss:$28 sps:$4 sm:$0xff]  }
 0x481   : > { %8056 = vmatprep.subr.bf16.mxu1 %v9094_v34  ;;  %v9164_v10 = vld [vmem:[#allocation11 + $0xd70] ss:$28 sps:$4 sm:$0xff]   ;;  %v9161_v34 = vld [vmem:[#allocation11 + $0x668] ss:$28 sps:$4 sm:$0xff]  }
 0x483   : > { %6188 = vmatpush1.bf16.msra.mxu0 %v9091_v54  ;;  %v9165_v54 = vld [vmem:[#allocation11 + $0xbb0] ss:$28 sps:$4 sm:$0xff]  }
 0x484   : > { %8057 = vmatpush3.bf16.msra.mxu1 %v9095_v27  ;;  %6198 = vmatprep.subr.bf16.mxu0 %v9098_v9  ;;  %v9168_v27 = vld [vmem:[#allocation11 + $0x6a4] ss:$28 sps:$4 sm:$0xff]  }
 0x485   : > { %8064 = vmatprep.subr.bf16.mxu1 %v9099_v0  ;;  %v9169_v9 = vld [vmem:[#allocation11 + $0xda8] ss:$28 sps:$4 sm:$0xff]   ;;  %v9166_v0 = vld [vmem:[#allocation11 + $0x6a0] ss:$28 sps:$4 sm:$0xff]  }
 0x486   : > { %6190 = vmatmul.mubr.bf16.vlgmr.msra.gmra.mrb[36].mxu0 %v10913_v32  ;;  %v9110_v32 = vld [vmem:[#allocation11 + $0x788] ss:$28 sps:$4 sm:$0xff]  }
 0x487   : > { %6435 = vmatmul.mubr.bf16.vlgmr.msra.gmra.mrb[64].mxu1 %v11010_v36  ;;  %6199 = vmatpush1.bf16.msra.mxu0 %v9096_v40  ;;  %v9170_v40 = vld [vmem:[#allocation11 + $0xbe8] ss:$28 sps:$4 sm:$0xff]  }
 0x488   : > { %6230 = vmatprep.mubr.bf16.mxu0 %v10937_v8  ;;  %8065 = vmatpush3.bf16.msra.mxu1 %v9100_v12  ;;  %v9115_v8 = vld [vmem:[#allocation11 + $0x7c0] ss:$28 sps:$4 sm:$0xff]  }
 0x489   : > { %6474 = vmatprep.mubr.bf16.mxu1 %v11012_v44  ;;  %6200 = vmatprep.subr.bf16.mxu0 %v9103_v37  ;;  %v9173_v12 = vld [vmem:[#allocation11 + $0x6dc] ss:$28 sps:$4 sm:$0xff]  }
 0x48a   : > { %8066 = vmatprep.subr.bf16.mxu1 %v9104_v20  ;;  %v9174_v37 = vld [vmem:[#allocation11 + $0xde0] ss:$28 sps:$4 sm:$0xff]   ;;  %v9171_v20 = vld [vmem:[#allocation11 + $0x6d8] ss:$28 sps:$4 sm:$0xff]  }
 0x48b   : > { %6201 = vmatpush1.bf16.msra.mxu0 %v9101_v30  ;;  %v9175_v30 = vld [vmem:[#allocation11 + $0xc20] ss:$28 sps:$4 sm:$0xff]  }
 0x48c   : > { %8067 = vmatpush3.bf16.msra.mxu1 %v9105_v3  ;;  %6202 = vmatprep.subr.bf16.mxu0 %v9108_v53  ;;  %v9178_v3 = vld [vmem:[#allocation11 + $0x714] ss:$28 sps:$4 sm:$0xff]  }
 0x48d   : > { %8068 = vmatprep.subr.bf16.mxu1 %v9109_v16  ;;  %v9179_v53 = vld [vmem:[#allocation11 + $0xfd8] ss:$28 sps:$4 sm:$0xff]   ;;  %v9176_v16 = vld [vmem:[#allocation11 + $0x710] ss:$28 sps:$4 sm:$0xff]  }
 0x48f   : > { %6203 = vmatpush1.bf16.msra.mxu0 %v9106_v58  ;;  %v9180_v58 = vld [vmem:[#allocation11 + $0xe18] ss:$28 sps:$4 sm:$0xff]  }
 0x490   : > { %8069 = vmatpush3.bf16.msra.mxu1 %v9110_v32  ;;  %6204 = vmatprep.subr.bf16.mxu0 %v9113_v24  ;;  %v9183_v32 = vld [vmem:[#allocation11 + $0x74c] ss:$28 sps:$4 sm:$0xff]  }
 0x491   : > { %8070 = vmatprep.subr.bf16.mxu1 %v9114_v62  ;;  %v9184_v24 = vld [vmem:[#allocation11 + $0x1010] ss:$28 sps:$4 sm:$0xff]   ;;  %v9181_v62 = vld [vmem:[#allocation11 + $0x748] ss:$28 sps:$4 sm:$0xff]  }
 0x493   : > { %6205 = vmatpush1.bf16.msra.mxu0 %v9111_v23  ;;  %v9185_v23 = vld [vmem:[#allocation11 + $0xe50] ss:$28 sps:$4 sm:$0xff]  }
 0x494   : > { %8071 = vmatpush3.bf16.msra.mxu1 %v9115_v8  ;;  %6206 = vmatprep.subr.bf16.mxu0 %v9118_v59  ;;  %v9188_v8 = vld [vmem:[#allocation11 + $0x784] ss:$28 sps:$4 sm:$0xff]  }
 0x495   : > { %8072 = vmatprep.subr.bf16.mxu1 %v9119_v15  ;;  %v9189_v59 = vld [vmem:[#allocation11 + $0x1048] ss:$28 sps:$4 sm:$0xff]   ;;  %v9186_v15 = vld [vmem:[#allocation11 + $0x780] ss:$28 sps:$4 sm:$0xff]  }
 0x497   : > { %6207 = vmatpush1.bf16.msra.mxu0 %v9116_v61  ;;  %v9193_v61 = vld [vmem:[#allocation11 + $0x7bc] ss:$28 sps:$4 sm:$0xff]  }
 0x498   : > { %8073 = vmatpush3.bf16.msra.mxu1 %v9120_v29  ;;  %6208 = vmatprep.subr.bf16.mxu0 %v9123_v42  ;;  %v9194_v29 = vld [vmem:[#allocation11 + $0x1080] ss:$28 sps:$4 sm:$0xff]   ;;  %v9191_v42 = vld [vmem:[#allocation11 + $0x7b8] ss:$28 sps:$4 sm:$0xff]  }
 0x499   : > { %8074 = vmatprep.subr.bf16.mxu1 %v9124_v56  ;;  %v9198_v56 = vld [vmem:[#allocation11 + $0x7f4] ss:$28 sps:$4 sm:$0xff]  }
 0x49b   : > { %6209 = vmatpush1.bf16.msra.mxu0 %v9121_v35  ;;  %v9199_v35 = vld [vmem:[#allocation11 + $0x10b8] ss:$28 sps:$4 sm:$0xff]  }
 0x49c   : > { %8075 = vmatpush3.bf16.msra.mxu1 %v9125_v2  ;;  %6210 = vmatprep.subr.bf16.mxu0 %v9128_v51  ;;  %v9196_v2 = vld [vmem:[#allocation11 + $0x7f0] ss:$28 sps:$4 sm:$0xff]   ;;  %v9200_v51 = vld [vmem:[#allocation11 + $0xef8] ss:$28 sps:$4 sm:$0xff]  }
 0x49d   : > { %8076 = vmatprep.subr.bf16.mxu1 %v9129_v28  ;;  %v9203_v28 = vld [vmem:[#allocation11 + $0x82c] ss:$28 sps:$4 sm:$0xff]  }
 0x49f   : > { %6211 = vmatpush1.bf16.msra.mxu0 %v9126_v18  ;;  %v9204_v18 = vld [vmem:[#allocation11 + $0x10f0] ss:$28 sps:$4 sm:$0xff]  }
 0x4a0   : > { %8077 = vmatpush3.bf16.msra.mxu1 %v9130_v57  ;;  %6212 = vmatprep.subr.bf16.mxu0 %v9133_v11  ;;  %v9201_v57 = vld [vmem:[#allocation11 + $0x828] ss:$28 sps:$4 sm:$0xff]   ;;  %v9205_v11 = vld [vmem:[#allocation11 + $0xf30] ss:$28 sps:$4 sm:$0xff]  }
 0x4a1   : > { %8078 = vmatprep.subr.bf16.mxu1 %v9134_v4  ;;  %v9208_v4 = vld [vmem:[#allocation11 + $0x864] ss:$28 sps:$4 sm:$0xff]  }
 0x4a3   : > { %6213 = vmatpush1.bf16.msra.mxu0 %v9131_v14  ;;  %v9209_v14 = vld [vmem:[#allocation11 + $0x1128] ss:$28 sps:$4 sm:$0xff]  }
 0x4a4   : > { %8079 = vmatpush3.bf16.msra.mxu1 %v9135_v38  ;;  %6214 = vmatprep.subr.bf16.mxu0 %v9138_v31  ;;  %v9206_v38 = vld [vmem:[#allocation11 + $0x860] ss:$28 sps:$4 sm:$0xff]   ;;  %v9210_v31 = vld [vmem:[#allocation11 + $0xf68] ss:$28 sps:$4 sm:$0xff]  }
 0x4a5   : > { %8086 = vmatprep.subr.bf16.mxu1 %v9139_v55  ;;  %v9213_v55 = vld [vmem:[#allocation11 + $0x89c] ss:$28 sps:$4 sm:$0xff]  }
 0x4a7   : > { %6475 = vmatmul.mubr.bf16.vlgmr.msra.gmra.mrb[68].mxu1 %v11022_v50  ;;  %6215 = vmatpush1.bf16.msra.mxu0 %v9136_v49  ;;  %v9214_v49 = vld [vmem:[#allocation11 + $0x1160] ss:$28 sps:$4 sm:$0xff]  }
 0x4a8   : > { %8087 = vmatpush3.bf16.msra.mxu1 %v9140_v5  ;;  %6514 = vmatprep.mubr.bf16.mxu1 %v11025_v45  ;;  %v9211_v5 = vld [vmem:[#allocation11 + $0x898] ss:$28 sps:$4 sm:$0xff]  }
 0x4a9   : > { %6216 = vmatprep.subr.bf16.mxu0 %v9143_v21  ;;  %8088 = vmatprep.subr.bf16.mxu1 %v9144_v33  ;;  %v9215_v21 = vld [vmem:[#allocation11 + $0xfa0] ss:$28 sps:$4 sm:$0xff]   ;;  %v9218_v33 = vld [vmem:[#allocation11 + $0x8d4] ss:$28 sps:$4 sm:$0xff]  }
 0x4ab   : > { %6217 = vmatpush1.bf16.msra.mxu0 %v9141_v52  ;;  %v9237_v52 = vld [vmem:[#allocation14 + $0x40] sm:$0xff]  }
 0x4ac   : > { %8089 = vmatpush3.bf16.msra.mxu1 %v9145_v63  ;;  %6218 = vmatprep.subr.bf16.mxu0 %v9148_v7  ;;  %v9216_v63 = vld [vmem:[#allocation11 + $0x8d0] ss:$28 sps:$4 sm:$0xff]  }
 0x4ad   : > { %8090 = vmatprep.subr.bf16.mxu1 %v9149_v13  ;;  %v9221_v7 = vld [vmem:[#allocation11 + $0x90c] ss:$28 sps:$4 sm:$0xff]  }
 0x4ae   : > { %v9241_v13 = vld [vmem:[#allocation14] sm:$0xff]  }
 0x4af   : > { %6219 = vmatpush1.bf16.msra.mxu0 %v9146_v41  ;;  %v9242_v41 = vld [vmem:[#allocation14 + $0x48] sm:$0xff]  }
 0x4b0   : > { %8091 = vmatpush3.bf16.msra.mxu1 %v9150_v47  ;;  %6220 = vmatprep.subr.bf16.mxu0 %v9153_v48  ;;  %v9219_v47 = vld [vmem:[#allocation11 + $0x908] ss:$28 sps:$4 sm:$0xff]  }
 0x4b1   : > { %8092 = vmatprep.subr.bf16.mxu1 %v9154_v17  ;;  %v9224_v48 = vld [vmem:[#allocation11 + $0x944] ss:$28 sps:$4 sm:$0xff]   ;;  %v9246_v17 = vld [vmem:[#allocation14 + $0x8] sm:$0xff]  }
 0x4b3   : > { %6221 = vmatpush1.bf16.msra.mxu0 %v9151_v60  ;;  %v9247_v60 = vld [vmem:[#allocation14 + $0x50] sm:$0xff]  }
 0x4b4   : > { %8093 = vmatpush3.bf16.msra.mxu1 %v9155_v43  ;;  %6222 = vmatprep.subr.bf16.mxu0 %v9158_v25  ;;  %v9222_v43 = vld [vmem:[#allocation11 + $0x940] ss:$28 sps:$4 sm:$0xff]  }
 0x4b5   : > { %8094 = vmatprep.subr.bf16.mxu1 %v9159_v26  ;;  %v9227_v25 = vld [vmem:[#allocation11 + $0x97c] ss:$28 sps:$4 sm:$0xff]  }
 0x4b6   : > { %v9251_v26 = vld [vmem:[#allocation14 + $0x10] sm:$0xff]  }
 0x4b7   : > { %6223 = vmatpush1.bf16.msra.mxu0 %v9156_v6  ;;  %v9252_v6 = vld [vmem:[#allocation14 + $0x58] sm:$0xff]  }
 0x4b8   : > { %8095 = vmatpush3.bf16.msra.mxu1 %v9160_v19  ;;  %6224 = vmatprep.subr.bf16.mxu0 %v9163_v22  ;;  %v9225_v19 = vld [vmem:[#allocation11 + $0x978] ss:$28 sps:$4 sm:$0xff]  }
 0x4b9   : > { %8096 = vmatprep.subr.bf16.mxu1 %v9164_v10  ;;  %v9230_v22 = vld [vmem:[#allocation11 + $0x9b4] ss:$28 sps:$4 sm:$0xff]   ;;  %v9256_v10 = vld [vmem:[#allocation14 + $0x18] sm:$0xff]  }
 0x4bb   : > { %6225 = vmatpush1.bf16.msra.mxu0 %v9161_v34  ;;  %v9257_v34 = vld [vmem:[#allocation14 + $0x60] sm:$0xff]  }
 0x4bc   : > { %8097 = vmatpush3.bf16.msra.mxu1 %v9165_v54  ;;  %6226 = vmatprep.subr.bf16.mxu0 %v9168_v27  ;;  %v9228_v54 = vld [vmem:[#allocation11 + $0x9b0] ss:$28 sps:$4 sm:$0xff]  }
 0x4bd   : > { %8098 = vmatprep.subr.bf16.mxu1 %v9169_v9  ;;  %v9233_v27 = vld [vmem:[#allocation11 + $0x9ec] ss:$28 sps:$4 sm:$0xff]  }
 0x4be   : > { %v9261_v9 = vld [vmem:[#allocation14 + $0x20] sm:$0xff]  }
 0x4bf   : > { %6227 = vmatpush1.bf16.msra.mxu0 %v9166_v0  ;;  %v9262_v0 = vld [vmem:[#allocation14 + $0x68] sm:$0xff]  }
 0x4c0   : > { %8099 = vmatpush3.bf16.msra.mxu1 %v9170_v40  ;;  %6228 = vmatprep.subr.bf16.mxu0 %v9173_v12  ;;  %v9231_v40 = vld [vmem:[#allocation11 + $0x9e8] ss:$28 sps:$4 sm:$0xff]  }
 0x4c1   : > { %8100 = vmatprep.subr.bf16.mxu1 %v9174_v37  ;;  %v9236_v12 = vld [vmem:[#allocation11 + $0xa24] ss:$28 sps:$4 sm:$0xff]   ;;  %v9266_v37 = vld [vmem:[#allocation14 + $0x28] sm:$0xff]  }
 0x4c3   : > { %6229 = vmatpush1.bf16.msra.mxu0 %v9171_v20  ;;  %v9267_v20 = vld [vmem:[#allocation14 + $0x70] sm:$0xff]  }
 0x4c4   : > { %8101 = vmatpush3.bf16.msra.mxu1 %v9175_v30  ;;  %6239 = vmatprep.subr.bf16.mxu0 %v9178_v3  ;;  %v9234_v30 = vld [vmem:[#allocation11 + $0xa20] ss:$28 sps:$4 sm:$0xff]  }
 0x4c5   : > { %8108 = vmatprep.subr.bf16.mxu1 %v9179_v53  ;;  %v9240_v3 = vld [vmem:[#allocation11 + $0xa5c] ss:$28 sps:$4 sm:$0xff]  }
 0x4c6   : > { %6231 = vmatmul.mubr.bf16.vlgmr.msra.gmra.mrb[36].mxu0 %v11010_v36  ;;  %v9190_v36 = vld [vmem:[#allocation11 + $0xe88] ss:$28 sps:$4 sm:$0xff]   ;;  %v9271_v53 = vld [vmem:[#allocation14 + $0x30] sm:$0xff]  }
 0x4c7   : > { %6515 = vmatmul.mubr.bf16.vlgmr.msra.gmra.mrb[72].mxu1 %v11034_v1  ;;  %6240 = vmatpush1.bf16.msra.mxu0 %v9176_v16  ;;  %v9272_v16 = vld [vmem:[#allocation14 + $0x78] sm:$0xff]  }
 0x4c8   : > { %6271 = vmatprep.mubr.bf16.mxu0 %v11012_v44  ;;  %8109 = vmatpush3.bf16.msra.mxu1 %v9180_v58  ;;  %v9195_v44 = vld [vmem:[#allocation11 + $0xec0] ss:$28 sps:$4 sm:$0xff]   ;;  %v9238_v58 = vld [vmem:[#allocation11 + $0xa58] ss:$28 sps:$4 sm:$0xff]  }
 0x4c9   : > { %6554 = vmatprep.mubr.bf16.mxu1 %v11037_v39  ;;  %6241 = vmatprep.subr.bf16.mxu0 %v9183_v32  ;;  %v9245_v32 = vld [vmem:[#allocation11 + $0xa94] ss:$28 sps:$4 sm:$0xff]  }
 0x4ca   : > { %8110 = vmatprep.subr.bf16.mxu1 %v9184_v24  ;;  %v9276_v24 = vld [vmem:[#allocation14 + $0x38] sm:$0xff]  }
 0x4cb   : > { %6242 = vmatpush1.bf16.msra.mxu0 %v9181_v62  ;;  %v9277_v62 = vld [vmem:[#allocation14 + $0xc0] sm:$0xff]  }
 0x4cc   : > { %8111 = vmatpush3.bf16.msra.mxu1 %v9185_v23  ;;  %6243 = vmatprep.subr.bf16.mxu0 %v9188_v8  ;;  %v9243_v23 = vld [vmem:[#allocation11 + $0xa90] ss:$28 sps:$4 sm:$0xff]  }
 0x4cd   : > { %8112 = vmatprep.subr.bf16.mxu1 %v9189_v59  ;;  %v9250_v8 = vld [vmem:[#allocation11 + $0xacc] ss:$28 sps:$4 sm:$0xff]  }
 0x4ce   : > { %v9248_v59 = vld [vmem:[#allocation11 + $0xac8] ss:$28 sps:$4 sm:$0xff]  }
 0x4cf   : > { %6244 = vmatpush1.bf16.msra.mxu0 %v9186_v15  ;;  %v9255_v15 = vld [vmem:[#allocation11 + $0xb04] ss:$28 sps:$4 sm:$0xff]  }
 0x4d0   : > { %8113 = vmatpush3.bf16.msra.mxu1 %v9190_v36  ;;  %6245 = vmatprep.subr.bf16.mxu0 %v9193_v61  ;;  %v9253_v36 = vld [vmem:[#allocation11 + $0xb00] ss:$28 sps:$4 sm:$0xff]  }
 0x4d1   : > { %8114 = vmatprep.subr.bf16.mxu1 %v9194_v29  ;;  %v9260_v61 = vld [vmem:[#allocation11 + $0xb3c] ss:$28 sps:$4 sm:$0xff]  }
 0x4d2   : > { %v9258_v29 = vld [vmem:[#allocation11 + $0xb38] ss:$28 sps:$4 sm:$0xff]  }
 0x4d3   : > { %6246 = vmatpush1.bf16.msra.mxu0 %v9191_v42  ;;  %v9265_v42 = vld [vmem:[#allocation11 + $0xb74] ss:$28 sps:$4 sm:$0xff]  }
 0x4d4   : > { %8115 = vmatpush3.bf16.msra.mxu1 %v9195_v44  ;;  %6247 = vmatprep.subr.bf16.mxu0 %v9198_v56  ;;  %v9263_v44 = vld [vmem:[#allocation11 + $0xb70] ss:$28 sps:$4 sm:$0xff]   ;;  %v11065_v56 = vld [vmem:[#allocation12] sm:$0xff] }
 0x4d5   : > { %8116 = vmatprep.subr.bf16.mxu1 %v9199_v35 }
 0x4d7   : > { %6248 = vmatpush1.bf16.msra.mxu0 %v9196_v2  ;;  %v9270_v2 = vld [vmem:[#allocation11 + $0xbac] ss:$28 sps:$4 sm:$0xff]  }
 0x4d8   : > { %8117 = vmatpush3.bf16.msra.mxu1 %v9200_v51  ;;  %6249 = vmatprep.subr.bf16.mxu0 %v9203_v28  ;;  %v11265_v28 = vld [vmem:[#allocation35_spill] sm:$0xff] }
 0x4d9   : > { %8118 = vmatprep.subr.bf16.mxu1 %v9204_v18  ;;  %v5719_v18 = vrot.slane %v11065_v56, %v11265_v28 }
 0x4db   : > { %6250 = vmatpush1.bf16.msra.mxu0 %v9201_v57  ;;  %v9268_v57 = vld [vmem:[#allocation11 + $0xba8] ss:$28 sps:$4 sm:$0xff]  }
 0x4dc   : > { %8119 = vmatpush3.bf16.msra.mxu1 %v9205_v11  ;;  %6251 = vmatprep.subr.bf16.mxu0 %v9208_v4  ;;  %v9275_v4 = vld [vmem:[#allocation11 + $0xbe4] ss:$28 sps:$4 sm:$0xff]  }
 0x4dd   : > { %8120 = vmatprep.subr.bf16.mxu1 %v9209_v14 }
 0x4df   : > { %6252 = vmatpush1.bf16.msra.mxu0 %v9206_v38 }
 0x4e0   : > { %8121 = vmatpush3.bf16.msra.mxu1 %v9210_v31  ;;  %6253 = vmatprep.subr.bf16.mxu0 %v9213_v55 }
 0x4e1   : > { %8122 = vmatprep.subr.bf16.mxu1 %v9214_v49 }
 0x4e3   : > { %6254 = vmatpush1.bf16.msra.mxu0 %v9211_v5 }
 0x4e4   : > { %8123 = vmatpush3.bf16.msra.mxu1 %v9215_v21  ;;  %6255 = vmatprep.subr.bf16.mxu0 %v9218_v33  ;;  %v9273_v33 = vld [vmem:[#allocation11 + $0xbe0] ss:$28 sps:$4 sm:$0xff]  }
 0x4e5   : > { %8130 = vmatprep.subr.bf16.mxu1 %v9237_v52 }
 0x4e7   : > { %6555 = vmatmul.mubr.bf16.vlgmr.msra.gmra.mrb[76].mxu1 %v11044_v46  ;;  %6256 = vmatpush1.bf16.msra.mxu0 %v9216_v63 }
 0x4e8   : > { %6257 = vmatprep.subr.bf16.mxu0 %v9221_v7  ;;  %8131 = vmatpush3.bf16.msra.mxu1 %v9241_v13 }
 0x4e9   : > { %8132 = vmatprep.subr.bf16.mxu1 %v9242_v41  ;;  %v9280_v41 = vld [vmem:[#allocation11 + $0xc1c] ss:$28 sps:$4 sm:$0xff]  }
 0x4eb   : > { %6258 = vmatpush1.bf16.msra.mxu0 %v9219_v47 }
 0x4ec   : > { %6259 = vmatprep.subr.bf16.mxu0 %v9224_v48  ;;  %8133 = vmatpush3.bf16.msra.mxu1 %v9246_v17 }
 0x4ed   : > { %8134 = vmatprep.subr.bf16.mxu1 %v9247_v60 }
 0x4ef   : > { %6260 = vmatpush1.bf16.msra.mxu0 %v9222_v43  ;;  %v9278_v43 = vld [vmem:[#allocation11 + $0xc18] ss:$28 sps:$4 sm:$0xff]  }
 0x4f0   : > { %6261 = vmatprep.subr.bf16.mxu0 %v9227_v25  ;;  %8135 = vmatpush3.bf16.msra.mxu1 %v9251_v26  ;;  %v9281_v25 = vld [vmem:[#allocation14 + $0x80] sm:$0xff]  }
 0x4f1   : > { %8136 = vmatprep.subr.bf16.mxu1 %v9252_v6  ;;  %v9282_v6 = vld [vmem:[#allocation14 + $0xc8] sm:$0xff]  }
 0x4f3   : > { %6262 = vmatpush1.bf16.msra.mxu0 %v9225_v19  ;;  %v9285_v19 = vld [vmem:[#allocation11 + $0xc54] ss:$28 sps:$4 sm:$0xff]  }
 0x4f4   : > { %6263 = vmatprep.subr.bf16.mxu0 %v9230_v22  ;;  %8137 = vmatpush3.bf16.msra.mxu1 %v9256_v10  ;;  %v9283_v10 = vld [vmem:[#allocation11 + $0xc50] ss:$28 sps:$4 sm:$0xff]  }
 0x4f5   : > { %8138 = vmatprep.subr.bf16.mxu1 %v9257_v34  ;;  %v9286_v34 = vld [vmem:[#allocation14 + $0x88] sm:$0xff]  }
 0x4f7   : > { %6264 = vmatpush1.bf16.msra.mxu0 %v9228_v54  ;;  %v9287_v54 = vld [vmem:[#allocation14 + $0xd0] sm:$0xff]  }
 0x4f8   : > { %6265 = vmatprep.subr.bf16.mxu0 %v9233_v27  ;;  %8139 = vmatpush3.bf16.msra.mxu1 %v9261_v9  ;;  %v9290_v27 = vld [vmem:[#allocation11 + $0xc8c] ss:$28 sps:$4 sm:$0xff]  }
 0x4f9   : > { %8140 = vmatprep.subr.bf16.mxu1 %v9262_v0  ;;  %v9288_v9 = vld [vmem:[#allocation11 + $0xc88] ss:$28 sps:$4 sm:$0xff]   ;;  %v9291_v0 = vld [vmem:[#allocation14 + $0x90] sm:$0xff]  }
 0x4fb   : > { %6266 = vmatpush1.bf16.msra.mxu0 %v9231_v40  ;;  %v9292_v40 = vld [vmem:[#allocation14 + $0xd8] sm:$0xff]  }
 0x4fc   : > { %6267 = vmatprep.subr.bf16.mxu0 %v9236_v12  ;;  %8141 = vmatpush3.bf16.msra.mxu1 %v9266_v37  ;;  %v9295_v12 = vld [vmem:[#allocation11 + $0xcc4] ss:$28 sps:$4 sm:$0xff]  }
 0x4fd   : > { %8142 = vmatprep.subr.bf16.mxu1 %v9267_v20  ;;  %v9293_v37 = vld [vmem:[#allocation11 + $0xcc0] ss:$28 sps:$4 sm:$0xff]  }
 0x4fe   : > { %v9296_v20 = vld [vmem:[#allocation14 + $0x98] sm:$0xff]  }
 0x4ff   : > { %6268 = vmatpush1.bf16.msra.mxu0 %v9234_v30  ;;  %v9297_v30 = vld [vmem:[#allocation14 + $0xe0] sm:$0xff]  }
 0x500   : > { %6269 = vmatprep.subr.bf16.mxu0 %v9240_v3  ;;  %8143 = vmatpush3.bf16.msra.mxu1 %v9271_v53  ;;  %v9300_v3 = vld [vmem:[#allocation11 + $0xcfc] ss:$28 sps:$4 sm:$0xff]  }
 0x501   : > { %8144 = vmatprep.subr.bf16.mxu1 %v9272_v16  ;;  %v9298_v53 = vld [vmem:[#allocation11 + $0xcf8] ss:$28 sps:$4 sm:$0xff]   ;;  %v9301_v16 = vld [vmem:[#allocation14 + $0xa0] sm:$0xff]  }
 0x503   : > { %6270 = vmatpush1.bf16.msra.mxu0 %v9238_v58 }
 0x504   : > { %6280 = vmatprep.subr.bf16.mxu0 %v9245_v32  ;;  %8145 = vmatpush3.bf16.msra.mxu1 %v9276_v24  ;;  %v9302_v32 = vld [vmem:[#allocation14 + $0xe8] sm:$0xff]  }
 0x505   : > { %8152 = vmatprep.subr.bf16.mxu1 %v9277_v62  ;;  %v9305_v24 = vld [vmem:[#allocation11 + $0xd34] ss:$28 sps:$4 sm:$0xff]  }
 0x506   : > { %6272 = vmatmul.mubr.bf16.vlgmr.msra.gmra.mrb[36].mxu0 %v11022_v50  ;;  %v11263_v50 = vld [vmem:[#allocation33_spill] sm:$0xff] }
 0x507   : > { %6281 = vmatpush1.bf16.msra.mxu0 %v9243_v23  ;;  %6312 = vmatprep.mubr.bf16.mxu0 %v11025_v45  ;;  %v5726_v35 = vsub.s32 3, %v11263_v50  ;;  %v11264_v45 = vld [vmem:[#allocation34_spill] sm:$0xff]  ;;  %v5722_v58 = vsub.s32 2, %v11263_v50  ;;  %v9303_v62 = vld [vmem:[#allocation11 + $0xd30] ss:$28 sps:$4 sm:$0xff]  }
 0x508   : > { %6282 = vmatprep.subr.bf16.mxu0 %v9250_v8  ;;  %v5715_v51 = vrot.slane %v11065_v56, %v11264_v45  ;;  %v9306_v23 = vld [vmem:[#allocation14 + $0xa8] sm:$0xff]   ;;  %v9313_v45 = vld [vmem:[#allocation11 + $0xda0] ss:$28 sps:$4 sm:$0xff]  }
 0x509   : > { %v5727_v11 = vrot.slane %v11065_v56, %v5726_v35  ;;  %v5723_v8 = vrot.slane %v11065_v56, %v5722_v58  ;;  %v9364_v58 = vld [vmem:[#allocation11 + $0x1124] ss:$28 sps:$4 sm:$0xff]  }
 0x50b   : > { %6283 = vmatpush1.bf16.msra.mxu0 %v9248_v59  ;;  %v9307_v59 = vld [vmem:[#allocation14 + $0xf0] sm:$0xff]  }
 0x50c   : > { %6284 = vmatprep.subr.bf16.mxu0 %v9255_v15  ;;  %v9310_v15 = vld [vmem:[#allocation11 + $0xd6c] ss:$28 sps:$4 sm:$0xff]  }
 0x50f   : > { %6285 = vmatpush1.bf16.msra.mxu0 %v9253_v36  ;;  %v9308_v36 = vld [vmem:[#allocation11 + $0xd68] ss:$28 sps:$4 sm:$0xff]  }
 0x510   : > { %6286 = vmatprep.subr.bf16.mxu0 %v9260_v61  ;;  %v9311_v61 = vld [vmem:[#allocation14 + $0xb0] sm:$0xff]  }
 0x513   : > { %6287 = vmatpush1.bf16.msra.mxu0 %v9258_v29 }
 0x514   : > { %6288 = vmatprep.subr.bf16.mxu0 %v9265_v42  ;;  %v9312_v42 = vld [vmem:[#allocation14 + $0xf8] sm:$0xff]  }
 0x517   : > { %6289 = vmatpush1.bf16.msra.mxu0 %v9263_v44  ;;  %v9315_v44 = vld [vmem:[#allocation11 + $0xda4] ss:$28 sps:$4 sm:$0xff]  }
 0x518   : > { %6290 = vmatprep.subr.bf16.mxu0 %v9270_v2 }
 0x519   : > { %v5945_v14 = vpop.f32.mrb[32].mxu0 }
 0x51a   : > { %v8208_v38 = vadd.f32 %v5945_v14, %v5715_v51  ;;  %v11073_v31 = vpop.f32.mrb[56].mxu1  ;;  %v5947_v55 = vpop.f32.mrb[33].mxu0  ;;  %v9316_v51 = vld [vmem:[#allocation14 + $0xb8] sm:$0xff]   ;;  %v9317_v14 = vld [vmem:[#allocation11 + $0xdd8] ss:$28 sps:$4 sm:$0xff]  }
 0x51b   : > { %v8209_v49 = vadd.f32 %v5947_v55, %v5719_v18  ;;  %v6152_v5 = vpop.f32.mrb[57].mxu1  ;;  %v5949_v21 = vpop.f32.mrb[34].mxu0  ;;  %6291 = vmatpush1.bf16.msra.mxu0 %v9268_v57  ;;  %v8210_v29 = vadd.f32 %v11073_v31, %v5723_v8  ;;  %v9322_v31 = vld [vmem:[#allocation11 + $0xe14] ss:$28 sps:$4 sm:$0xff]  }
 0x51c   : > { %v6563_v52 = vmax.f32 %v8208_v38, 0.0  ;;  %v8211_v63 = vadd.f32 %v6152_v5, %v5727_v11  ;;  %v6154_v7 = vpop.f32.mrb[58].mxu1  ;;  %v5950_v13 = vpop.f32.mrb[35].mxu0  ;;  %6292 = vmatprep.subr.bf16.mxu0 %v9275_v4  ;;  %v9319_v11 = vld [vmem:[#allocation11 + $0xddc] ss:$28 sps:$4 sm:$0xff]  }
 0x51d   : > { %v6564_v47 = vmax.f32 %v8209_v49, 0.0  ;;  %v6155_v48 = vpop.f32.mrb[59].mxu1  ;;  %v6565_v28 = vmax.f32 %v8210_v29, 0.0  ;;  %v9320_v55 = vld [vmem:[#allocation11 + $0xe10] ss:$28 sps:$4 sm:$0xff]  }
 0x51e   : > { %v6566_v17 = vmax.f32 %v8211_v63, 0.0  ;;  %v6569_v26 = vpack.c.bf16 %v6563_v52, %v6563_v52  ;;  %v9325_v49 = vld [vmem:[#allocation11 + $0xe4c] ss:$28 sps:$4 sm:$0xff]   ;;  %v9328_v21 = vld [vmem:[#allocation11 + $0xe84] ss:$28 sps:$4 sm:$0xff]  }
 0x51f   : > { %v6570_v60 = vpack.c.bf16 %v6564_v47, %v6564_v47  ;;  %6293 = vmatpush1.bf16.msra.mxu0 %v9273_v33  ;;  %v6571_v38 = vpack.c.bf16 %v6565_v28, %v6565_v28  ;;  %v9323_v5 = vld [vmem:[#allocation11 + $0xe48] ss:$28 sps:$4 sm:$0xff]   ;;  %v9326_v33 = vld [vmem:[#allocation11 + $0xe80] ss:$28 sps:$4 sm:$0xff]   ;;  %v9329_v63 = vld [vmem:[#allocation11 + $0xeb8] ss:$28 sps:$4 sm:$0xff]  }
 0x520   : > { %6294 = vmatprep.subr.bf16.mxu0 %v9280_v41  ;;  %v6572_v22 = vpack.c.bf16 %v6566_v17, %v6566_v17  ;;  %v9331_v52 = vld [vmem:[#allocation11 + $0xebc] ss:$28 sps:$4 sm:$0xff]   ;;  %v9334_v7 = vld [vmem:[#allocation11 + $0xef4] ss:$28 sps:$4 sm:$0xff]   ;;  %v5738_v41 = vsub.s32 6, %v11263_v50  ;;  %v9368_v29 = vld [vmem:[#allocation14 + $0x140] sm:$0xff]  }
 0x521   : > { %6992 = vmatprep.mubr.bf16.mxu1 %v6570_v60  ;;  %v9332_v13 = vld [vmem:[#allocation11 + $0xef0] ss:$28 sps:$4 sm:$0xff]   ;;  %v9335_v47 = vld [vmem:[#allocation11 + $0xf28] ss:$28 sps:$4 sm:$0xff]  }
 0x522   : > { %6993 = vmatmul.mubr.bf16.vlgmr.msra.gmra.mrb[80].mxu1 %v6569_v26  ;;  %v9340_v48 = vld [vmem:[#allocation11 + $0xf64] ss:$28 sps:$4 sm:$0xff]   ;;  %v9371_v28 = vld [vmem:[#allocation14 + $0x108] sm:$0xff]  }
 0x523   : > { %8153 = vmatpush3.bf16.msra.mxu1 %v9281_v25  ;;  %6295 = vmatpush1.bf16.msra.mxu0 %v9278_v43  ;;  %v9338_v43 = vld [vmem:[#allocation11 + $0xf60] ss:$28 sps:$4 sm:$0xff]  }
 0x524   : > { %7032 = vmatprep.mubr.bf16.mxu1 %v6572_v22  ;;  %8154 = vmatprep.subr.bf16.mxu1 %v9282_v6 }
 0x525   : > { %6296 = vmatprep.subr.bf16.mxu0 %v9285_v19  ;;  %v9343_v19 = vld [vmem:[#allocation11 + $0xf9c] ss:$28 sps:$4 sm:$0xff]  }
 0x527   : > { %8155 = vmatpush3.bf16.msra.mxu1 %v9286_v34  ;;  %6297 = vmatpush1.bf16.msra.mxu0 %v9283_v10  ;;  %v9341_v34 = vld [vmem:[#allocation11 + $0xf98] ss:$28 sps:$4 sm:$0xff]  }
 0x528   : > { %8156 = vmatprep.subr.bf16.mxu1 %v9287_v54  ;;  %6298 = vmatprep.subr.bf16.mxu0 %v9290_v27  ;;  %v9346_v54 = vld [vmem:[#allocation11 + $0xfd4] ss:$28 sps:$4 sm:$0xff]  }
 0x529   : > { %v9344_v27 = vld [vmem:[#allocation11 + $0xfd0] ss:$28 sps:$4 sm:$0xff]  }
 0x52b   : > { %8157 = vmatpush3.bf16.msra.mxu1 %v9291_v0  ;;  %6299 = vmatpush1.bf16.msra.mxu0 %v9288_v9  ;;  %v9349_v9 = vld [vmem:[#allocation11 + $0x100c] ss:$28 sps:$4 sm:$0xff]  }
 0x52c   : > { %8158 = vmatprep.subr.bf16.mxu1 %v9292_v40  ;;  %6300 = vmatprep.subr.bf16.mxu0 %v9295_v12  ;;  %v9347_v0 = vld [vmem:[#allocation11 + $0x1008] ss:$28 sps:$4 sm:$0xff]   ;;  %v9350_v12 = vld [vmem:[#allocation11 + $0x1040] ss:$28 sps:$4 sm:$0xff]  }
 0x52d   : > { %v9352_v40 = vld [vmem:[#allocation11 + $0x1044] ss:$28 sps:$4 sm:$0xff]  }
 0x52f   : > { %8159 = vmatpush3.bf16.msra.mxu1 %v9296_v20  ;;  %6301 = vmatpush1.bf16.msra.mxu0 %v9293_v37  ;;  %v9355_v37 = vld [vmem:[#allocation11 + $0x107c] ss:$28 sps:$4 sm:$0xff]  }
 0x530   : > { %8160 = vmatprep.subr.bf16.mxu1 %v9297_v30  ;;  %6302 = vmatprep.subr.bf16.mxu0 %v9300_v3  ;;  %v9353_v20 = vld [vmem:[#allocation11 + $0x1078] ss:$28 sps:$4 sm:$0xff]   ;;  %v9356_v3 = vld [vmem:[#allocation11 + $0x10b0] ss:$28 sps:$4 sm:$0xff]  }
 0x531   : > { %v9358_v30 = vld [vmem:[#allocation11 + $0x10b4] ss:$28 sps:$4 sm:$0xff]  }
 0x533   : > { %8161 = vmatpush3.bf16.msra.mxu1 %v9301_v16  ;;  %6303 = vmatpush1.bf16.msra.mxu0 %v9298_v53  ;;  %v9361_v53 = vld [vmem:[#allocation11 + $0x10ec] ss:$28 sps:$4 sm:$0xff]  }
 0x534   : > { %8162 = vmatprep.subr.bf16.mxu1 %v9302_v32  ;;  %6304 = vmatprep.subr.bf16.mxu0 %v9305_v24  ;;  %v9359_v16 = vld [vmem:[#allocation11 + $0x10e8] ss:$28 sps:$4 sm:$0xff]  }
 0x537   : > { %8163 = vmatpush3.bf16.msra.mxu1 %v9306_v23  ;;  %6305 = vmatpush1.bf16.msra.mxu0 %v9303_v62  ;;  %v9362_v62 = vld [vmem:[#allocation11 + $0x1120] ss:$28 sps:$4 sm:$0xff]  }
 0x538   : > { %8164 = vmatprep.subr.bf16.mxu1 %v9307_v59  ;;  %6306 = vmatprep.subr.bf16.mxu0 %v9310_v15  ;;  %v9367_v59 = vld [vmem:[#allocation11 + $0x115c] ss:$28 sps:$4 sm:$0xff]  }
 0x53a   : > { %v8036_v35 = vpop.f32.mrb[60].mxu1 }
 0x53b   : > { %v8037_v2 = vpop.f32.mrb[61].mxu1  ;;  %8165 = vmatpush3.bf16.msra.mxu1 %v9311_v61  ;;  %6307 = vmatpush1.bf16.msra.mxu0 %v9308_v36  ;;  %v9365_v61 = vld [vmem:[#allocation11 + $0x1158] ss:$28 sps:$4 sm:$0xff]  }
 0x53c   : > { %v8038_v18 = vadd.f32 %v8037_v2, %v8036_v35  ;;  %v8039_v57 = vpop.f32.mrb[62].mxu1  ;;  %8166 = vmatprep.subr.bf16.mxu1 %v9312_v42  ;;  %6308 = vmatprep.subr.bf16.mxu0 %v9315_v44  ;;  %v9369_v42 = vld [vmem:[#allocation14 + $0x100] sm:$0xff]   ;;  %v9370_v44 = vld [vmem:[#allocation14 + $0x148] sm:$0xff]  }
 0x53d   : > { %v8040_v4 = vpop.f32.mrb[63].mxu1  ;;  %v9372_v57 = vld [vmem:[#allocation14 + $0x150] sm:$0xff]  }
 0x53e   : > { %v9373_v4 = vld [vmem:[#allocation14 + $0x110] sm:$0xff]  }
 0x53f   : > { %8167 = vmatpush3.bf16.msra.mxu1 %v9316_v51  ;;  %6309 = vmatpush1.bf16.msra.mxu0 %v9313_v45 }
 0x540   : > { %6310 = vmatprep.subr.bf16.mxu0 %v9319_v11  ;;  %8174 = vmatprep.subr.bf16.mxu1 %v9368_v29 }
 0x542   : > { %7033 = vmatmul.mubr.bf16.vlgmr.msra.gmra.mrb[84].mxu1 %v6571_v38  ;;  %v9376_v38 = vld [vmem:[#allocation14 + $0x160] sm:$0xff]  }
 0x543   : > { %6311 = vmatpush1.bf16.msra.mxu0 %v9317_v14  ;;  %8175 = vmatpush3.bf16.msra.mxu1 %v9369_v42  ;;  %v9374_v14 = vld [vmem:[#allocation14 + $0x158] sm:$0xff]  }
 0x544   : > { %6321 = vmatprep.subr.bf16.mxu0 %v9322_v31  ;;  %8176 = vmatprep.subr.bf16.mxu1 %v9370_v44  ;;  %v9377_v31 = vld [vmem:[#allocation14 + $0x120] sm:$0xff]  }
 0x546   : > { %6313 = vmatmul.mubr.bf16.vlgmr.msra.gmra.mrb[36].mxu0 %v11034_v1  ;;  %v9337_v1 = vld [vmem:[#allocation11 + $0xf2c] ss:$28 sps:$4 sm:$0xff]  }
 0x547   : > { %6322 = vmatpush1.bf16.msra.mxu0 %v9320_v55  ;;  %6353 = vmatprep.mubr.bf16.mxu0 %v11037_v39  ;;  %v5739_v39 = vrot.slane %v11065_v56, %v5738_v41  ;;  %v9378_v55 = vld [vmem:[#allocation14 + $0x168] sm:$0xff]   ;;  %v9381_v41 = vld [vmem:[#allocation14 + $0x130] sm:$0xff]  }
 0x548   : > { %6323 = vmatprep.subr.bf16.mxu0 %v9325_v49  ;;  %8177 = vmatpush3.bf16.msra.mxu1 %v9371_v28  ;;  %v9379_v49 = vld [vmem:[#allocation14 + $0x128] sm:$0xff]  }
 0x549   : > { %v6397_v25 = vadd.f32 %v8038_v18, %v5739_v39  ;;  %8178 = vmatprep.subr.bf16.mxu1 %v9372_v57 }
 0x54b   : > { %6324 = vmatpush1.bf16.msra.mxu0 %v9323_v5 }
 0x54c   : > { %6325 = vmatprep.subr.bf16.mxu0 %v9328_v21  ;;  %8179 = vmatpush3.bf16.msra.mxu1 %v9373_v4 }
 0x54d   : > { %8180 = vmatprep.subr.bf16.mxu1 %v9374_v14 }
 0x54f   : > { %6326 = vmatpush1.bf16.msra.mxu0 %v9326_v33 }
 0x550   : > { %6327 = vmatprep.subr.bf16.mxu0 %v9331_v52 }
 0x553   : > { %6328 = vmatpush1.bf16.msra.mxu0 %v9329_v63 }
 0x554   : > { %6329 = vmatprep.subr.bf16.mxu0 %v9334_v7 }
 0x557   : > { %6330 = vmatpush1.bf16.msra.mxu0 %v9332_v13  ;;  %v9380_v13 = vld [vmem:[#allocation14 + $0x170] sm:$0xff]  }
 0x558   : > { %6331 = vmatprep.subr.bf16.mxu0 %v9337_v1  ;;  %v9382_v1 = vld [vmem:[#allocation14 + $0x178] sm:$0xff]  }
 0x55a   : > { %v8058_v17 = vpop.f32.mrb[64].mxu1 }
 0x55b   : > { %v8059_v60 = vpop.f32.mrb[65].mxu1  ;;  %6332 = vmatpush1.bf16.msra.mxu0 %v9335_v47  ;;  %v9383_v47 = vld [vmem:[#allocation14 + $0x138] sm:$0xff]  }
 0x55c   : > { %v8060_v26 = vadd.f32 %v8059_v60, %v8058_v17  ;;  %v8061_v6 = vpop.f32.mrb[66].mxu1  ;;  %6333 = vmatprep.subr.bf16.mxu0 %v9340_v48 }
 0x55d   : > { %v8062_v22 = vpop.f32.mrb[67].mxu1 }
 0x55e   : > { %v6437_v10 = vadd.f32 %v8060_v26, %v6397_v25  ;;  %v6671_v25 = vld [vmem:[#allocation15] sm:$0x1] }
 0x55f   : > { %6334 = vmatpush1.bf16.msra.mxu0 %v9338_v43 }
 0x560   : > { %6335 = vmatprep.subr.bf16.mxu0 %v9343_v19 }
 0x563   : > { %6336 = vmatpush1.bf16.msra.mxu0 %v9341_v34 }
 0x564   : > { %6337 = vmatprep.subr.bf16.mxu0 %v9346_v54 }
 0x567   : > { %6338 = vmatpush1.bf16.msra.mxu0 %v9344_v27  ;;  %v5730_v27 = vsub.s32 4, %v11263_v50 }
 0x568   : > { %6339 = vmatprep.subr.bf16.mxu0 %v9349_v9  ;;  %v5734_v9 = vsub.s32 5, %v11263_v50 }
 0x56b   : > { %6340 = vmatpush1.bf16.msra.mxu0 %v9347_v0  ;;  %v5731_v0 = vrot.slane %v11065_v56, %v5730_v27 }
 0x56c   : > { %6341 = vmatprep.subr.bf16.mxu0 %v9352_v40  ;;  %v5735_v40 = vrot.slane %v11065_v56, %v5734_v9 }
 0x56f   : > { %6342 = vmatpush1.bf16.msra.mxu0 %v9350_v12 }
 0x570   : > { %6343 = vmatprep.subr.bf16.mxu0 %v9355_v37 }
 0x573   : > { %6344 = vmatpush1.bf16.msra.mxu0 %v9353_v20 }
 0x574   : > { %6345 = vmatprep.subr.bf16.mxu0 %v9358_v30 }
 0x577   : > { %6346 = vmatpush1.bf16.msra.mxu0 %v9356_v3 }
 0x578   : > { %6347 = vmatprep.subr.bf16.mxu0 %v9361_v53 }
 0x57a   : > { %v8080_v32 = vpop.f32.mrb[68].mxu1 }
 0x57b   : > { %v8081_v24 = vpop.f32.mrb[69].mxu1  ;;  %6348 = vmatpush1.bf16.msra.mxu0 %v9359_v16 }
 0x57c   : > { %v8082_v23 = vadd.f32 %v8081_v24, %v8080_v32  ;;  %v8083_v8 = vpop.f32.mrb[70].mxu1  ;;  %6349 = vmatprep.subr.bf16.mxu0 %v9364_v58 }
 0x57d   : > { %v8084_v15 = vpop.f32.mrb[71].mxu1 }
 0x57e   : > { %v6477_v36 = vadd.f32 %v8082_v23, %v6437_v10 }
 0x57f   : > { %6350 = vmatpush1.bf16.msra.mxu0 %v9362_v62 }
 0x580   : > { %6351 = vmatprep.subr.bf16.mxu0 %v9367_v59 }
 0x583   : > { %6352 = vmatpush1.bf16.msra.mxu0 %v9365_v61 }
 0x586   : > { %6354 = vmatmul.mubr.bf16.vlgmr.msra.gmra.mrb[36].mxu0 %v11044_v46  ;;  %v9375_v46 = vld [vmem:[#allocation14 + $0x118] sm:$0xff]  }
 0x587   : > { %8181 = vmatpush3.bf16.msra.mxu1 %v9375_v46 }
 0x588   : > { %8182 = vmatprep.subr.bf16.mxu1 %v9376_v38 }
 0x58b   : > { %8183 = vmatpush3.bf16.msra.mxu1 %v9377_v31 }
 0x58c   : > { %8184 = vmatprep.subr.bf16.mxu1 %v9378_v55 }
 0x58f   : > { %8185 = vmatpush3.bf16.msra.mxu1 %v9379_v49 }
 0x590   : > { %8186 = vmatprep.subr.bf16.mxu1 %v9380_v13 }
 0x593   : > { %8187 = vmatpush3.bf16.msra.mxu1 %v9381_v41 }
 0x594   : > { %8188 = vmatprep.subr.bf16.mxu1 %v9382_v1 }
 0x597   : > { %8189 = vmatpush3.bf16.msra.mxu1 %v9383_v47 }
 0x59a   : > { %v8102_v35 = vpop.f32.mrb[72].mxu1 }
 0x59b   : > { %v8103_v2 = vpop.f32.mrb[73].mxu1 }
 0x59c   : > { %v8104_v45 = vadd.f32 %v8103_v2, %v8102_v35  ;;  %v8105_v51 = vpop.f32.mrb[74].mxu1 }
 0x59d   : > { %v8106_v18 = vpop.f32.mrb[75].mxu1 }
 0x59e   : > { %v6517_v11 = vadd.f32 %v8104_v45, %v6477_v36 }
 0x5ba   : > { %v8124_v5 = vpop.f32.mrb[76].mxu1 }
 0x5bb   : > { %v8125_v21 = vpop.f32.mrb[77].mxu1 }
 0x5bc   : > { %v8126_v33 = vadd.f32 %v8125_v21, %v8124_v5  ;;  %v8127_v52 = vpop.f32.mrb[78].mxu1 }
 0x5bd   : > { %v8128_v63 = vpop.f32.mrb[79].mxu1 }
 0x5be   : > { %v6557_v7 = vadd.f32 %v8126_v33, %v6517_v11 }
 0x5c0   : > { %6562 = vst [vmem:[%s487_s15] sm:$0x1] %v6557_v7 }
 0x5f5   : > { %v8146_v39 = vpop.f32.mrb[80].mxu1 }
 0x5f6   : > { %v8147_v48 = vpop.f32.mrb[81].mxu1 }
 0x5f7   : > { %v8148_v17 = vadd.f32 %v8147_v48, %v8146_v39  ;;  %v8149_v60 = vpop.f32.mrb[82].mxu1 }
 0x5f8   : > { %v8150_v43 = vpop.f32.mrb[83].mxu1 }
 0x5f9   : > { %v6995_v19 = vadd.f32 %v8148_v17, %v6671_v25 }
 0x615   : > { %v8168_v26 = vpop.f32.mrb[84].mxu1 }
 0x616   : > { %v8169_v6 = vpop.f32.mrb[85].mxu1 }
 0x617   : > { %v8170_v22 = vadd.f32 %v8169_v6, %v8168_v26  ;;  %v8171_v10 = vpop.f32.mrb[86].mxu1 }
 0x618   : > { %v8172_v34 = vpop.f32.mrb[87].mxu1 }
 0x619   : > { %v7035_v54 = vadd.f32 %v8170_v22, %v6995_v19 }
 0x659   : > { %v6355_v12 = vpop.f32.mrb[36].mxu0 }
 0x65a   : > { %v8212_v37 = vadd.f32 %v6355_v12, %v5731_v0  ;;  %v6357_v20 = vpop.f32.mrb[37].mxu0 }
 0x65b   : > { %v8213_v30 = vadd.f32 %v6357_v20, %v5735_v40  ;;  %v6359_v3 = vpop.f32.mrb[38].mxu0 }
 0x65c   : > { %v6567_v53 = vmax.f32 %v8212_v37, 0.0  ;;  %v6360_v16 = vpop.f32.mrb[39].mxu0 }
 0x65d   : > { %v6568_v58 = vmax.f32 %v8213_v30, 0.0 }
 0x65e   : > { %v6573_v24 = vpack.c.bf16 %v6567_v53, %v6567_v53 }
 0x65f   : > { %v6574_v32 = vpack.c.bf16 %v6568_v58, %v6568_v58 }
 0x661   : > { %7072 = vmatprep.mubr.bf16.mxu1 %v6574_v32 }
 0x662   : > { %7073 = vmatmul.mubr.bf16.vlgmr.msra.gmra.mrb[88].mxu1 %v6573_v24 }
 0x663   : > { %9797 = shalt.err (!%p9794_p6)
}
 0x664   : > { %s9798_s4 = scalar_lea.hbm %s11099_s25, 16  ;;  %s9802_s27 = scalar_lea.hbm %s11184_s9, 32 }
 0x665   : > { %p9799_p7 = scmp.ne.s32.totalorder %s11099_s25, %s9798_s4  ;;  %p9803_p0 = scmp.lt.u32.totalorder %s11099_s25, %s11184_s9 }
 0x666   : > { %p9804_p2 = scmp.lt.u32.totalorder %s9802_s27, %s9798_s4  ;;  %p9806_p1 = scmp.lt.u32.totalorder %s9798_s4, %s11099_s25 }
 0x667   : > { %p9800_p9 = pnand %p9799_p7, %p11266_p4 }
 0x668   : > { %p9805_p13 = por %p9804_p2, %p9803_p0 }
 0x669   : > { %p9801_p12 = pneg %p9800_p9 }
 0x66a   : > { %p9807_p8 = por %p9806_p1, %p9805_p13 }
 0x66c   : > { %p9808_p10 = pnand %p9807_p8, %p9801_p12 }
 0x66e   : > { %9811 = shalt.err (!%p9808_p10)
}
 0x66f   : > { %8294 = dma.vmem_to_hbm [thread:$0]  (%p11266_p4), %s7099_s2, 16, %s11099_s25, %s7082_s17  }
 0x670   : > { %s493_s26 = scalar_lea.vmem [#allocation18], %s11084_s28  ;;  %s11127_s13 = scalar_lea.hbm %s11185_s10, %s8009_s1 }
 0x671   : > { %s7111_s24 = sshll.u32 %s493_s26, 4  ;;  %s7086_s25 = scalar_lea.sflag [#allocation19], %s11084_s28  ;;  %s11129_s24 = int_to_ptr.vmem [resolvable:$true] %s7111_s24 }
 0x672   : > { %s9812_s2 = scalar_lea.vmem %s11129_s24, 16  ;;  %s9932_s17 = smov [#allocation18]  }
 0x673   : > { %p9813_p11 = scmp.ne.s32.totalorder %s11129_s24, %s9812_s2  ;;  %s9816_s30 = sshll.u32 %s9932_s17, 4  ;;  %s9817_s30 = int_to_ptr.vmem [resolvable:$false] %s9816_s30 }
 0x674   : > { %s9818_s16 = scalar_lea.vmem %s9817_s30, 32  ;;  %p9819_p6 = scmp.lt.s32.totalorder %s11129_s24, %s9817_s30 }
 0x675   : > { %p9814_p3 = pnand %p9813_p11, %p11266_p4  ;;  %p9820_p7 = scmp.lt.s32.totalorder %s9818_s16, %s9812_s2 }
 0x677   : > { %p9815_p5 = pneg %p9814_p3  ;;  %p9821_p9 = por %p9820_p7, %p9819_p6 }
 0x679   : > { %p9822_p12 = pnand %p9821_p9, %p9815_p5 }
 0x735   : > { %v8190_v56 = vpop.f32.mrb[88].mxu1 }
 0x736   : > { %v8191_v50 = vpop.f32.mrb[89].mxu1 }
 0x737   : > { %v8192_v62 = vadd.f32 %v8191_v50, %v8190_v56  ;;  %v8193_v23 = vpop.f32.mrb[90].mxu1 }
 0x738   : > { %v8194_v8 = vpop.f32.mrb[91].mxu1 }
 0x739   : > { %v7075_v59 = vadd.f32 %v8192_v62, %v7035_v54 }
 0x73b   : > { %7080 = vst [vmem:[%s493_s26] sm:$0x1] %v7075_v59 }
 0x73c   : > { %9825 = shalt.err (!%p9822_p12)
}
 0x73d   : > { %s9826_s28 = scalar_lea.hbm %s11127_s13, 16  ;;  %s9830_s22 = scalar_lea.hbm %s11185_s10, 32 }
 0x73e   : > { %p9827_p0 = scmp.ne.s32.totalorder %s11127_s13, %s9826_s28  ;;  %p9831_p1 = scmp.lt.u32.totalorder %s11127_s13, %s11185_s10 }
 0x73f   : > { %p9832_p8 = scmp.lt.u32.totalorder %s9830_s22, %s9826_s28  ;;  %p9834_p11 = scmp.lt.u32.totalorder %s9826_s28, %s11127_s13 }
 0x740   : > { %p9828_p2 = pnand %p9827_p0, %p11266_p4 }
 0x741   : > { %p9833_p10 = por %p9832_p8, %p9831_p1 }
 0x742   : > { %p9829_p13 = pneg %p9828_p2 }
 0x743   : > { %p9835_p3 = por %p9834_p11, %p9833_p10 }
 0x745   : > { %p9836_p5 = pnand %p9835_p3, %p9829_p13 }
 0x747   : > { %9839 = shalt.err (!%p9836_p5)
}
 0x748   : > { %8295 = dma.vmem_to_hbm [thread:$0]  (%p11266_p4), %s11129_s24, 16, %s11127_s13, %s7086_s25  }
 0x749 PF: > { %s11267_s19 = sld [smem:[#allocation27_spill]]  ;;  %s11268_s21 = sld [smem:[#allocation31_spill]] }
 0x74a   : > { %p8346_p6 = scmp.ge.s32.totalorder %s9914_s18, 2 }
 0x74f   : > { %s7123_s27 = sand.u32 1, %s11267_s19   ;;  %p11269_p7 = scmp.ne.s32.totalorder %s11268_s21, 0 }
 0x750   : > { %s7124_s20 = scalar_lea.sflag [#allocation5], %s7123_s27 }
 0x751   : > { %p8324_p9 = pnand %p8346_p6, %p11269_p7 }
 0x753   : > { %9885 = dma.done.wait (!%p8324_p9), %s7124_s20, 16  }
 0x754   : > { %9887 = vsyncadd (!%p8324_p9), %s7124_s20, 4294967280  ;;  %s7132_s11 = scalar_lea.sflag [#allocation19], %s7123_s27 }
 0x755   : > { %9889 = dma.done.wait (!%p8324_p9), %s7132_s11, 16  }
 0x756   : > { %9891 = vsyncadd (!%p8324_p9), %s7132_s11, 4294967280  ;;  %s32_s18 = sadd.s32 1, %s9914_s18   ;;  %s11270_s23 = sld [smem:[#allocation28_spill]] }
 0x757   : > { %p29_p12 = scmp.ge.s32.totalorder %s32_s18, 4   ;;  %s11271_s15 = sld [smem:[#allocation32_spill]] }
 0x758   : > { %s11272_s16 = sld [smem:[#allocation29_spill]]  ;;  %s11273_s17 = sld [smem:[#allocation30_spill]] }
 0x759   : > { %s11274_s13 = smov %s9898_s14  ;;  %31 = sbr.rel (!%p29_p12) target bundleno = 16 (0x10), region = 149 }
 0x75c   : > { %s11275_s14 = smov %s11270_s23 }
 0x760   :  { %7136 = vsyncpa [#allocation4], 1 }
 0x761   :  { %7138 = vsyncpa [#allocation4 + $0x1], 1 }
 0x762   :  { %7139 = vsyncpa [#allocation7], 1 }
 0x763   :  { %7140 = vsyncpa [#allocation10], 1 }
 0x764   :  { %7141 = vsyncpa [#allocation13], 1 }
 0x765   :  { %7142 = vsyncpa [#allocation16], 1 }
 0x766   :  { %7143 = vsyncpa [#allocation5], 1 }
 0x767   :  { %7145 = vsyncpa [#allocation5 + $0x1], 1 }
 0x768   :  { %7146 = vsyncpa [#allocation19], 1 }
 0x769   :  { %7148 = vsyncpa [#allocation19 + $0x1], 1 }

</bundles_post_ra>
